<compile_context>
chip_gen: v7x
topology: tpu7x:2x2x1
jax: 0.10.0
libtpu: 0.0.40
codegen_flags: <defaults>
</compile_context>

<pallas_src>
import functools
import math

import jax
import jax.numpy as jnp
from jax import lax
from jax.experimental import pallas as pl
from jax.experimental.pallas import tpu as pltpu


# ----------------------------------------------------------------------------
# Model hyper-parameters (small, synthetic "BERT")
# ----------------------------------------------------------------------------
VOCAB = 50
MAX_POS = 16
HIDDEN = 32
NUM_HEADS = 2
HEAD_DIM = HIDDEN // NUM_HEADS
INTERMEDIATE = 64
NUM_LAYERS = 2
NUM_LABELS = 5
LN_EPS = 1e-12

LANES = 128          # padded lane width for QKV / emissions / CRF tag axis
NEG = -1e9           # finite "-inf" (avoids inf-inf NaN traps in log-space CRF math)

_VMEM = pl.BlockSpec(memory_space=pltpu.MemorySpace.VMEM)


# ----------------------------------------------------------------------------
# In-kernel helpers (pure jnp, traced inside the Pallas kernel)
# ----------------------------------------------------------------------------
_SQRT1_2 = 0.7071067811865476


def _erf_approx(x):
    # Abramowitz & Stegun 7.1.26 (|err| < 1.5e-7) — exact-GELU parity with HF BERT
    # using only exp/abs/where.  Division routed to the EUP via approx reciprocal.
    a1, a2, a3, a4, a5 = 0.254829592, -0.284496736, 1.421413741, -1.453152027, 1.061405429
    p = 0.3275911
    ax = jnp.abs(x)
    t = pl.reciprocal(1.0 + p * ax, approx=True)
    poly = ((((a5 * t + a4) * t + a3) * t + a2) * t + a1) * t
    y = 1.0 - poly * jnp.exp(-ax * ax)
    return jnp.where(x >= 0.0, y, -y)


def _gelu_exact(x):
    return 0.5 * x * (1.0 + _erf_approx(x * _SQRT1_2))


def _layernorm(z, g, b, eps=LN_EPS):
    mean = jnp.mean(z, axis=-1, keepdims=True)
    var = jnp.mean((z - mean) ** 2, axis=-1, keepdims=True)
    return (z - mean) * lax.rsqrt(var + eps) * g + b


def _mxu(a, w):
    # bf16 MXU operands, f32 accumulation (weights arrive pre-cast to bf16).
    return jnp.dot(a.astype(jnp.bfloat16), w.astype(jnp.bfloat16),
                   preferred_element_type=jnp.float32)


# ----------------------------------------------------------------------------
# The fused kernel: embeddings-LN -> encoder layers -> classifier -> CRF loss
# ----------------------------------------------------------------------------
def _bert_crf_kernel(
        x_ref, md_ref,
        wqkv_ref, wo_ref, w1_ref, w2_ref, vec_ref,
        head_ref, crf_ref,
        llh_ref, em_out_ref,
        *, batch, seq, num_heads, head_dim, num_labels, scale):
    B, S, T = batch, seq, num_labels
    nh, hd = num_heads, head_dim
    H = nh * hd
    TP = LANES
    n_layers = wqkv_ref.shape[0]
    I = w1_ref.shape[-1]

    # Packed data slab: rows 0:B = attention mask, rows B:2B = CRF tags (as float).
    mask = md_ref[0:B, :]                                    # (B, S) f32
    tags = md_ref[B:2 * B, :].astype(jnp.int32)              # (B, S) int32

    # Packed head slab: classifier weight/bias + embedding LN + CRF start/end.
    head = head_ref[...]                                     # (H+5, 128)
    wc = head[0:H, :]
    bc = head[H:H + 1, :]
    emb_g = head[H + 1:H + 2, :H]
    emb_b = head[H + 2:H + 3, :H]
    start = head[H + 3:H + 4, :]                             # NEG in padded lanes
    end = head[H + 4:H + 5, :]                               # 0 in padded lanes

    trans_num = crf_ref[0]                                   # (128,128) trans, 0-padded
    exp_trans = crf_ref[1]                                   # (128,128) exp(trans), 0-padded

    # Attention bias pre-broadcast once to (B*nh, 1, S); reused by every layer.
    bias = (mask - 1.0) * 1e9
    attn_bias = jnp.broadcast_to(bias[:, None, None, :],
                                 (B, nh, 1, S)).reshape(B * nh, 1, S)

    # Embedding LayerNorm.
    x = _layernorm(x_ref[...], emb_g, emb_b)                 # (B*S, H)
    # TODO(synk): nn.Dropout is identity in eval mode; not applied here.

    for l in range(n_layers):
        vec = vec_ref[l]                                     # (8, 128) packed per-layer vectors

        # Fused Q|K|V projection, lane-dense (128-wide) output.
        qkv = _mxu(x, wqkv_ref[l]) + vec[0:1, :]             # (B*S, 128)
        qkv3 = qkv.reshape(B, S, TP)

        # Split heads into a single (B*nh) batch dim using only lane slices and
        # major-axis concats (no sublane transposes).
        def heads(base):
            parts = [qkv3[:, :, base + h * hd: base + (h + 1) * hd][:, None]
                     for h in range(nh)]
            return jnp.concatenate(parts, axis=1).reshape(
                B * nh, S, hd).astype(jnp.bfloat16)

        qb, kb, vb = heads(0), heads(H), heads(2 * H)

        # One batched einsum pair over all heads.
        s = jnp.einsum("bqd,bkd->bqk", qb, kb,
                       preferred_element_type=jnp.float32) * scale
        s = s + attn_bias
        m = jnp.max(s, axis=-1, keepdims=True)
        p = jnp.exp(s - m)
        p = p * pl.reciprocal(jnp.sum(p, axis=-1, keepdims=True), approx=True)
        ctx = jnp.einsum("bqk,bkd->bqd", p.astype(jnp.bfloat16), vb,
                         preferred_element_type=jnp.float32)  # (B*nh, S, hd)

        ctx = ctx.reshape(B, nh, S, hd)
        ctx = jnp.concatenate([ctx[:, h].reshape(B * S, hd) for h in range(nh)],
                              axis=-1)                        # (B*S, H)

        attn_out = _mxu(ctx, wo_ref[l]) + vec[1:2, :H]
        x = _layernorm(x + attn_out, vec[4:5, :H], vec[5:6, :H])

        hmid = _gelu_exact(_mxu(x, w1_ref[l]) + vec[2:3, :I])
        ffn_out = _mxu(hmid, w2_ref[l]) + vec[3:4, :H]
        x = _layernorm(x + ffn_out, vec[6:7, :H], vec[7:8, :H])

    # Classifier — padded to 128 lanes so the big store is lane-dense.
    em_pad = _mxu(x, wc) + bc                                 # (B*S, 128)
    em_out_ref[...] = em_pad

    # ---- CRF negative log-likelihood, entirely in the 128-lane padded domain ----
    em3 = em_pad.reshape(B, S, TP)                            # layout-preserving (S==8)
    tag_oh = (tags[:, :, None] ==
              lax.broadcasted_iota(jnp.int32, (B, S, TP), 2)).astype(jnp.float32)
    em_tag = jnp.sum(em3 * tag_oh, axis=-1)                   # (B, S)

    # Transition score trans[tags[:-1], tags[1:]] as one small matmul
    # (no (B, S-1, T, T) broadcast intermediate).
    rows_prev = jnp.dot(tag_oh.reshape(B * S, TP), trans_num,
                        preferred_element_type=jnp.float32).reshape(B, S, TP)
    trans_score = jnp.sum(rows_prev[:, :-1, :] * tag_oh[:, 1:, :], axis=-1)  # (B, S-1)

    num = jnp.sum(start * tag_oh[:, 0, :], axis=-1, keepdims=True) + em_tag[:, 0:1]
    num = num + jnp.sum((trans_score + em_tag[:, 1:]) * mask[:, 1:],
                        axis=-1, keepdims=True)

    # End transition at the last valid position (assumes right-padded masks,
    # same assumption as torchcrf).
    seq_len = jnp.sum(mask, axis=-1, keepdims=True).astype(jnp.int32)        # (B, 1)
    pos = lax.broadcasted_iota(jnp.int32, (B, S), 1)
    last_sel = (pos == (seq_len - 1)).astype(jnp.float32)
    end_at_tag = jnp.sum(tag_oh * end[:, None, :], axis=-1)
    num = num + jnp.sum(end_at_tag * last_sel, axis=-1, keepdims=True)

    # Forward algorithm (log-partition).  Exp-domain recurrence: one tiny
    # (B,128)@(128,128) matmul per step keeps every reduce lane-dense and avoids
    # the per-step (B, T, T) broadcast tile.  Padded lanes are re-masked to NEG
    # each step; exp_trans has zeros in all padded rows/cols.
    pad_neg = jnp.where(lax.broadcasted_iota(jnp.int32, (1, TP), 1) < T, 0.0, NEG)
    score = start + em3[:, 0, :]                              # (B, 128), padded lanes ~NEG
    # TODO(synk): at larger S, switch this unrolled Python loop to
    #             lax.fori_loop(..., unroll=True) to bound vreg live ranges.
    for i in range(1, S):
        m = jnp.max(score, axis=-1, keepdims=True)
        alpha = jnp.exp(score - m)                            # padded lanes -> 0
        beta = jnp.dot(alpha, exp_trans, preferred_element_type=jnp.float32)
        nxt = m + jnp.log(beta + 1e-30) + em3[:, i, :] + pad_neg
        score = jnp.where(mask[:, i:i + 1] > 0.0, nxt, score)
    score = score + end
    mx = jnp.max(score, axis=-1, keepdims=True)
    denom = mx + jnp.log(jnp.sum(jnp.exp(score - mx), axis=-1, keepdims=True))

    # Lane-dense (B, 128) store; wrapper reads column 0.
    llh_ref[...] = jnp.broadcast_to(num - denom, (B, TP))


# ----------------------------------------------------------------------------
# Parameter init (deterministic, synthetic) + packing for the fused kernel
# ----------------------------------------------------------------------------
def init_params(key):
    keys = iter(jax.random.split(key, 64))

    def dense(shape):
        return jax.random.normal(next(keys), shape, jnp.float32) * 0.02

    params = {
        "word_emb": dense((VOCAB, HIDDEN)),
        "pos_emb": dense((MAX_POS, HIDDEN)),
        "type_emb": dense((2, HIDDEN)),
        "emb_ln_g": jnp.ones((1, HIDDEN), jnp.float32),
        "emb_ln_b": jnp.zeros((1, HIDDEN), jnp.float32),
        "layers": [],
    }
    for _ in range(NUM_LAYERS):
        lp = {
            "wq": dense((HIDDEN, HIDDEN)), "bq": jnp.zeros((1, HIDDEN), jnp.float32),
            "wk": dense((HIDDEN, HIDDEN)), "bk": jnp.zeros((1, HIDDEN), jnp.float32),
            "wv": dense((HIDDEN, HIDDEN)), "bv": jnp.zeros((1, HIDDEN), jnp.float32),
            "wo": dense((HIDDEN, HIDDEN)), "bo": jnp.zeros((1, HIDDEN), jnp.float32),
            "ln1_g": jnp.ones((1, HIDDEN), jnp.float32),
            "ln1_b": jnp.zeros((1, HIDDEN), jnp.float32),
            "w1": dense((HIDDEN, INTERMEDIATE)),
            "b1": jnp.zeros((1, INTERMEDIATE), jnp.float32),
            "w2": dense((INTERMEDIATE, HIDDEN)),
            "b2": jnp.zeros((1, HIDDEN), jnp.float32),
            "ln2_g": jnp.ones((1, HIDDEN), jnp.float32),
            "ln2_b": jnp.zeros((1, HIDDEN), jnp.float32),
        }
        params["layers"].append(lp)
    params["wc"] = dense((HIDDEN, NUM_LABELS))
    params["bc"] = jnp.zeros((1, NUM_LABELS), jnp.float32)
    # CRF params: torchcrf initializes uniform(-0.1, 0.1)
    params["crf_start"] = jax.random.uniform(next(keys), (1, NUM_LABELS),
                                             jnp.float32, -0.1, 0.1)
    params["crf_end"] = jax.random.uniform(next(keys), (1, NUM_LABELS),
                                           jnp.float32, -0.1, 0.1)
    params["crf_trans"] = jax.random.uniform(next(keys), (NUM_LABELS, NUM_LABELS),
                                             jnp.float32, -0.1, 0.1)
    return params


def pack_params(params):
    """Pack the 20 parameter tensors into a few VMEM slabs (DMA-count reduction)."""
    T = NUM_LABELS

    def padrow(v):
        return jnp.pad(v, ((0, 0), (0, LANES - v.shape[1])))

    wqkv, vec_rows = [], []
    for lp in params["layers"]:
        w = jnp.concatenate([lp["wq"], lp["wk"], lp["wv"]], axis=1)       # (H, 3H)
        wqkv.append(jnp.pad(w, ((0, 0), (0, LANES - 3 * HIDDEN))))
        rows = jnp.concatenate([
            padrow(jnp.concatenate([lp["bq"], lp["bk"], lp["bv"]], axis=1)),
            padrow(lp["bo"]), padrow(lp["b1"]), padrow(lp["b2"]),
            padrow(lp["ln1_g"]), padrow(lp["ln1_b"]),
            padrow(lp["ln2_g"]), padrow(lp["ln2_b"])], axis=0)            # (8, 128)
        vec_rows.append(rows)

    def stack(name):
        return jnp.stack([lp[name] for lp in params["layers"]])

    head_slab = jnp.concatenate([
        padrow(params["wc"]),                                             # rows 0:H
        padrow(params["bc"]),                                             # row  H
        padrow(params["emb_ln_g"]), padrow(params["emb_ln_b"]),           # rows H+1,H+2
        jnp.pad(params["crf_start"], ((0, 0), (0, LANES - T)),
                constant_values=NEG),                                     # row  H+3
        padrow(params["crf_end"])], axis=0)                               # row  H+4

    trans = params["crf_trans"]
    trans_num = jnp.zeros((LANES, LANES), jnp.float32).at[:T, :T].set(trans)
    exp_trans = jnp.zeros((LANES, LANES), jnp.float32).at[:T, :T].set(jnp.exp(trans))

    return {
        # Big weight stacks, pre-cast to bf16 (MXU operand dtype) to halve DMA bytes.
        "wqkv": jnp.stack(wqkv).astype(jnp.bfloat16),
        "wo": stack("wo").astype(jnp.bfloat16),
        "w1": stack("w1").astype(jnp.bfloat16),
        "w2": stack("w2").astype(jnp.bfloat16),
        # Small-vector slabs stay f32 (LayerNorm / bias / CRF math is f32).
        "vec": jnp.stack(vec_rows),                       # (L, 8, 128)
        "head": head_slab,                                # (H+5, 128)
        "crf": jnp.stack([trans_num, exp_trans]),         # (2, 128, 128)
    }


# ----------------------------------------------------------------------------
# Forward pass (training path: returns CRF loss, matching forward() with labels)
# ----------------------------------------------------------------------------
def bert_crf_forward(params, input_ids, attention_mask, labels):
    B, S = input_ids.shape
    mask_f = attention_mask.astype(jnp.float32)
    packed = pack_params(params)

    # Embedding gather stays in plain JAX glue; everything downstream is one kernel.
    x_emb = (params["word_emb"][input_ids]
             + params["pos_emb"][None, :S, :]
             + params["type_emb"][None, 0, :]).reshape(B * S, HIDDEN).astype(jnp.float32)

    # labels == -100 remapped to tag 0 (O label), as in the PyTorch module.
    tags = jnp.where(labels == -100, 0, labels).astype(jnp.int32)
    # Pack mask + tags into a single float slab (one DMA).
    md = jnp.concatenate([mask_f, tags.astype(jnp.float32)], axis=0)      # (2B, S)

    kernel = functools.partial(
        _bert_crf_kernel,
        batch=B, seq=S, num_heads=NUM_HEADS, head_dim=HEAD_DIM,
        num_labels=NUM_LABELS, scale=1.0 / math.sqrt(HEAD_DIM))

    llh_pad, em_pad = pl.pallas_call(
        kernel,
        out_shape=(jax.ShapeDtypeStruct((B, LANES), jnp.float32),
                   jax.ShapeDtypeStruct((B * S, LANES), jnp.float32)),
        in_specs=[_VMEM] * 9,
        out_specs=(_VMEM, _VMEM),
    )(x_emb, md,
      packed["wqkv"], packed["wo"], packed["w1"], packed["w2"], packed["vec"],
      packed["head"], packed["crf"])

    emissions = em_pad[:, :NUM_LABELS].reshape(B, S, NUM_LABELS)
    loss = -jnp.mean(llh_pad[:, 0])          # torchcrf reduction='mean', negated
    return loss, emissions


# TODO(synk): the inference path (crf.decode -> Viterbi, ragged Python lists) is not
#             implemented; only the training/loss path of forward() is reproduced.
# TODO(synk): a scaled (real BERT) version must NOT keep all weights VMEM-resident:
#             add an "arbitrary" grid axis over layers with BlockSpec index_map
#             (lambda l: (l, 0, 0)) to stream per-layer weights, keep weights bf16,
#             add a "parallel" grid over 256-row (128 on v5e) B*S tiles for v7x's two
#             TensorCores, and re-derive vmem_limit_bytes for v7x's 64 MiB VMEM.


if __name__ == "__main__":
    key = jax.random.PRNGKey(0)
    pk, ik, lk = jax.random.split(key, 3)

    B, S = 2, 8
    params = init_params(pk)

    input_ids = jax.random.randint(ik, (B, S), 0, VOCAB, dtype=jnp.int32)
    lengths = jnp.array([8, 5], dtype=jnp.int32)
    positions = jnp.arange(S, dtype=jnp.int32)[None, :]
    attention_mask = (positions < lengths[:, None]).astype(jnp.int32)
    labels = jax.random.randint(lk, (B, S), 0, NUM_LABELS, dtype=jnp.int32)
    labels = jnp.where(attention_mask == 1, labels, -100)

    loss, emissions = bert_crf_forward(params, input_ids, attention_mask, labels)
    jax.block_until_ready((loss, emissions))
    print("KERNEL_OK")
</pallas_src>

<mosaic_0001>
module attributes {stable_mosaic.version = 11 : i64} {
  func.func @_bert_crf_kernel(%arg0: memref<16x32xf32, #tpu.memory_space<vmem>>, %arg1: memref<4x8xf32, #tpu.memory_space<vmem>>, %arg2: memref<2x32x128xbf16, #tpu.memory_space<vmem>>, %arg3: memref<2x32x32xbf16, #tpu.memory_space<vmem>>, %arg4: memref<2x32x64xbf16, #tpu.memory_space<vmem>>, %arg5: memref<2x64x32xbf16, #tpu.memory_space<vmem>>, %arg6: memref<2x8x128xf32, #tpu.memory_space<vmem>>, %arg7: memref<37x128xf32, #tpu.memory_space<vmem>>, %arg8: memref<2x128x128xf32, #tpu.memory_space<vmem>>, %arg9: memref<2x128xf32, #tpu.memory_space<vmem>>, %arg10: memref<16x128xf32, #tpu.memory_space<vmem>>) attributes {dimension_semantics = [], scalar_prefetch = 0 : i64, scratch_operands = 0 : i64, tpu.core_type = #tpu.core_type<tc>} {
    %c0 = arith.constant 0 : index
    %c0_0 = arith.constant 0 : index
    %0 = vector.load %arg1[%c0, %c0_0] : memref<4x8xf32, #tpu.memory_space<vmem>>, vector<2x8xf32>
    %c2 = arith.constant 2 : index
    %c0_1 = arith.constant 0 : index
    %1 = vector.load %arg1[%c2, %c0_1] : memref<4x8xf32, #tpu.memory_space<vmem>>, vector<2x8xf32>
    %2 = arith.fptosi %1 : vector<2x8xf32> to vector<2x8xi32>
    %c0_2 = arith.constant 0 : index
    %c0_3 = arith.constant 0 : index
    %3 = vector.load %arg7[%c0_2, %c0_3] : memref<37x128xf32, #tpu.memory_space<vmem>>, vector<37x128xf32>
    %4 = vector.extract_strided_slice %3 {offsets = [0, 0], sizes = [32, 128], strides = [1, 1]} : vector<37x128xf32> to vector<32x128xf32>
    %5 = vector.extract_strided_slice %3 {offsets = [32, 0], sizes = [1, 128], strides = [1, 1]} : vector<37x128xf32> to vector<1x128xf32>
    %6 = vector.extract_strided_slice %3 {offsets = [33, 0], sizes = [1, 32], strides = [1, 1]} : vector<37x128xf32> to vector<1x32xf32>
    %7 = vector.extract_strided_slice %3 {offsets = [34, 0], sizes = [1, 32], strides = [1, 1]} : vector<37x128xf32> to vector<1x32xf32>
    %8 = vector.extract_strided_slice %3 {offsets = [35, 0], sizes = [1, 128], strides = [1, 1]} : vector<37x128xf32> to vector<1x128xf32>
    %9 = vector.extract_strided_slice %3 {offsets = [36, 0], sizes = [1, 128], strides = [1, 1]} : vector<37x128xf32> to vector<1x128xf32>
    %c0_4 = arith.constant 0 : index
    %c0_5 = arith.constant 0 : index
    %c0_6 = arith.constant 0 : index
    %10 = vector.load %arg8[%c0_4, %c0_5, %c0_6] : memref<2x128x128xf32, #tpu.memory_space<vmem>>, vector<1x128x128xf32>
    %11 = vector.shape_cast %10 : vector<1x128x128xf32> to vector<128x128xf32>
    %c1 = arith.constant 1 : index
    %c0_7 = arith.constant 0 : index
    %c0_8 = arith.constant 0 : index
    %12 = vector.load %arg8[%c1, %c0_7, %c0_8] : memref<2x128x128xf32, #tpu.memory_space<vmem>>, vector<1x128x128xf32>
    %13 = vector.shape_cast %12 : vector<1x128x128xf32> to vector<128x128xf32>
    %cst = arith.constant 1.000000e+00 : f32
    %14 = vector.broadcast %cst : f32 to vector<2x8xf32>
    %15 = arith.subf %0, %14 : vector<2x8xf32>
    %cst_9 = arith.constant 1.000000e+09 : f32
    %16 = vector.broadcast %cst_9 : f32 to vector<2x8xf32>
    %17 = arith.mulf %15, %16 : vector<2x8xf32>
    %18 = vector.shape_cast %17 : vector<2x8xf32> to vector<2x1x1x8xf32>
    %19 = vector.shape_cast %18 : vector<2x1x1x8xf32> to vector<2x1x1x8xf32>
    %20 = vector.broadcast %19 : vector<2x1x1x8xf32> to vector<2x2x1x8xf32>
    %21 = vector.shape_cast %20 : vector<2x2x1x8xf32> to vector<4x1x8xf32>
    %c0_10 = arith.constant 0 : index
    %c0_11 = arith.constant 0 : index
    %22 = vector.load %arg0[%c0_10, %c0_11] : memref<16x32xf32, #tpu.memory_space<vmem>>, vector<16x32xf32>
    %cst_12 = arith.constant dense<0.000000e+00> : vector<16xf32>
    %23 = vector.multi_reduction <add>, %22, %cst_12 [1] : vector<16x32xf32> to vector<16xf32>
    %24 = vector.shape_cast %23 : vector<16xf32> to vector<16x1xf32>
    %cst_13 = arith.constant 3.200000e+01 : f32
    %25 = vector.broadcast %cst_13 : f32 to vector<16x1xf32>
    %26 = arith.divf %24, %25 : vector<16x1xf32>
    %27 = vector.broadcast %26 : vector<16x1xf32> to vector<16x32xf32>
    %28 = arith.subf %22, %27 : vector<16x32xf32>
    %29 = arith.mulf %28, %28 : vector<16x32xf32>
    %cst_14 = arith.constant dense<0.000000e+00> : vector<16xf32>
    %30 = vector.multi_reduction <add>, %29, %cst_14 [1] : vector<16x32xf32> to vector<16xf32>
    %31 = vector.shape_cast %30 : vector<16xf32> to vector<16x1xf32>
    %cst_15 = arith.constant 3.200000e+01 : f32
    %32 = vector.broadcast %cst_15 : f32 to vector<16x1xf32>
    %33 = arith.divf %31, %32 : vector<16x1xf32>
    %34 = vector.broadcast %26 : vector<16x1xf32> to vector<16x32xf32>
    %35 = arith.subf %22, %34 : vector<16x32xf32>
    %cst_16 = arith.constant 9.99999996E-13 : f32
    %36 = vector.broadcast %cst_16 : f32 to vector<16x1xf32>
    %37 = arith.addf %33, %36 : vector<16x1xf32>
    %38 = math.rsqrt %37 : vector<16x1xf32>
    %39 = vector.broadcast %38 : vector<16x1xf32> to vector<16x32xf32>
    %40 = arith.mulf %35, %39 : vector<16x32xf32>
    %41 = vector.broadcast %6 : vector<1x32xf32> to vector<16x32xf32>
    %42 = arith.mulf %40, %41 : vector<16x32xf32>
    %43 = vector.broadcast %7 : vector<1x32xf32> to vector<16x32xf32>
    %44 = arith.addf %42, %43 : vector<16x32xf32>
    %c0_17 = arith.constant 0 : index
    %c0_18 = arith.constant 0 : index
    %c0_19 = arith.constant 0 : index
    %45 = vector.load %arg6[%c0_17, %c0_18, %c0_19] : memref<2x8x128xf32, #tpu.memory_space<vmem>>, vector<1x8x128xf32>
    %46 = vector.shape_cast %45 : vector<1x8x128xf32> to vector<8x128xf32>
    %c0_20 = arith.constant 0 : index
    %c0_21 = arith.constant 0 : index
    %c0_22 = arith.constant 0 : index
    %47 = vector.load %arg2[%c0_20, %c0_21, %c0_22] : memref<2x32x128xbf16, #tpu.memory_space<vmem>>, vector<1x32x128xbf16>
    %48 = vector.shape_cast %47 : vector<1x32x128xbf16> to vector<32x128xbf16>
    %49 = arith.truncf %44 : vector<16x32xf32> to vector<16x32xbf16>
    %cst_23 = arith.constant dense<0.000000e+00> : vector<16x128xf32>
    %50 = tpu.matmul %49, %48, %cst_23 {dimension_numbers = #tpu.dot_dimension_numbers<[1], [0], [0], [1], [0, 0, 1, 1], [], []>} : vector<16x32xbf16>, vector<32x128xbf16>, vector<16x128xf32> -> vector<16x128xf32>
    %51 = vector.extract_strided_slice %46 {offsets = [0, 0], sizes = [1, 128], strides = [1, 1]} : vector<8x128xf32> to vector<1x128xf32>
    %52 = vector.broadcast %51 : vector<1x128xf32> to vector<16x128xf32>
    %53 = arith.addf %50, %52 : vector<16x128xf32>
    %54 = vector.shape_cast %53 : vector<16x128xf32> to vector<2x8x128xf32>
    %55 = vector.extract_strided_slice %54 {offsets = [0, 0, 0], sizes = [2, 8, 16], strides = [1, 1, 1]} : vector<2x8x128xf32> to vector<2x8x16xf32>
    %56 = vector.shape_cast %55 : vector<2x8x16xf32> to vector<2x1x8x16xf32>
    %57 = vector.extract_strided_slice %54 {offsets = [0, 0, 16], sizes = [2, 8, 16], strides = [1, 1, 1]} : vector<2x8x128xf32> to vector<2x8x16xf32>
    %58 = vector.shape_cast %57 : vector<2x8x16xf32> to vector<2x1x8x16xf32>
    %59 = tpu.concatenate %56, %58 in 1 : vector<2x1x8x16xf32>, vector<2x1x8x16xf32> -> vector<2x2x8x16xf32>
    %60 = vector.shape_cast %59 : vector<2x2x8x16xf32> to vector<4x8x16xf32>
    %61 = arith.truncf %60 : vector<4x8x16xf32> to vector<4x8x16xbf16>
    %62 = vector.extract_strided_slice %54 {offsets = [0, 0, 32], sizes = [2, 8, 16], strides = [1, 1, 1]} : vector<2x8x128xf32> to vector<2x8x16xf32>
    %63 = vector.shape_cast %62 : vector<2x8x16xf32> to vector<2x1x8x16xf32>
    %64 = vector.extract_strided_slice %54 {offsets = [0, 0, 48], sizes = [2, 8, 16], strides = [1, 1, 1]} : vector<2x8x128xf32> to vector<2x8x16xf32>
    %65 = vector.shape_cast %64 : vector<2x8x16xf32> to vector<2x1x8x16xf32>
    %66 = tpu.concatenate %63, %65 in 1 : vector<2x1x8x16xf32>, vector<2x1x8x16xf32> -> vector<2x2x8x16xf32>
    %67 = vector.shape_cast %66 : vector<2x2x8x16xf32> to vector<4x8x16xf32>
    %68 = arith.truncf %67 : vector<4x8x16xf32> to vector<4x8x16xbf16>
    %69 = vector.extract_strided_slice %54 {offsets = [0, 0, 64], sizes = [2, 8, 16], strides = [1, 1, 1]} : vector<2x8x128xf32> to vector<2x8x16xf32>
    %70 = vector.shape_cast %69 : vector<2x8x16xf32> to vector<2x1x8x16xf32>
    %71 = vector.extract_strided_slice %54 {offsets = [0, 0, 80], sizes = [2, 8, 16], strides = [1, 1, 1]} : vector<2x8x128xf32> to vector<2x8x16xf32>
    %72 = vector.shape_cast %71 : vector<2x8x16xf32> to vector<2x1x8x16xf32>
    %73 = tpu.concatenate %70, %72 in 1 : vector<2x1x8x16xf32>, vector<2x1x8x16xf32> -> vector<2x2x8x16xf32>
    %74 = vector.shape_cast %73 : vector<2x2x8x16xf32> to vector<4x8x16xf32>
    %75 = arith.truncf %74 : vector<4x8x16xf32> to vector<4x8x16xbf16>
    "tpu.trace_start"() <{level = 10 : i32, message = "bqd,bkd->bqk"}> : () -> ()
    %cst_24 = arith.constant dense<0.000000e+00> : vector<4x8x8xf32>
    %76 = tpu.matmul %61, %68, %cst_24 {dimension_numbers = #tpu.dot_dimension_numbers<[2], [2], [1], [1], [0, 0, 0, 1, 1, 1], [0], [0]>} : vector<4x8x16xbf16>, vector<4x8x16xbf16>, vector<4x8x8xf32> -> vector<4x8x8xf32>
    "tpu.trace_stop"() : () -> ()
    %cst_25 = arith.constant 2.500000e-01 : f32
    %77 = vector.broadcast %cst_25 : f32 to vector<4x8x8xf32>
    %78 = arith.mulf %76, %77 : vector<4x8x8xf32>
    %79 = vector.broadcast %21 : vector<4x1x8xf32> to vector<4x8x8xf32>
    %80 = arith.addf %78, %79 : vector<4x8x8xf32>
    %cst_26 = arith.constant dense<0xFF800000> : vector<4x8xf32>
    %81 = vector.multi_reduction <maximumf>, %80, %cst_26 [2] : vector<4x8x8xf32> to vector<4x8xf32>
    %82 = vector.shape_cast %81 : vector<4x8xf32> to vector<4x8x1xf32>
    %83 = vector.broadcast %82 : vector<4x8x1xf32> to vector<4x8x8xf32>
    %84 = arith.subf %80, %83 : vector<4x8x8xf32>
    %85 = math.exp %84 : vector<4x8x8xf32>
    %cst_27 = arith.constant dense<0.000000e+00> : vector<4x8xf32>
    %86 = vector.multi_reduction <add>, %85, %cst_27 [2] : vector<4x8x8xf32> to vector<4x8xf32>
    %87 = vector.shape_cast %86 : vector<4x8xf32> to vector<4x8x1xf32>
    %88 = tpu.reciprocal %87 {approx = true} : vector<4x8x1xf32> -> vector<4x8x1xf32>
    %89 = vector.broadcast %88 : vector<4x8x1xf32> to vector<4x8x8xf32>
    %90 = arith.mulf %85, %89 : vector<4x8x8xf32>
    %91 = arith.truncf %90 : vector<4x8x8xf32> to vector<4x8x8xbf16>
    "tpu.trace_start"() <{level = 10 : i32, message = "bqk,bkd->bqd"}> : () -> ()
    %cst_28 = arith.constant dense<0.000000e+00> : vector<4x8x16xf32>
    %92 = tpu.matmul %91, %75, %cst_28 {dimension_numbers = #tpu.dot_dimension_numbers<[2], [1], [1], [2], [0, 0, 0, 1, 1, 2], [0], [0]>} : vector<4x8x8xbf16>, vector<4x8x16xbf16>, vector<4x8x16xf32> -> vector<4x8x16xf32>
    "tpu.trace_stop"() : () -> ()
    %93 = vector.shape_cast %92 : vector<4x8x16xf32> to vector<2x2x8x16xf32>
    %94 = vector.extract_strided_slice %93 {offsets = [0, 0, 0, 0], sizes = [2, 1, 8, 16], strides = [1, 1, 1, 1]} : vector<2x2x8x16xf32> to vector<2x1x8x16xf32>
    %95 = vector.shape_cast %94 : vector<2x1x8x16xf32> to vector<2x8x16xf32>
    %96 = vector.shape_cast %95 : vector<2x8x16xf32> to vector<16x16xf32>
    %97 = vector.extract_strided_slice %93 {offsets = [0, 1, 0, 0], sizes = [2, 1, 8, 16], strides = [1, 1, 1, 1]} : vector<2x2x8x16xf32> to vector<2x1x8x16xf32>
    %98 = vector.shape_cast %97 : vector<2x1x8x16xf32> to vector<2x8x16xf32>
    %99 = vector.shape_cast %98 : vector<2x8x16xf32> to vector<16x16xf32>
    %100 = tpu.concatenate %96, %99 in 1 : vector<16x16xf32>, vector<16x16xf32> -> vector<16x32xf32>
    %c0_29 = arith.constant 0 : index
    %c0_30 = arith.constant 0 : index
    %c0_31 = arith.constant 0 : index
    %101 = vector.load %arg3[%c0_29, %c0_30, %c0_31] : memref<2x32x32xbf16, #tpu.memory_space<vmem>>, vector<1x32x32xbf16>
    %102 = vector.shape_cast %101 : vector<1x32x32xbf16> to vector<32x32xbf16>
    %103 = arith.truncf %100 : vector<16x32xf32> to vector<16x32xbf16>
    %cst_32 = arith.constant dense<0.000000e+00> : vector<16x32xf32>
    %104 = tpu.matmul %103, %102, %cst_32 {dimension_numbers = #tpu.dot_dimension_numbers<[1], [0], [0], [1], [0, 0, 1, 1], [], []>} : vector<16x32xbf16>, vector<32x32xbf16>, vector<16x32xf32> -> vector<16x32xf32>
    %105 = vector.extract_strided_slice %46 {offsets = [1, 0], sizes = [1, 32], strides = [1, 1]} : vector<8x128xf32> to vector<1x32xf32>
    %106 = vector.broadcast %105 : vector<1x32xf32> to vector<16x32xf32>
    %107 = arith.addf %104, %106 : vector<16x32xf32>
    %108 = arith.addf %44, %107 : vector<16x32xf32>
    %109 = vector.extract_strided_slice %46 {offsets = [4, 0], sizes = [1, 32], strides = [1, 1]} : vector<8x128xf32> to vector<1x32xf32>
    %110 = vector.extract_strided_slice %46 {offsets = [5, 0], sizes = [1, 32], strides = [1, 1]} : vector<8x128xf32> to vector<1x32xf32>
    %cst_33 = arith.constant dense<0.000000e+00> : vector<16xf32>
    %111 = vector.multi_reduction <add>, %108, %cst_33 [1] : vector<16x32xf32> to vector<16xf32>
    %112 = vector.shape_cast %111 : vector<16xf32> to vector<16x1xf32>
    %cst_34 = arith.constant 3.200000e+01 : f32
    %113 = vector.broadcast %cst_34 : f32 to vector<16x1xf32>
    %114 = arith.divf %112, %113 : vector<16x1xf32>
    %115 = vector.broadcast %114 : vector<16x1xf32> to vector<16x32xf32>
    %116 = arith.subf %108, %115 : vector<16x32xf32>
    %117 = arith.mulf %116, %116 : vector<16x32xf32>
    %cst_35 = arith.constant dense<0.000000e+00> : vector<16xf32>
    %118 = vector.multi_reduction <add>, %117, %cst_35 [1] : vector<16x32xf32> to vector<16xf32>
    %119 = vector.shape_cast %118 : vector<16xf32> to vector<16x1xf32>
    %cst_36 = arith.constant 3.200000e+01 : f32
    %120 = vector.broadcast %cst_36 : f32 to vector<16x1xf32>
    %121 = arith.divf %119, %120 : vector<16x1xf32>
    %122 = vector.broadcast %114 : vector<16x1xf32> to vector<16x32xf32>
    %123 = arith.subf %108, %122 : vector<16x32xf32>
    %cst_37 = arith.constant 9.99999996E-13 : f32
    %124 = vector.broadcast %cst_37 : f32 to vector<16x1xf32>
    %125 = arith.addf %121, %124 : vector<16x1xf32>
    %126 = math.rsqrt %125 : vector<16x1xf32>
    %127 = vector.broadcast %126 : vector<16x1xf32> to vector<16x32xf32>
    %128 = arith.mulf %123, %127 : vector<16x32xf32>
    %129 = vector.broadcast %109 : vector<1x32xf32> to vector<16x32xf32>
    %130 = arith.mulf %128, %129 : vector<16x32xf32>
    %131 = vector.broadcast %110 : vector<1x32xf32> to vector<16x32xf32>
    %132 = arith.addf %130, %131 : vector<16x32xf32>
    %c0_38 = arith.constant 0 : index
    %c0_39 = arith.constant 0 : index
    %c0_40 = arith.constant 0 : index
    %133 = vector.load %arg4[%c0_38, %c0_39, %c0_40] : memref<2x32x64xbf16, #tpu.memory_space<vmem>>, vector<1x32x64xbf16>
    %134 = vector.shape_cast %133 : vector<1x32x64xbf16> to vector<32x64xbf16>
    %135 = arith.truncf %132 : vector<16x32xf32> to vector<16x32xbf16>
    %cst_41 = arith.constant dense<0.000000e+00> : vector<16x64xf32>
    %136 = tpu.matmul %135, %134, %cst_41 {dimension_numbers = #tpu.dot_dimension_numbers<[1], [0], [0], [1], [0, 0, 1, 1], [], []>} : vector<16x32xbf16>, vector<32x64xbf16>, vector<16x64xf32> -> vector<16x64xf32>
    %137 = vector.extract_strided_slice %46 {offsets = [2, 0], sizes = [1, 64], strides = [1, 1]} : vector<8x128xf32> to vector<1x64xf32>
    %138 = vector.broadcast %137 : vector<1x64xf32> to vector<16x64xf32>
    %139 = arith.addf %136, %138 : vector<16x64xf32>
    %cst_42 = arith.constant 5.000000e-01 : f32
    %140 = vector.broadcast %cst_42 : f32 to vector<16x64xf32>
    %141 = arith.mulf %140, %139 : vector<16x64xf32>
    %cst_43 = arith.constant 0.707106769 : f32
    %142 = vector.broadcast %cst_43 : f32 to vector<16x64xf32>
    %143 = arith.mulf %139, %142 : vector<16x64xf32>
    %144 = math.absf %143 : vector<16x64xf32>
    %cst_44 = arith.constant 0.327591091 : f32
    %145 = vector.broadcast %cst_44 : f32 to vector<16x64xf32>
    %146 = arith.mulf %145, %144 : vector<16x64xf32>
    %cst_45 = arith.constant 1.000000e+00 : f32
    %147 = vector.broadcast %cst_45 : f32 to vector<16x64xf32>
    %148 = arith.addf %147, %146 : vector<16x64xf32>
    %149 = tpu.reciprocal %148 {approx = true} : vector<16x64xf32> -> vector<16x64xf32>
    %cst_46 = arith.constant 1.06140542 : f32
    %150 = vector.broadcast %cst_46 : f32 to vector<16x64xf32>
    %151 = arith.mulf %150, %149 : vector<16x64xf32>
    %cst_47 = arith.constant -1.45315206 : f32
    %152 = vector.broadcast %cst_47 : f32 to vector<16x64xf32>
    %153 = arith.addf %151, %152 : vector<16x64xf32>
    %154 = arith.mulf %153, %149 : vector<16x64xf32>
    %cst_48 = arith.constant 1.42141378 : f32
    %155 = vector.broadcast %cst_48 : f32 to vector<16x64xf32>
    %156 = arith.addf %154, %155 : vector<16x64xf32>
    %157 = arith.mulf %156, %149 : vector<16x64xf32>
    %cst_49 = arith.constant -0.284496725 : f32
    %158 = vector.broadcast %cst_49 : f32 to vector<16x64xf32>
    %159 = arith.addf %157, %158 : vector<16x64xf32>
    %160 = arith.mulf %159, %149 : vector<16x64xf32>
    %cst_50 = arith.constant 0.254829586 : f32
    %161 = vector.broadcast %cst_50 : f32 to vector<16x64xf32>
    %162 = arith.addf %160, %161 : vector<16x64xf32>
    %163 = arith.mulf %162, %149 : vector<16x64xf32>
    %cst_51 = arith.constant 0.000000e+00 : f32
    %164 = vector.broadcast %cst_51 : f32 to vector<16x64xf32>
    %165 = arith.subf %164, %144 : vector<16x64xf32>
    %166 = arith.mulf %165, %144 : vector<16x64xf32>
    %167 = math.exp %166 : vector<16x64xf32>
    %168 = arith.mulf %163, %167 : vector<16x64xf32>
    %cst_52 = arith.constant 1.000000e+00 : f32
    %169 = vector.broadcast %cst_52 : f32 to vector<16x64xf32>
    %170 = arith.subf %169, %168 : vector<16x64xf32>
    %cst_53 = arith.constant 0.000000e+00 : f32
    %171 = vector.broadcast %cst_53 : f32 to vector<16x64xf32>
    %172 = arith.cmpf oge, %143, %171 : vector<16x64xf32>
    %cst_54 = arith.constant 0.000000e+00 : f32
    %173 = vector.broadcast %cst_54 : f32 to vector<16x64xf32>
    %174 = arith.subf %173, %170 : vector<16x64xf32>
    %175 = arith.select %172, %170, %174 : vector<16x64xi1>, vector<16x64xf32>
    %cst_55 = arith.constant 1.000000e+00 : f32
    %176 = vector.broadcast %cst_55 : f32 to vector<16x64xf32>
    %177 = arith.addf %176, %175 : vector<16x64xf32>
    %178 = arith.mulf %141, %177 : vector<16x64xf32>
    %c0_56 = arith.constant 0 : index
    %c0_57 = arith.constant 0 : index
    %c0_58 = arith.constant 0 : index
    %179 = vector.load %arg5[%c0_56, %c0_57, %c0_58] : memref<2x64x32xbf16, #tpu.memory_space<vmem>>, vector<1x64x32xbf16>
    %180 = vector.shape_cast %179 : vector<1x64x32xbf16> to vector<64x32xbf16>
    %181 = arith.truncf %178 : vector<16x64xf32> to vector<16x64xbf16>
    %cst_59 = arith.constant dense<0.000000e+00> : vector<16x32xf32>
    %182 = tpu.matmul %181, %180, %cst_59 {dimension_numbers = #tpu.dot_dimension_numbers<[1], [0], [0], [1], [0, 0, 1, 1], [], []>} : vector<16x64xbf16>, vector<64x32xbf16>, vector<16x32xf32> -> vector<16x32xf32>
    %183 = vector.extract_strided_slice %46 {offsets = [3, 0], sizes = [1, 32], strides = [1, 1]} : vector<8x128xf32> to vector<1x32xf32>
    %184 = vector.broadcast %183 : vector<1x32xf32> to vector<16x32xf32>
    %185 = arith.addf %182, %184 : vector<16x32xf32>
    %186 = arith.addf %132, %185 : vector<16x32xf32>
    %187 = vector.extract_strided_slice %46 {offsets = [6, 0], sizes = [1, 32], strides = [1, 1]} : vector<8x128xf32> to vector<1x32xf32>
    %188 = vector.extract_strided_slice %46 {offsets = [7, 0], sizes = [1, 32], strides = [1, 1]} : vector<8x128xf32> to vector<1x32xf32>
    %cst_60 = arith.constant dense<0.000000e+00> : vector<16xf32>
    %189 = vector.multi_reduction <add>, %186, %cst_60 [1] : vector<16x32xf32> to vector<16xf32>
    %190 = vector.shape_cast %189 : vector<16xf32> to vector<16x1xf32>
    %cst_61 = arith.constant 3.200000e+01 : f32
    %191 = vector.broadcast %cst_61 : f32 to vector<16x1xf32>
    %192 = arith.divf %190, %191 : vector<16x1xf32>
    %193 = vector.broadcast %192 : vector<16x1xf32> to vector<16x32xf32>
    %194 = arith.subf %186, %193 : vector<16x32xf32>
    %195 = arith.mulf %194, %194 : vector<16x32xf32>
    %cst_62 = arith.constant dense<0.000000e+00> : vector<16xf32>
    %196 = vector.multi_reduction <add>, %195, %cst_62 [1] : vector<16x32xf32> to vector<16xf32>
    %197 = vector.shape_cast %196 : vector<16xf32> to vector<16x1xf32>
    %cst_63 = arith.constant 3.200000e+01 : f32
    %198 = vector.broadcast %cst_63 : f32 to vector<16x1xf32>
    %199 = arith.divf %197, %198 : vector<16x1xf32>
    %200 = vector.broadcast %192 : vector<16x1xf32> to vector<16x32xf32>
    %201 = arith.subf %186, %200 : vector<16x32xf32>
    %cst_64 = arith.constant 9.99999996E-13 : f32
    %202 = vector.broadcast %cst_64 : f32 to vector<16x1xf32>
    %203 = arith.addf %199, %202 : vector<16x1xf32>
    %204 = math.rsqrt %203 : vector<16x1xf32>
    %205 = vector.broadcast %204 : vector<16x1xf32> to vector<16x32xf32>
    %206 = arith.mulf %201, %205 : vector<16x32xf32>
    %207 = vector.broadcast %187 : vector<1x32xf32> to vector<16x32xf32>
    %208 = arith.mulf %206, %207 : vector<16x32xf32>
    %209 = vector.broadcast %188 : vector<1x32xf32> to vector<16x32xf32>
    %210 = arith.addf %208, %209 : vector<16x32xf32>
    %c1_65 = arith.constant 1 : index
    %c0_66 = arith.constant 0 : index
    %c0_67 = arith.constant 0 : index
    %211 = vector.load %arg6[%c1_65, %c0_66, %c0_67] : memref<2x8x128xf32, #tpu.memory_space<vmem>>, vector<1x8x128xf32>
    %212 = vector.shape_cast %211 : vector<1x8x128xf32> to vector<8x128xf32>
    %c1_68 = arith.constant 1 : index
    %c0_69 = arith.constant 0 : index
    %c0_70 = arith.constant 0 : index
    %213 = vector.load %arg2[%c1_68, %c0_69, %c0_70] : memref<2x32x128xbf16, #tpu.memory_space<vmem>>, vector<1x32x128xbf16>
    %214 = vector.shape_cast %213 : vector<1x32x128xbf16> to vector<32x128xbf16>
    %215 = arith.truncf %210 : vector<16x32xf32> to vector<16x32xbf16>
    %cst_71 = arith.constant dense<0.000000e+00> : vector<16x128xf32>
    %216 = tpu.matmul %215, %214, %cst_71 {dimension_numbers = #tpu.dot_dimension_numbers<[1], [0], [0], [1], [0, 0, 1, 1], [], []>} : vector<16x32xbf16>, vector<32x128xbf16>, vector<16x128xf32> -> vector<16x128xf32>
    %217 = vector.extract_strided_slice %212 {offsets = [0, 0], sizes = [1, 128], strides = [1, 1]} : vector<8x128xf32> to vector<1x128xf32>
    %218 = vector.broadcast %217 : vector<1x128xf32> to vector<16x128xf32>
    %219 = arith.addf %216, %218 : vector<16x128xf32>
    %220 = vector.shape_cast %219 : vector<16x128xf32> to vector<2x8x128xf32>
    %221 = vector.extract_strided_slice %220 {offsets = [0, 0, 0], sizes = [2, 8, 16], strides = [1, 1, 1]} : vector<2x8x128xf32> to vector<2x8x16xf32>
    %222 = vector.shape_cast %221 : vector<2x8x16xf32> to vector<2x1x8x16xf32>
    %223 = vector.extract_strided_slice %220 {offsets = [0, 0, 16], sizes = [2, 8, 16], strides = [1, 1, 1]} : vector<2x8x128xf32> to vector<2x8x16xf32>
    %224 = vector.shape_cast %223 : vector<2x8x16xf32> to vector<2x1x8x16xf32>
    %225 = tpu.concatenate %222, %224 in 1 : vector<2x1x8x16xf32>, vector<2x1x8x16xf32> -> vector<2x2x8x16xf32>
    %226 = vector.shape_cast %225 : vector<2x2x8x16xf32> to vector<4x8x16xf32>
    %227 = arith.truncf %226 : vector<4x8x16xf32> to vector<4x8x16xbf16>
    %228 = vector.extract_strided_slice %220 {offsets = [0, 0, 32], sizes = [2, 8, 16], strides = [1, 1, 1]} : vector<2x8x128xf32> to vector<2x8x16xf32>
    %229 = vector.shape_cast %228 : vector<2x8x16xf32> to vector<2x1x8x16xf32>
    %230 = vector.extract_strided_slice %220 {offsets = [0, 0, 48], sizes = [2, 8, 16], strides = [1, 1, 1]} : vector<2x8x128xf32> to vector<2x8x16xf32>
    %231 = vector.shape_cast %230 : vector<2x8x16xf32> to vector<2x1x8x16xf32>
    %232 = tpu.concatenate %229, %231 in 1 : vector<2x1x8x16xf32>, vector<2x1x8x16xf32> -> vector<2x2x8x16xf32>
    %233 = vector.shape_cast %232 : vector<2x2x8x16xf32> to vector<4x8x16xf32>
    %234 = arith.truncf %233 : vector<4x8x16xf32> to vector<4x8x16xbf16>
    %235 = vector.extract_strided_slice %220 {offsets = [0, 0, 64], sizes = [2, 8, 16], strides = [1, 1, 1]} : vector<2x8x128xf32> to vector<2x8x16xf32>
    %236 = vector.shape_cast %235 : vector<2x8x16xf32> to vector<2x1x8x16xf32>
    %237 = vector.extract_strided_slice %220 {offsets = [0, 0, 80], sizes = [2, 8, 16], strides = [1, 1, 1]} : vector<2x8x128xf32> to vector<2x8x16xf32>
    %238 = vector.shape_cast %237 : vector<2x8x16xf32> to vector<2x1x8x16xf32>
    %239 = tpu.concatenate %236, %238 in 1 : vector<2x1x8x16xf32>, vector<2x1x8x16xf32> -> vector<2x2x8x16xf32>
    %240 = vector.shape_cast %239 : vector<2x2x8x16xf32> to vector<4x8x16xf32>
    %241 = arith.truncf %240 : vector<4x8x16xf32> to vector<4x8x16xbf16>
    "tpu.trace_start"() <{level = 10 : i32, message = "bqd,bkd->bqk"}> : () -> ()
    %cst_72 = arith.constant dense<0.000000e+00> : vector<4x8x8xf32>
    %242 = tpu.matmul %227, %234, %cst_72 {dimension_numbers = #tpu.dot_dimension_numbers<[2], [2], [1], [1], [0, 0, 0, 1, 1, 1], [0], [0]>} : vector<4x8x16xbf16>, vector<4x8x16xbf16>, vector<4x8x8xf32> -> vector<4x8x8xf32>
    "tpu.trace_stop"() : () -> ()
    %cst_73 = arith.constant 2.500000e-01 : f32
    %243 = vector.broadcast %cst_73 : f32 to vector<4x8x8xf32>
    %244 = arith.mulf %242, %243 : vector<4x8x8xf32>
    %245 = vector.broadcast %21 : vector<4x1x8xf32> to vector<4x8x8xf32>
    %246 = arith.addf %244, %245 : vector<4x8x8xf32>
    %cst_74 = arith.constant dense<0xFF800000> : vector<4x8xf32>
    %247 = vector.multi_reduction <maximumf>, %246, %cst_74 [2] : vector<4x8x8xf32> to vector<4x8xf32>
    %248 = vector.shape_cast %247 : vector<4x8xf32> to vector<4x8x1xf32>
    %249 = vector.broadcast %248 : vector<4x8x1xf32> to vector<4x8x8xf32>
    %250 = arith.subf %246, %249 : vector<4x8x8xf32>
    %251 = math.exp %250 : vector<4x8x8xf32>
    %cst_75 = arith.constant dense<0.000000e+00> : vector<4x8xf32>
    %252 = vector.multi_reduction <add>, %251, %cst_75 [2] : vector<4x8x8xf32> to vector<4x8xf32>
    %253 = vector.shape_cast %252 : vector<4x8xf32> to vector<4x8x1xf32>
    %254 = tpu.reciprocal %253 {approx = true} : vector<4x8x1xf32> -> vector<4x8x1xf32>
    %255 = vector.broadcast %254 : vector<4x8x1xf32> to vector<4x8x8xf32>
    %256 = arith.mulf %251, %255 : vector<4x8x8xf32>
    %257 = arith.truncf %256 : vector<4x8x8xf32> to vector<4x8x8xbf16>
    "tpu.trace_start"() <{level = 10 : i32, message = "bqk,bkd->bqd"}> : () -> ()
    %cst_76 = arith.constant dense<0.000000e+00> : vector<4x8x16xf32>
    %258 = tpu.matmul %257, %241, %cst_76 {dimension_numbers = #tpu.dot_dimension_numbers<[2], [1], [1], [2], [0, 0, 0, 1, 1, 2], [0], [0]>} : vector<4x8x8xbf16>, vector<4x8x16xbf16>, vector<4x8x16xf32> -> vector<4x8x16xf32>
    "tpu.trace_stop"() : () -> ()
    %259 = vector.shape_cast %258 : vector<4x8x16xf32> to vector<2x2x8x16xf32>
    %260 = vector.extract_strided_slice %259 {offsets = [0, 0, 0, 0], sizes = [2, 1, 8, 16], strides = [1, 1, 1, 1]} : vector<2x2x8x16xf32> to vector<2x1x8x16xf32>
    %261 = vector.shape_cast %260 : vector<2x1x8x16xf32> to vector<2x8x16xf32>
    %262 = vector.shape_cast %261 : vector<2x8x16xf32> to vector<16x16xf32>
    %263 = vector.extract_strided_slice %259 {offsets = [0, 1, 0, 0], sizes = [2, 1, 8, 16], strides = [1, 1, 1, 1]} : vector<2x2x8x16xf32> to vector<2x1x8x16xf32>
    %264 = vector.shape_cast %263 : vector<2x1x8x16xf32> to vector<2x8x16xf32>
    %265 = vector.shape_cast %264 : vector<2x8x16xf32> to vector<16x16xf32>
    %266 = tpu.concatenate %262, %265 in 1 : vector<16x16xf32>, vector<16x16xf32> -> vector<16x32xf32>
    %c1_77 = arith.constant 1 : index
    %c0_78 = arith.constant 0 : index
    %c0_79 = arith.constant 0 : index
    %267 = vector.load %arg3[%c1_77, %c0_78, %c0_79] : memref<2x32x32xbf16, #tpu.memory_space<vmem>>, vector<1x32x32xbf16>
    %268 = vector.shape_cast %267 : vector<1x32x32xbf16> to vector<32x32xbf16>
    %269 = arith.truncf %266 : vector<16x32xf32> to vector<16x32xbf16>
    %cst_80 = arith.constant dense<0.000000e+00> : vector<16x32xf32>
    %270 = tpu.matmul %269, %268, %cst_80 {dimension_numbers = #tpu.dot_dimension_numbers<[1], [0], [0], [1], [0, 0, 1, 1], [], []>} : vector<16x32xbf16>, vector<32x32xbf16>, vector<16x32xf32> -> vector<16x32xf32>
    %271 = vector.extract_strided_slice %212 {offsets = [1, 0], sizes = [1, 32], strides = [1, 1]} : vector<8x128xf32> to vector<1x32xf32>
    %272 = vector.broadcast %271 : vector<1x32xf32> to vector<16x32xf32>
    %273 = arith.addf %270, %272 : vector<16x32xf32>
    %274 = arith.addf %210, %273 : vector<16x32xf32>
    %275 = vector.extract_strided_slice %212 {offsets = [4, 0], sizes = [1, 32], strides = [1, 1]} : vector<8x128xf32> to vector<1x32xf32>
    %276 = vector.extract_strided_slice %212 {offsets = [5, 0], sizes = [1, 32], strides = [1, 1]} : vector<8x128xf32> to vector<1x32xf32>
    %cst_81 = arith.constant dense<0.000000e+00> : vector<16xf32>
    %277 = vector.multi_reduction <add>, %274, %cst_81 [1] : vector<16x32xf32> to vector<16xf32>
    %278 = vector.shape_cast %277 : vector<16xf32> to vector<16x1xf32>
    %cst_82 = arith.constant 3.200000e+01 : f32
    %279 = vector.broadcast %cst_82 : f32 to vector<16x1xf32>
    %280 = arith.divf %278, %279 : vector<16x1xf32>
    %281 = vector.broadcast %280 : vector<16x1xf32> to vector<16x32xf32>
    %282 = arith.subf %274, %281 : vector<16x32xf32>
    %283 = arith.mulf %282, %282 : vector<16x32xf32>
    %cst_83 = arith.constant dense<0.000000e+00> : vector<16xf32>
    %284 = vector.multi_reduction <add>, %283, %cst_83 [1] : vector<16x32xf32> to vector<16xf32>
    %285 = vector.shape_cast %284 : vector<16xf32> to vector<16x1xf32>
    %cst_84 = arith.constant 3.200000e+01 : f32
    %286 = vector.broadcast %cst_84 : f32 to vector<16x1xf32>
    %287 = arith.divf %285, %286 : vector<16x1xf32>
    %288 = vector.broadcast %280 : vector<16x1xf32> to vector<16x32xf32>
    %289 = arith.subf %274, %288 : vector<16x32xf32>
    %cst_85 = arith.constant 9.99999996E-13 : f32
    %290 = vector.broadcast %cst_85 : f32 to vector<16x1xf32>
    %291 = arith.addf %287, %290 : vector<16x1xf32>
    %292 = math.rsqrt %291 : vector<16x1xf32>
    %293 = vector.broadcast %292 : vector<16x1xf32> to vector<16x32xf32>
    %294 = arith.mulf %289, %293 : vector<16x32xf32>
    %295 = vector.broadcast %275 : vector<1x32xf32> to vector<16x32xf32>
    %296 = arith.mulf %294, %295 : vector<16x32xf32>
    %297 = vector.broadcast %276 : vector<1x32xf32> to vector<16x32xf32>
    %298 = arith.addf %296, %297 : vector<16x32xf32>
    %c1_86 = arith.constant 1 : index
    %c0_87 = arith.constant 0 : index
    %c0_88 = arith.constant 0 : index
    %299 = vector.load %arg4[%c1_86, %c0_87, %c0_88] : memref<2x32x64xbf16, #tpu.memory_space<vmem>>, vector<1x32x64xbf16>
    %300 = vector.shape_cast %299 : vector<1x32x64xbf16> to vector<32x64xbf16>
    %301 = arith.truncf %298 : vector<16x32xf32> to vector<16x32xbf16>
    %cst_89 = arith.constant dense<0.000000e+00> : vector<16x64xf32>
    %302 = tpu.matmul %301, %300, %cst_89 {dimension_numbers = #tpu.dot_dimension_numbers<[1], [0], [0], [1], [0, 0, 1, 1], [], []>} : vector<16x32xbf16>, vector<32x64xbf16>, vector<16x64xf32> -> vector<16x64xf32>
    %303 = vector.extract_strided_slice %212 {offsets = [2, 0], sizes = [1, 64], strides = [1, 1]} : vector<8x128xf32> to vector<1x64xf32>
    %304 = vector.broadcast %303 : vector<1x64xf32> to vector<16x64xf32>
    %305 = arith.addf %302, %304 : vector<16x64xf32>
    %cst_90 = arith.constant 5.000000e-01 : f32
    %306 = vector.broadcast %cst_90 : f32 to vector<16x64xf32>
    %307 = arith.mulf %306, %305 : vector<16x64xf32>
    %cst_91 = arith.constant 0.707106769 : f32
    %308 = vector.broadcast %cst_91 : f32 to vector<16x64xf32>
    %309 = arith.mulf %305, %308 : vector<16x64xf32>
    %310 = math.absf %309 : vector<16x64xf32>
    %cst_92 = arith.constant 0.327591091 : f32
    %311 = vector.broadcast %cst_92 : f32 to vector<16x64xf32>
    %312 = arith.mulf %311, %310 : vector<16x64xf32>
    %cst_93 = arith.constant 1.000000e+00 : f32
    %313 = vector.broadcast %cst_93 : f32 to vector<16x64xf32>
    %314 = arith.addf %313, %312 : vector<16x64xf32>
    %315 = tpu.reciprocal %314 {approx = true} : vector<16x64xf32> -> vector<16x64xf32>
    %cst_94 = arith.constant 1.06140542 : f32
    %316 = vector.broadcast %cst_94 : f32 to vector<16x64xf32>
    %317 = arith.mulf %316, %315 : vector<16x64xf32>
    %cst_95 = arith.constant -1.45315206 : f32
    %318 = vector.broadcast %cst_95 : f32 to vector<16x64xf32>
    %319 = arith.addf %317, %318 : vector<16x64xf32>
    %320 = arith.mulf %319, %315 : vector<16x64xf32>
    %cst_96 = arith.constant 1.42141378 : f32
    %321 = vector.broadcast %cst_96 : f32 to vector<16x64xf32>
    %322 = arith.addf %320, %321 : vector<16x64xf32>
    %323 = arith.mulf %322, %315 : vector<16x64xf32>
    %cst_97 = arith.constant -0.284496725 : f32
    %324 = vector.broadcast %cst_97 : f32 to vector<16x64xf32>
    %325 = arith.addf %323, %324 : vector<16x64xf32>
    %326 = arith.mulf %325, %315 : vector<16x64xf32>
    %cst_98 = arith.constant 0.254829586 : f32
    %327 = vector.broadcast %cst_98 : f32 to vector<16x64xf32>
    %328 = arith.addf %326, %327 : vector<16x64xf32>
    %329 = arith.mulf %328, %315 : vector<16x64xf32>
    %cst_99 = arith.constant 0.000000e+00 : f32
    %330 = vector.broadcast %cst_99 : f32 to vector<16x64xf32>
    %331 = arith.subf %330, %310 : vector<16x64xf32>
    %332 = arith.mulf %331, %310 : vector<16x64xf32>
    %333 = math.exp %332 : vector<16x64xf32>
    %334 = arith.mulf %329, %333 : vector<16x64xf32>
    %cst_100 = arith.constant 1.000000e+00 : f32
    %335 = vector.broadcast %cst_100 : f32 to vector<16x64xf32>
    %336 = arith.subf %335, %334 : vector<16x64xf32>
    %cst_101 = arith.constant 0.000000e+00 : f32
    %337 = vector.broadcast %cst_101 : f32 to vector<16x64xf32>
    %338 = arith.cmpf oge, %309, %337 : vector<16x64xf32>
    %cst_102 = arith.constant 0.000000e+00 : f32
    %339 = vector.broadcast %cst_102 : f32 to vector<16x64xf32>
    %340 = arith.subf %339, %336 : vector<16x64xf32>
    %341 = arith.select %338, %336, %340 : vector<16x64xi1>, vector<16x64xf32>
    %cst_103 = arith.constant 1.000000e+00 : f32
    %342 = vector.broadcast %cst_103 : f32 to vector<16x64xf32>
    %343 = arith.addf %342, %341 : vector<16x64xf32>
    %344 = arith.mulf %307, %343 : vector<16x64xf32>
    %c1_104 = arith.constant 1 : index
    %c0_105 = arith.constant 0 : index
    %c0_106 = arith.constant 0 : index
    %345 = vector.load %arg5[%c1_104, %c0_105, %c0_106] : memref<2x64x32xbf16, #tpu.memory_space<vmem>>, vector<1x64x32xbf16>
    %346 = vector.shape_cast %345 : vector<1x64x32xbf16> to vector<64x32xbf16>
    %347 = arith.truncf %344 : vector<16x64xf32> to vector<16x64xbf16>
    %cst_107 = arith.constant dense<0.000000e+00> : vector<16x32xf32>
    %348 = tpu.matmul %347, %346, %cst_107 {dimension_numbers = #tpu.dot_dimension_numbers<[1], [0], [0], [1], [0, 0, 1, 1], [], []>} : vector<16x64xbf16>, vector<64x32xbf16>, vector<16x32xf32> -> vector<16x32xf32>
    %349 = vector.extract_strided_slice %212 {offsets = [3, 0], sizes = [1, 32], strides = [1, 1]} : vector<8x128xf32> to vector<1x32xf32>
    %350 = vector.broadcast %349 : vector<1x32xf32> to vector<16x32xf32>
    %351 = arith.addf %348, %350 : vector<16x32xf32>
    %352 = arith.addf %298, %351 : vector<16x32xf32>
    %353 = vector.extract_strided_slice %212 {offsets = [6, 0], sizes = [1, 32], strides = [1, 1]} : vector<8x128xf32> to vector<1x32xf32>
    %354 = vector.extract_strided_slice %212 {offsets = [7, 0], sizes = [1, 32], strides = [1, 1]} : vector<8x128xf32> to vector<1x32xf32>
    %cst_108 = arith.constant dense<0.000000e+00> : vector<16xf32>
    %355 = vector.multi_reduction <add>, %352, %cst_108 [1] : vector<16x32xf32> to vector<16xf32>
    %356 = vector.shape_cast %355 : vector<16xf32> to vector<16x1xf32>
    %cst_109 = arith.constant 3.200000e+01 : f32
    %357 = vector.broadcast %cst_109 : f32 to vector<16x1xf32>
    %358 = arith.divf %356, %357 : vector<16x1xf32>
    %359 = vector.broadcast %358 : vector<16x1xf32> to vector<16x32xf32>
    %360 = arith.subf %352, %359 : vector<16x32xf32>
    %361 = arith.mulf %360, %360 : vector<16x32xf32>
    %cst_110 = arith.constant dense<0.000000e+00> : vector<16xf32>
    %362 = vector.multi_reduction <add>, %361, %cst_110 [1] : vector<16x32xf32> to vector<16xf32>
    %363 = vector.shape_cast %362 : vector<16xf32> to vector<16x1xf32>
    %cst_111 = arith.constant 3.200000e+01 : f32
    %364 = vector.broadcast %cst_111 : f32 to vector<16x1xf32>
    %365 = arith.divf %363, %364 : vector<16x1xf32>
    %366 = vector.broadcast %358 : vector<16x1xf32> to vector<16x32xf32>
    %367 = arith.subf %352, %366 : vector<16x32xf32>
    %cst_112 = arith.constant 9.99999996E-13 : f32
    %368 = vector.broadcast %cst_112 : f32 to vector<16x1xf32>
    %369 = arith.addf %365, %368 : vector<16x1xf32>
    %370 = math.rsqrt %369 : vector<16x1xf32>
    %371 = vector.broadcast %370 : vector<16x1xf32> to vector<16x32xf32>
    %372 = arith.mulf %367, %371 : vector<16x32xf32>
    %373 = vector.broadcast %353 : vector<1x32xf32> to vector<16x32xf32>
    %374 = arith.mulf %372, %373 : vector<16x32xf32>
    %375 = vector.broadcast %354 : vector<1x32xf32> to vector<16x32xf32>
    %376 = arith.addf %374, %375 : vector<16x32xf32>
    %377 = arith.truncf %376 : vector<16x32xf32> to vector<16x32xbf16>
    %378 = arith.truncf %4 : vector<32x128xf32> to vector<32x128xbf16>
    %cst_113 = arith.constant dense<0.000000e+00> : vector<16x128xf32>
    %379 = tpu.matmul %377, %378, %cst_113 {dimension_numbers = #tpu.dot_dimension_numbers<[1], [0], [0], [1], [0, 0, 1, 1], [], []>} : vector<16x32xbf16>, vector<32x128xbf16>, vector<16x128xf32> -> vector<16x128xf32>
    %380 = vector.broadcast %5 : vector<1x128xf32> to vector<16x128xf32>
    %381 = arith.addf %379, %380 : vector<16x128xf32>
    %c0_114 = arith.constant 0 : index
    %c0_115 = arith.constant 0 : index
    %382 = vector.load %arg10[%c0_114, %c0_115] : memref<16x128xf32, #tpu.memory_space<vmem>>, vector<16x128xf32>
    tpu.vector_store %arg10[%c0_114, %c0_115], %381 {strides = array<i32>} : memref<16x128xf32, #tpu.memory_space<vmem>>, vector<16x128xf32>,
    %383 = vector.shape_cast %381 : vector<16x128xf32> to vector<2x8x128xf32>
    %384 = vector.shape_cast %2 : vector<2x8xi32> to vector<2x8x1xi32>
    %385 = tpu.iota {dimensions = array<i32: 2>} : vector<2x8x128xi32>
    %386 = vector.broadcast %384 : vector<2x8x1xi32> to vector<2x8x128xi32>
    %387 = arith.cmpi eq, %386, %385 : vector<2x8x128xi32>
    %388 = arith.extui %387 : vector<2x8x128xi1> to vector<2x8x128xi32>
    %389 = arith.sitofp %388 : vector<2x8x128xi32> to vector<2x8x128xf32>
    %390 = arith.mulf %383, %389 : vector<2x8x128xf32>
    %cst_116 = arith.constant dense<0.000000e+00> : vector<2x8xf32>
    %391 = vector.multi_reduction <add>, %390, %cst_116 [2] : vector<2x8x128xf32> to vector<2x8xf32>
    %392 = vector.shape_cast %389 : vector<2x8x128xf32> to vector<16x128xf32>
    %cst_117 = arith.constant dense<0.000000e+00> : vector<16x128xf32>
    %393 = tpu.matmul %392, %11, %cst_117 {dimension_numbers = #tpu.dot_dimension_numbers<[1], [0], [0], [1], [0, 0, 1, 1], [], []>} : vector<16x128xf32>, vector<128x128xf32>, vector<16x128xf32> -> vector<16x128xf32>
    %394 = vector.shape_cast %393 : vector<16x128xf32> to vector<2x8x128xf32>
    %395 = vector.extract_strided_slice %394 {offsets = [0, 0, 0], sizes = [2, 7, 128], strides = [1, 1, 1]} : vector<2x8x128xf32> to vector<2x7x128xf32>
    %396 = vector.extract_strided_slice %389 {offsets = [0, 1, 0], sizes = [2, 7, 128], strides = [1, 1, 1]} : vector<2x8x128xf32> to vector<2x7x128xf32>
    %397 = arith.mulf %395, %396 : vector<2x7x128xf32>
    %cst_118 = arith.constant dense<0.000000e+00> : vector<2x7xf32>
    %398 = vector.multi_reduction <add>, %397, %cst_118 [2] : vector<2x7x128xf32> to vector<2x7xf32>
    %399 = vector.extract_strided_slice %389 {offsets = [0, 0, 0], sizes = [2, 1, 128], strides = [1, 1, 1]} : vector<2x8x128xf32> to vector<2x1x128xf32>
    %400 = vector.shape_cast %399 : vector<2x1x128xf32> to vector<2x128xf32>
    %401 = vector.broadcast %8 : vector<1x128xf32> to vector<2x128xf32>
    %402 = arith.mulf %401, %400 : vector<2x128xf32>
    %cst_119 = arith.constant dense<0.000000e+00> : vector<2xf32>
    %403 = vector.multi_reduction <add>, %402, %cst_119 [1] : vector<2x128xf32> to vector<2xf32>
    %404 = vector.shape_cast %403 : vector<2xf32> to vector<2x1xf32>
    %405 = vector.extract_strided_slice %391 {offsets = [0, 0], sizes = [2, 1], strides = [1, 1]} : vector<2x8xf32> to vector<2x1xf32>
    %406 = arith.addf %404, %405 : vector<2x1xf32>
    %407 = vector.extract_strided_slice %391 {offsets = [0, 1], sizes = [2, 7], strides = [1, 1]} : vector<2x8xf32> to vector<2x7xf32>
    %408 = arith.addf %398, %407 : vector<2x7xf32>
    %409 = vector.extract_strided_slice %0 {offsets = [0, 1], sizes = [2, 7], strides = [1, 1]} : vector<2x8xf32> to vector<2x7xf32>
    %410 = arith.mulf %408, %409 : vector<2x7xf32>
    %cst_120 = arith.constant dense<0.000000e+00> : vector<2xf32>
    %411 = vector.multi_reduction <add>, %410, %cst_120 [1] : vector<2x7xf32> to vector<2xf32>
    %412 = vector.shape_cast %411 : vector<2xf32> to vector<2x1xf32>
    %413 = arith.addf %406, %412 : vector<2x1xf32>
    %cst_121 = arith.constant dense<0.000000e+00> : vector<2xf32>
    %414 = vector.multi_reduction <add>, %0, %cst_121 [1] : vector<2x8xf32> to vector<2xf32>
    %415 = vector.shape_cast %414 : vector<2xf32> to vector<2x1xf32>
    %416 = arith.fptosi %415 : vector<2x1xf32> to vector<2x1xi32>
    %417 = tpu.iota {dimensions = array<i32: 1>} : vector<2x8xi32>
    %c1_i32 = arith.constant 1 : i32
    %418 = vector.broadcast %c1_i32 : i32 to vector<2x1xi32>
    %419 = arith.subi %416, %418 : vector<2x1xi32>
    %420 = vector.broadcast %419 : vector<2x1xi32> to vector<2x8xi32>
    %421 = arith.cmpi eq, %417, %420 : vector<2x8xi32>
    %422 = arith.extui %421 : vector<2x8xi1> to vector<2x8xi32>
    %423 = arith.sitofp %422 : vector<2x8xi32> to vector<2x8xf32>
    %424 = vector.shape_cast %9 : vector<1x128xf32> to vector<1x1x128xf32>
    %425 = vector.broadcast %424 : vector<1x1x128xf32> to vector<2x8x128xf32>
    %426 = arith.mulf %389, %425 : vector<2x8x128xf32>
    %cst_122 = arith.constant dense<0.000000e+00> : vector<2x8xf32>
    %427 = vector.multi_reduction <add>, %426, %cst_122 [2] : vector<2x8x128xf32> to vector<2x8xf32>
    %428 = arith.mulf %427, %423 : vector<2x8xf32>
    %cst_123 = arith.constant dense<0.000000e+00> : vector<2xf32>
    %429 = vector.multi_reduction <add>, %428, %cst_123 [1] : vector<2x8xf32> to vector<2xf32>
    %430 = vector.shape_cast %429 : vector<2xf32> to vector<2x1xf32>
    %431 = arith.addf %413, %430 : vector<2x1xf32>
    %432 = tpu.iota {dimensions = array<i32: 1>} : vector<1x128xi32>
    %c5_i32 = arith.constant 5 : i32
    %433 = vector.broadcast %c5_i32 : i32 to vector<1x128xi32>
    %434 = arith.cmpi slt, %432, %433 : vector<1x128xi32>
    %cst_124 = arith.constant 0.000000e+00 : f32
    %cst_125 = arith.constant -1.000000e+09 : f32
    %435 = vector.broadcast %cst_124 : f32 to vector<1x128xf32>
    %436 = vector.broadcast %cst_125 : f32 to vector<1x128xf32>
    %437 = arith.select %434, %435, %436 : vector<1x128xi1>, vector<1x128xf32>
    %438 = vector.extract_strided_slice %383 {offsets = [0, 0, 0], sizes = [2, 1, 128], strides = [1, 1, 1]} : vector<2x8x128xf32> to vector<2x1x128xf32>
    %439 = vector.shape_cast %438 : vector<2x1x128xf32> to vector<2x128xf32>
    %440 = vector.broadcast %8 : vector<1x128xf32> to vector<2x128xf32>
    %441 = arith.addf %440, %439 : vector<2x128xf32>
    %cst_126 = arith.constant dense<0xFF800000> : vector<2xf32>
    %442 = vector.multi_reduction <maximumf>, %441, %cst_126 [1] : vector<2x128xf32> to vector<2xf32>
    %443 = vector.shape_cast %442 : vector<2xf32> to vector<2x1xf32>
    %444 = vector.broadcast %443 : vector<2x1xf32> to vector<2x128xf32>
    %445 = arith.subf %441, %444 : vector<2x128xf32>
    %446 = math.exp %445 : vector<2x128xf32>
    %cst_127 = arith.constant dense<0.000000e+00> : vector<2x128xf32>
    %447 = tpu.matmul %446, %13, %cst_127 {dimension_numbers = #tpu.dot_dimension_numbers<[1], [0], [0], [1], [0, 0, 1, 1], [], []>} : vector<2x128xf32>, vector<128x128xf32>, vector<2x128xf32> -> vector<2x128xf32>
    %cst_128 = arith.constant 1.000000e-30 : f32
    %448 = vector.broadcast %cst_128 : f32 to vector<2x128xf32>
    %449 = arith.addf %447, %448 : vector<2x128xf32>
    %450 = math.log %449 : vector<2x128xf32>
    %451 = vector.broadcast %443 : vector<2x1xf32> to vector<2x128xf32>
    %452 = arith.addf %451, %450 : vector<2x128xf32>
    %453 = vector.extract_strided_slice %383 {offsets = [0, 1, 0], sizes = [2, 1, 128], strides = [1, 1, 1]} : vector<2x8x128xf32> to vector<2x1x128xf32>
    %454 = vector.shape_cast %453 : vector<2x1x128xf32> to vector<2x128xf32>
    %455 = arith.addf %452, %454 : vector<2x128xf32>
    %456 = vector.broadcast %437 : vector<1x128xf32> to vector<2x128xf32>
    %457 = arith.addf %455, %456 : vector<2x128xf32>
    %458 = vector.extract_strided_slice %0 {offsets = [0, 1], sizes = [2, 1], strides = [1, 1]} : vector<2x8xf32> to vector<2x1xf32>
    %cst_129 = arith.constant 0.000000e+00 : f32
    %459 = vector.broadcast %cst_129 : f32 to vector<2x1xf32>
    %460 = arith.cmpf ogt, %458, %459 : vector<2x1xf32>
    %461 = vector.shape_cast %460 : vector<2x1xi1> to vector<2x1xi1>
    %462 = vector.broadcast %461 : vector<2x1xi1> to vector<2x128xi1>
    %463 = arith.select %462, %457, %441 : vector<2x128xi1>, vector<2x128xf32>
    %cst_130 = arith.constant dense<0xFF800000> : vector<2xf32>
    %464 = vector.multi_reduction <maximumf>, %463, %cst_130 [1] : vector<2x128xf32> to vector<2xf32>
    %465 = vector.shape_cast %464 : vector<2xf32> to vector<2x1xf32>
    %466 = vector.broadcast %465 : vector<2x1xf32> to vector<2x128xf32>
    %467 = arith.subf %463, %466 : vector<2x128xf32>
    %468 = math.exp %467 : vector<2x128xf32>
    %cst_131 = arith.constant dense<0.000000e+00> : vector<2x128xf32>
    %469 = tpu.matmul %468, %13, %cst_131 {dimension_numbers = #tpu.dot_dimension_numbers<[1], [0], [0], [1], [0, 0, 1, 1], [], []>} : vector<2x128xf32>, vector<128x128xf32>, vector<2x128xf32> -> vector<2x128xf32>
    %cst_132 = arith.constant 1.000000e-30 : f32
    %470 = vector.broadcast %cst_132 : f32 to vector<2x128xf32>
    %471 = arith.addf %469, %470 : vector<2x128xf32>
    %472 = math.log %471 : vector<2x128xf32>
    %473 = vector.broadcast %465 : vector<2x1xf32> to vector<2x128xf32>
    %474 = arith.addf %473, %472 : vector<2x128xf32>
    %475 = vector.extract_strided_slice %383 {offsets = [0, 2, 0], sizes = [2, 1, 128], strides = [1, 1, 1]} : vector<2x8x128xf32> to vector<2x1x128xf32>
    %476 = vector.shape_cast %475 : vector<2x1x128xf32> to vector<2x128xf32>
    %477 = arith.addf %474, %476 : vector<2x128xf32>
    %478 = vector.broadcast %437 : vector<1x128xf32> to vector<2x128xf32>
    %479 = arith.addf %477, %478 : vector<2x128xf32>
    %480 = vector.extract_strided_slice %0 {offsets = [0, 2], sizes = [2, 1], strides = [1, 1]} : vector<2x8xf32> to vector<2x1xf32>
    %cst_133 = arith.constant 0.000000e+00 : f32
    %481 = vector.broadcast %cst_133 : f32 to vector<2x1xf32>
    %482 = arith.cmpf ogt, %480, %481 : vector<2x1xf32>
    %483 = vector.shape_cast %482 : vector<2x1xi1> to vector<2x1xi1>
    %484 = vector.broadcast %483 : vector<2x1xi1> to vector<2x128xi1>
    %485 = arith.select %484, %479, %463 : vector<2x128xi1>, vector<2x128xf32>
    %cst_134 = arith.constant dense<0xFF800000> : vector<2xf32>
    %486 = vector.multi_reduction <maximumf>, %485, %cst_134 [1] : vector<2x128xf32> to vector<2xf32>
    %487 = vector.shape_cast %486 : vector<2xf32> to vector<2x1xf32>
    %488 = vector.broadcast %487 : vector<2x1xf32> to vector<2x128xf32>
    %489 = arith.subf %485, %488 : vector<2x128xf32>
    %490 = math.exp %489 : vector<2x128xf32>
    %cst_135 = arith.constant dense<0.000000e+00> : vector<2x128xf32>
    %491 = tpu.matmul %490, %13, %cst_135 {dimension_numbers = #tpu.dot_dimension_numbers<[1], [0], [0], [1], [0, 0, 1, 1], [], []>} : vector<2x128xf32>, vector<128x128xf32>, vector<2x128xf32> -> vector<2x128xf32>
    %cst_136 = arith.constant 1.000000e-30 : f32
    %492 = vector.broadcast %cst_136 : f32 to vector<2x128xf32>
    %493 = arith.addf %491, %492 : vector<2x128xf32>
    %494 = math.log %493 : vector<2x128xf32>
    %495 = vector.broadcast %487 : vector<2x1xf32> to vector<2x128xf32>
    %496 = arith.addf %495, %494 : vector<2x128xf32>
    %497 = vector.extract_strided_slice %383 {offsets = [0, 3, 0], sizes = [2, 1, 128], strides = [1, 1, 1]} : vector<2x8x128xf32> to vector<2x1x128xf32>
    %498 = vector.shape_cast %497 : vector<2x1x128xf32> to vector<2x128xf32>
    %499 = arith.addf %496, %498 : vector<2x128xf32>
    %500 = vector.broadcast %437 : vector<1x128xf32> to vector<2x128xf32>
    %501 = arith.addf %499, %500 : vector<2x128xf32>
    %502 = vector.extract_strided_slice %0 {offsets = [0, 3], sizes = [2, 1], strides = [1, 1]} : vector<2x8xf32> to vector<2x1xf32>
    %cst_137 = arith.constant 0.000000e+00 : f32
    %503 = vector.broadcast %cst_137 : f32 to vector<2x1xf32>
    %504 = arith.cmpf ogt, %502, %503 : vector<2x1xf32>
    %505 = vector.shape_cast %504 : vector<2x1xi1> to vector<2x1xi1>
    %506 = vector.broadcast %505 : vector<2x1xi1> to vector<2x128xi1>
    %507 = arith.select %506, %501, %485 : vector<2x128xi1>, vector<2x128xf32>
    %cst_138 = arith.constant dense<0xFF800000> : vector<2xf32>
    %508 = vector.multi_reduction <maximumf>, %507, %cst_138 [1] : vector<2x128xf32> to vector<2xf32>
    %509 = vector.shape_cast %508 : vector<2xf32> to vector<2x1xf32>
    %510 = vector.broadcast %509 : vector<2x1xf32> to vector<2x128xf32>
    %511 = arith.subf %507, %510 : vector<2x128xf32>
    %512 = math.exp %511 : vector<2x128xf32>
    %cst_139 = arith.constant dense<0.000000e+00> : vector<2x128xf32>
    %513 = tpu.matmul %512, %13, %cst_139 {dimension_numbers = #tpu.dot_dimension_numbers<[1], [0], [0], [1], [0, 0, 1, 1], [], []>} : vector<2x128xf32>, vector<128x128xf32>, vector<2x128xf32> -> vector<2x128xf32>
    %cst_140 = arith.constant 1.000000e-30 : f32
    %514 = vector.broadcast %cst_140 : f32 to vector<2x128xf32>
    %515 = arith.addf %513, %514 : vector<2x128xf32>
    %516 = math.log %515 : vector<2x128xf32>
    %517 = vector.broadcast %509 : vector<2x1xf32> to vector<2x128xf32>
    %518 = arith.addf %517, %516 : vector<2x128xf32>
    %519 = vector.extract_strided_slice %383 {offsets = [0, 4, 0], sizes = [2, 1, 128], strides = [1, 1, 1]} : vector<2x8x128xf32> to vector<2x1x128xf32>
    %520 = vector.shape_cast %519 : vector<2x1x128xf32> to vector<2x128xf32>
    %521 = arith.addf %518, %520 : vector<2x128xf32>
    %522 = vector.broadcast %437 : vector<1x128xf32> to vector<2x128xf32>
    %523 = arith.addf %521, %522 : vector<2x128xf32>
    %524 = vector.extract_strided_slice %0 {offsets = [0, 4], sizes = [2, 1], strides = [1, 1]} : vector<2x8xf32> to vector<2x1xf32>
    %cst_141 = arith.constant 0.000000e+00 : f32
    %525 = vector.broadcast %cst_141 : f32 to vector<2x1xf32>
    %526 = arith.cmpf ogt, %524, %525 : vector<2x1xf32>
    %527 = vector.shape_cast %526 : vector<2x1xi1> to vector<2x1xi1>
    %528 = vector.broadcast %527 : vector<2x1xi1> to vector<2x128xi1>
    %529 = arith.select %528, %523, %507 : vector<2x128xi1>, vector<2x128xf32>
    %cst_142 = arith.constant dense<0xFF800000> : vector<2xf32>
    %530 = vector.multi_reduction <maximumf>, %529, %cst_142 [1] : vector<2x128xf32> to vector<2xf32>
    %531 = vector.shape_cast %530 : vector<2xf32> to vector<2x1xf32>
    %532 = vector.broadcast %531 : vector<2x1xf32> to vector<2x128xf32>
    %533 = arith.subf %529, %532 : vector<2x128xf32>
    %534 = math.exp %533 : vector<2x128xf32>
    %cst_143 = arith.constant dense<0.000000e+00> : vector<2x128xf32>
    %535 = tpu.matmul %534, %13, %cst_143 {dimension_numbers = #tpu.dot_dimension_numbers<[1], [0], [0], [1], [0, 0, 1, 1], [], []>} : vector<2x128xf32>, vector<128x128xf32>, vector<2x128xf32> -> vector<2x128xf32>
    %cst_144 = arith.constant 1.000000e-30 : f32
    %536 = vector.broadcast %cst_144 : f32 to vector<2x128xf32>
    %537 = arith.addf %535, %536 : vector<2x128xf32>
    %538 = math.log %537 : vector<2x128xf32>
    %539 = vector.broadcast %531 : vector<2x1xf32> to vector<2x128xf32>
    %540 = arith.addf %539, %538 : vector<2x128xf32>
    %541 = vector.extract_strided_slice %383 {offsets = [0, 5, 0], sizes = [2, 1, 128], strides = [1, 1, 1]} : vector<2x8x128xf32> to vector<2x1x128xf32>
    %542 = vector.shape_cast %541 : vector<2x1x128xf32> to vector<2x128xf32>
    %543 = arith.addf %540, %542 : vector<2x128xf32>
    %544 = vector.broadcast %437 : vector<1x128xf32> to vector<2x128xf32>
    %545 = arith.addf %543, %544 : vector<2x128xf32>
    %546 = vector.extract_strided_slice %0 {offsets = [0, 5], sizes = [2, 1], strides = [1, 1]} : vector<2x8xf32> to vector<2x1xf32>
    %cst_145 = arith.constant 0.000000e+00 : f32
    %547 = vector.broadcast %cst_145 : f32 to vector<2x1xf32>
    %548 = arith.cmpf ogt, %546, %547 : vector<2x1xf32>
    %549 = vector.shape_cast %548 : vector<2x1xi1> to vector<2x1xi1>
    %550 = vector.broadcast %549 : vector<2x1xi1> to vector<2x128xi1>
    %551 = arith.select %550, %545, %529 : vector<2x128xi1>, vector<2x128xf32>
    %cst_146 = arith.constant dense<0xFF800000> : vector<2xf32>
    %552 = vector.multi_reduction <maximumf>, %551, %cst_146 [1] : vector<2x128xf32> to vector<2xf32>
    %553 = vector.shape_cast %552 : vector<2xf32> to vector<2x1xf32>
    %554 = vector.broadcast %553 : vector<2x1xf32> to vector<2x128xf32>
    %555 = arith.subf %551, %554 : vector<2x128xf32>
    %556 = math.exp %555 : vector<2x128xf32>
    %cst_147 = arith.constant dense<0.000000e+00> : vector<2x128xf32>
    %557 = tpu.matmul %556, %13, %cst_147 {dimension_numbers = #tpu.dot_dimension_numbers<[1], [0], [0], [1], [0, 0, 1, 1], [], []>} : vector<2x128xf32>, vector<128x128xf32>, vector<2x128xf32> -> vector<2x128xf32>
    %cst_148 = arith.constant 1.000000e-30 : f32
    %558 = vector.broadcast %cst_148 : f32 to vector<2x128xf32>
    %559 = arith.addf %557, %558 : vector<2x128xf32>
    %560 = math.log %559 : vector<2x128xf32>
    %561 = vector.broadcast %553 : vector<2x1xf32> to vector<2x128xf32>
    %562 = arith.addf %561, %560 : vector<2x128xf32>
    %563 = vector.extract_strided_slice %383 {offsets = [0, 6, 0], sizes = [2, 1, 128], strides = [1, 1, 1]} : vector<2x8x128xf32> to vector<2x1x128xf32>
    %564 = vector.shape_cast %563 : vector<2x1x128xf32> to vector<2x128xf32>
    %565 = arith.addf %562, %564 : vector<2x128xf32>
    %566 = vector.broadcast %437 : vector<1x128xf32> to vector<2x128xf32>
    %567 = arith.addf %565, %566 : vector<2x128xf32>
    %568 = vector.extract_strided_slice %0 {offsets = [0, 6], sizes = [2, 1], strides = [1, 1]} : vector<2x8xf32> to vector<2x1xf32>
    %cst_149 = arith.constant 0.000000e+00 : f32
    %569 = vector.broadcast %cst_149 : f32 to vector<2x1xf32>
    %570 = arith.cmpf ogt, %568, %569 : vector<2x1xf32>
    %571 = vector.shape_cast %570 : vector<2x1xi1> to vector<2x1xi1>
    %572 = vector.broadcast %571 : vector<2x1xi1> to vector<2x128xi1>
    %573 = arith.select %572, %567, %551 : vector<2x128xi1>, vector<2x128xf32>
    %cst_150 = arith.constant dense<0xFF800000> : vector<2xf32>
    %574 = vector.multi_reduction <maximumf>, %573, %cst_150 [1] : vector<2x128xf32> to vector<2xf32>
    %575 = vector.shape_cast %574 : vector<2xf32> to vector<2x1xf32>
    %576 = vector.broadcast %575 : vector<2x1xf32> to vector<2x128xf32>
    %577 = arith.subf %573, %576 : vector<2x128xf32>
    %578 = math.exp %577 : vector<2x128xf32>
    %cst_151 = arith.constant dense<0.000000e+00> : vector<2x128xf32>
    %579 = tpu.matmul %578, %13, %cst_151 {dimension_numbers = #tpu.dot_dimension_numbers<[1], [0], [0], [1], [0, 0, 1, 1], [], []>} : vector<2x128xf32>, vector<128x128xf32>, vector<2x128xf32> -> vector<2x128xf32>
    %cst_152 = arith.constant 1.000000e-30 : f32
    %580 = vector.broadcast %cst_152 : f32 to vector<2x128xf32>
    %581 = arith.addf %579, %580 : vector<2x128xf32>
    %582 = math.log %581 : vector<2x128xf32>
    %583 = vector.broadcast %575 : vector<2x1xf32> to vector<2x128xf32>
    %584 = arith.addf %583, %582 : vector<2x128xf32>
    %585 = vector.extract_strided_slice %383 {offsets = [0, 7, 0], sizes = [2, 1, 128], strides = [1, 1, 1]} : vector<2x8x128xf32> to vector<2x1x128xf32>
    %586 = vector.shape_cast %585 : vector<2x1x128xf32> to vector<2x128xf32>
    %587 = arith.addf %584, %586 : vector<2x128xf32>
    %588 = vector.broadcast %437 : vector<1x128xf32> to vector<2x128xf32>
    %589 = arith.addf %587, %588 : vector<2x128xf32>
    %590 = vector.extract_strided_slice %0 {offsets = [0, 7], sizes = [2, 1], strides = [1, 1]} : vector<2x8xf32> to vector<2x1xf32>
    %cst_153 = arith.constant 0.000000e+00 : f32
    %591 = vector.broadcast %cst_153 : f32 to vector<2x1xf32>
    %592 = arith.cmpf ogt, %590, %591 : vector<2x1xf32>
    %593 = vector.shape_cast %592 : vector<2x1xi1> to vector<2x1xi1>
    %594 = vector.broadcast %593 : vector<2x1xi1> to vector<2x128xi1>
    %595 = arith.select %594, %589, %573 : vector<2x128xi1>, vector<2x128xf32>
    %596 = vector.broadcast %9 : vector<1x128xf32> to vector<2x128xf32>
    %597 = arith.addf %595, %596 : vector<2x128xf32>
    %cst_154 = arith.constant dense<0xFF800000> : vector<2xf32>
    %598 = vector.multi_reduction <maximumf>, %597, %cst_154 [1] : vector<2x128xf32> to vector<2xf32>
    %599 = vector.shape_cast %598 : vector<2xf32> to vector<2x1xf32>
    %600 = vector.broadcast %599 : vector<2x1xf32> to vector<2x128xf32>
    %601 = arith.subf %597, %600 : vector<2x128xf32>
    %602 = math.exp %601 : vector<2x128xf32>
    %cst_155 = arith.constant dense<0.000000e+00> : vector<2xf32>
    %603 = vector.multi_reduction <add>, %602, %cst_155 [1] : vector<2x128xf32> to vector<2xf32>
    %604 = vector.shape_cast %603 : vector<2xf32> to vector<2x1xf32>
    %605 = math.log %604 : vector<2x1xf32>
    %606 = arith.addf %599, %605 : vector<2x1xf32>
    %607 = arith.subf %431, %606 : vector<2x1xf32>
    %608 = vector.shape_cast %607 : vector<2x1xf32> to vector<2x1xf32>
    %609 = vector.broadcast %608 : vector<2x1xf32> to vector<2x128xf32>
    %c0_156 = arith.constant 0 : index
    %c0_157 = arith.constant 0 : index
    %610 = vector.load %arg9[%c0_156, %c0_157] : memref<2x128xf32, #tpu.memory_space<vmem>>, vector<2x128xf32>
    tpu.vector_store %arg9[%c0_156, %c0_157], %609 {strides = array<i32>} : memref<2x128xf32, #tpu.memory_space<vmem>>, vector<2x128xf32>,
    return
  }
}

</mosaic_0001>

<bundles_post_ra>
// kernel: tpu_custom_call.1
= control target key start
LH: loop header
LB: loop body
LE: loop exit
PB: predicated region body
PF: predicated region fallthrough
CT: control target
= control target key end

     0   :  { %16 = vsyncpa [#allocation3], 0  ;;  %s5126_s0 = inlined_call_operand.hbm [shape: f32[16,32], index: 0, kind: input, shape index: {}]   ;;  %s5127_s1 = inlined_call_operand.hbm [shape: f32[4,8], index: 1, kind: input, shape index: {}]   ;;  %s5128_s2 = inlined_call_operand.vmem [shape: bf16[2,32,128], index: 2, kind: input, shape index: {}]   ;;  %s5129_s3 = inlined_call_operand.vmem [shape: bf16[2,32,32], index: 3, kind: input, shape index: {}]   ;;  %s5130_s4 = inlined_call_operand.hbm [shape: bf16[2,32,64], index: 4, kind: input, shape index: {}]   ;;  %s5131_s5 = inlined_call_operand.vmem [shape: bf16[2,64,32], index: 5, kind: input, shape index: {}]   ;;  %s5132_s6 = inlined_call_operand.hbm [shape: f32[2,8,128], index: 6, kind: input, shape index: {}]   ;;  %s5133_s7 = inlined_call_operand.vmem [shape: f32[37,128], index: 7, kind: input, shape index: {}]   ;;  %s5134_s8 = inlined_call_operand.hbm [shape: f32[2,128,128], index: 8, kind: input, shape index: {}]   ;;  %s5135_s9 = inlined_call_operand.hbm [shape: f32[2,128], index: 9, kind: output, shape index: {0}]   ;;  %s5136_s10 = inlined_call_operand.hbm [shape: f32[16,128], index: 10, kind: output, shape index: {1}]  }
   0x1   :  { %17 = vsyncpa [#allocation6], 0 }
   0x2   :  { %18 = vsyncpa [#allocation9], 0 }
   0x3   :  { %19 = vsyncpa [#allocation4], 0 }
   0x4   :  { %20 = vsyncpa [#allocation13], 0  ;;  %s4233_s13 = smov [#allocation5]   ;;  %s4069_s17 = scalar_lea.hbm %s5127_s1, 64 }
   0x5   :  { %s39_s14 = sshll.u32 %s4233_s13, 4  ;;  %p4070_p0 = scmp.ne.s32.totalorder %s5127_s1, %s4069_s17  ;;  %s40_s14 = int_to_ptr.vmem [resolvable:$true] %s39_s14 }
   0x6   :  { %p4073_p1 = scmp.lt.u32.totalorder %s4069_s17, %s5127_s1 }
   0x8   :  { %p4075_p2 = pnand %p4073_p1, %p4070_p0 }
   0xa   :  { %4078 = shalt.err (!%p4075_p2)
}
   0xb   :  { %s4079_s22 = scalar_lea.vmem %s40_s14, 64  ;;  %p4084_p4 = scmp.lt.s32.totalorder %s40_s14, %s40_s14 }
   0xc   :  { %p4080_p3 = scmp.ne.s32.totalorder %s40_s14, %s4079_s22  ;;  %p4085_p5 = scmp.lt.s32.totalorder %s4079_s22, %s4079_s22 }
   0xe   :  { %p4086_p6 = por %p4085_p5, %p4084_p4 }
  0x10   :  { %p4087_p7 = pnand %p4086_p6, %p4080_p3 }
  0x12   :  { %4090 = shalt.err (!%p4087_p7)
}
  0x13   :  { %42 = dma.hbm_to_vmem [thread:$0]  %s5127_s1, 64, %s40_s14, [#allocation6]  }
  0x14   :  { %s4234_s25 = smov [#allocation8]   ;;  %s4235_s27 = smov [#allocation2]  }
  0x15   :  { %s66_s26 = sshll.u32 %s4234_s25, 4  ;;  %s26_s28 = sshll.u32 %s4235_s27, 4  ;;  %s67_s26 = int_to_ptr.vmem [resolvable:$true] %s66_s26  ;;  %s27_s28 = int_to_ptr.vmem [resolvable:$true] %s26_s28 }
  0x16   :  { %s4091_s11 = scalar_lea.hbm %s5132_s6, 256 }
  0x17   :  { %p4092_p8 = scmp.ne.s32.totalorder %s5132_s6, %s4091_s11  ;;  %p4095_p9 = scmp.lt.u32.totalorder %s4091_s11, %s5132_s6 }
  0x19   :  { %p4097_p10 = pnand %p4095_p9, %p4092_p8 }
  0x1b   :  { %4100 = shalt.err (!%p4097_p10)
}
  0x1c   :  { %s4101_s1 = scalar_lea.vmem %s67_s26, 256  ;;  %p4106_p12 = scmp.lt.s32.totalorder %s67_s26, %s67_s26 }
  0x1d   :  { %p4102_p11 = scmp.ne.s32.totalorder %s67_s26, %s4101_s1  ;;  %p4107_p13 = scmp.lt.s32.totalorder %s4101_s1, %s4101_s1 }
  0x1f   :  { %p4108_p0 = por %p4107_p13, %p4106_p12 }
  0x21   :  { %p4109_p1 = pnand %p4108_p0, %p4102_p11 }
  0x23   :  { %4112 = shalt.err (!%p4109_p1)
}
  0x24   :  { %s4236_s14 = smov 128   ;;  %s4237_s17 = smov 8  }
  0x25   :  { %72 = dma.hbm_to_vmem [thread:$0]  %s5132_s6, 256, %s67_s26, [#allocation9], %s4236_s14, %s4236_s14, %s4237_s17  }
  0x26   :  { %s4113_s22 = scalar_lea.hbm %s5126_s0, 256 }
  0x27   :  { %p4114_p2 = scmp.ne.s32.totalorder %s5126_s0, %s4113_s22  ;;  %p4117_p3 = scmp.lt.u32.totalorder %s4113_s22, %s5126_s0 }
  0x29   :  { %p4119_p4 = pnand %p4117_p3, %p4114_p2 }
  0x2b   :  { %4122 = shalt.err (!%p4119_p4)
}
  0x2c   :  { %s4123_s29 = scalar_lea.vmem %s27_s28, 256  ;;  %p4128_p6 = scmp.lt.s32.totalorder %s27_s28, %s27_s28 }
  0x2d   :  { %p4124_p5 = scmp.ne.s32.totalorder %s27_s28, %s4123_s29  ;;  %p4129_p7 = scmp.lt.s32.totalorder %s4123_s29, %s4123_s29 }
  0x2f   :  { %p4130_p8 = por %p4129_p7, %p4128_p6 }
  0x31   :  { %p4131_p9 = pnand %p4130_p8, %p4124_p5 }
  0x33   :  { %4134 = shalt.err (!%p4131_p9)
}
  0x34   :  { %32 = dma.hbm_to_vmem [thread:$0]  %s5126_s0, 256, %s27_s28, [#allocation3], %s4236_s14, %s4236_s14, %s4237_s17  }
  0x35   :  { %s4238_s30 = smov [#allocation7]   ;;  %s4135_s15 = scalar_lea.hbm %s5130_s4, 512 }
  0x36   :  { %s52_s11 = sshll.u32 %s4238_s30, 4  ;;  %p4136_p10 = scmp.ne.s32.totalorder %s5130_s4, %s4135_s15  ;;  %s53_s11 = int_to_ptr.vmem [resolvable:$true] %s52_s11 }
  0x37   :  { %p4139_p11 = scmp.lt.u32.totalorder %s4135_s15, %s5130_s4 }
  0x39   :  { %p4141_p12 = pnand %p4139_p11, %p4136_p10 }
  0x3b   :  { %4144 = shalt.err (!%p4141_p12)
}
  0x3c   :  { %s4145_s20 = scalar_lea.vmem %s53_s11, 512  ;;  %p4150_p0 = scmp.lt.s32.totalorder %s53_s11, %s53_s11 }
  0x3d   :  { %p4146_p13 = scmp.ne.s32.totalorder %s53_s11, %s4145_s20  ;;  %p4151_p1 = scmp.lt.s32.totalorder %s4145_s20, %s4145_s20 }
  0x3f   :  { %p4152_p2 = por %p4151_p1, %p4150_p0 }
  0x41   :  { %p4153_p3 = pnand %p4152_p2, %p4146_p13 }
  0x43   :  { %4156 = shalt.err (!%p4153_p3)
}
  0x44   :  { %s4239_s0 = smov 64   ;;  %s4240_s28 = smov 4  }
  0x45   :  { %58 = dma.hbm_to_vmem [thread:$0]  %s5130_s4, 512, %s53_s11, [#allocation6], %s4239_s0, %s4239_s0, %s4240_s28  }
  0x46   :  { %s4241_s23 = smov [#allocation10]   ;;  %s4157_s29 = scalar_lea.hbm %s5134_s8, 4096 }
  0x47   :  { %s80_s24 = sshll.u32 %s4241_s23, 4  ;;  %p4158_p4 = scmp.ne.s32.totalorder %s5134_s8, %s4157_s29  ;;  %s81_s24 = int_to_ptr.vmem [resolvable:$true] %s80_s24 }
  0x48   :  { %p4161_p5 = scmp.lt.u32.totalorder %s4157_s29, %s5134_s8 }
  0x4a   :  { %p4163_p6 = pnand %p4161_p5, %p4158_p4 }
  0x4c   :  { %4166 = shalt.err (!%p4163_p6)
}
  0x4d   :  { %s4167_s13 = scalar_lea.vmem %s81_s24, 4096  ;;  %p4172_p8 = scmp.lt.s32.totalorder %s81_s24, %s81_s24 }
  0x4e   :  { %p4168_p7 = scmp.ne.s32.totalorder %s81_s24, %s4167_s13  ;;  %p4173_p9 = scmp.lt.s32.totalorder %s4167_s13, %s4167_s13 }
  0x50   :  { %p4174_p10 = por %p4173_p9, %p4172_p8 }
  0x52   :  { %p4175_p11 = pnand %p4174_p10, %p4168_p7 }
  0x54   :  { %4178 = shalt.err (!%p4175_p11)
}
  0x55   :  { %86 = dma.hbm_to_vmem [thread:$0]  %s5134_s8, 4096, %s81_s24, [#allocation9], %s4236_s14, %s4236_s14, %s4237_s17  }
  0x56   :  { %4223 = dma.done.wait [#allocation3], 256  }
  0x57   :  { %4224 = vsyncadd [#allocation3], 4294967040 }
  0x58   :  { %4225 = dma.done.wait [#allocation6], 576  }
  0x59   :  { %4226 = vsyncadd [#allocation6], 4294966720 }
  0x5a   :  { %4227 = dma.done.wait [#allocation9], 4352  }
  0x5b   :  { %4228 = vsyncadd [#allocation9], 4294962944  ;;  %vm171_vm0 = vcmask 261120   ;;  %v169_v0 = vld [vmem:[#allocation2] sm:$0xff]  ;;  %v170_v1 = vld [vmem:[#allocation2 + $0x8] sm:$0xff]  ;;  %v4242_v15 = vmov 0.0   ;;  %v150_v21 = vlaneseq }
  0x5c   :  { %v172_v2 = vsel %vm171_vm0, %v169_v0, 0.0  ;;  %v175_v3 = vsel %vm171_vm0, %v170_v1, 0.0  ;;  %v3947_v14 = vld [vmem:[%s5128_s2] sm:$0xff]   ;;  %3240 = vmatprep.subr.bf16.mxu0 %v4242_v15  ;;  %3248 = vmatprep.subr.bf16.mxu1 %v4242_v15  ;;  %v3948_v16 = vld [vmem:[%s5128_s2 + $0x8] sm:$0xff]   ;;  %vm4243_vm1 = vmmov 0   ;;  %v4431_v40 = vld [vmem:[#allocation8] sm:$0xff] }
  0x5d   :  { %173 = vadd.xlane.f32.xlu0 %v172_v2  ;;  %3241 = vmatpush3.bf16.msra.mxu0 %v3947_v14  ;;  %v4406_v24 = vshrl.u32 %v150_v21, 7  ;;  %v110_v26 = vld [vmem:[%s5133_s7 + $0x20] sm:$0x1f]  ;;  %s4244_s20 = smov 112   ;;  %s4245_s28 = smov 96   ;;  %vm292_vm2 = vcmask 130048  }
  0x5e   :  { %3244 = vmatprep.mubr.msk.bf16.mxu0 %vm4243_vm1, %v4242_v15  ;;  %3242 = vmatprep.subr.bf16.mxu0 %v4242_v15  ;;  %v4246_v2 = vmov 1966171168   ;;  %vm504_vm3 = vcmask 64512   ;;  %vm558_vm4 = vcmask 1043456   ;;  %s4247_s25 = smov 16   ;;  %vm1015_vm7 = vcmask 523264  }
  0x5f   :  { %3250 = vmatprep.mubr.msk.bf16.mxu1 %vm4243_vm1, %v4242_v15  ;;  %v4409_v25 = vsub.s32 1, %v4406_v24  ;;  %v4416_v30 = vsub.s32 2, %v4406_v24  ;;  %v4429_v39 = vsub.s32 0, %v4406_v24  ;;  %vm2156_vm11 = vcmask 1041409  }
  0x60   :  { %vm2160_vm12 = vcmask 1041408  }
  0x61   :  { %176 = vadd.xlane.f32.xlu0 %v175_v3  ;;  %3243 = vmatpush3.bf16.msra.mxu0 %v3948_v16  ;;  %v202_v29 = vrot.slane %v110_v26, %v4409_v25  ;;  %v208_v34 = vrot.slane %v110_v26, %v4416_v30  ;;  %v220_v41 = vrot.slane %v4431_v40, %v4429_v39  ;;  %v148_v3 = vunpack.c.l.s4 %v4246_v2 }
  0x62   :  { %3254 = vmatprep.subr.bf16.mxu0 %v4242_v15 }
  0xea   :  { %v174_v4 = vpop.xlane.xlu0 %173 }
  0xeb   :  { %v179_v5 = vmul.f32 0.03125, %v174_v4  ;;  %v103_v4 = vld [vmem:[#allocation5] sm:$0x3] }
  0xed   :  { %v181_v6 = vsub.f32 %v169_v0, %v179_v5  ;;  %v2972_v5 = vadd.f32 -1.0, %v103_v4 }
  0xee   :  { %v177_v7 = vpop.xlane.xlu0 %176 }
  0xef   :  { %v180_v8 = vmul.f32 0.03125, %v177_v7  ;;  %v183_v9 = vmul.f32 %v181_v6, %v181_v6  ;;  %v145_v7 = vmul.f32 1e+09, %v2972_v5 }
  0xf1   :  { %v182_v10 = vsub.f32 %v170_v1, %v180_v8  ;;  %v185_v11 = vsel %vm171_vm0, %v183_v9, 0.0 }
  0xf2   :  { %186 = vadd.xlane.f32.xlu1 %v185_v11 }
  0xf3   :  { %v184_v12 = vmul.f32 %v182_v10, %v182_v10 }
  0xf5   :  { %v188_v13 = vsel %vm171_vm0, %v184_v12, 0.0 }
  0xf6   :  { %189 = vadd.xlane.f32.xlu1 %v188_v13 }
 0x17f   :  { %v187_v17 = vpop.xlane.xlu1 %186 }
 0x180   :  { %v191_v18 = vmul.f32 0.03125, %v187_v17 }
 0x182   :  { %v193_v19 = vadd.f32 1e-12, %v191_v18 }
 0x183   :  { %v190_v20 = vpop.xlane.xlu1 %189 }
 0x184   :  { %3967 = vrsqrt.f32 %v193_v19  ;;  %v192_v22 = vmul.f32 0.03125, %v190_v20 }
 0x186   :  { %v194_v23 = vadd.f32 1e-12, %v192_v22 }
 0x188   :  { %3969 = vrsqrt.f32 %v194_v23 }
 0x18e   :  { %v3968_v27 = vpop.eup %3967 }
 0x18f   :  { %v197_v28 = vmul.f32 %v3968_v27, %v181_v6  ;;  %v149_v6 = vunpack.c.0.s8 %v148_v3 }
 0x191   :  { %v203_v33 = vmul.f32 %v202_v29, %v197_v28  ;;  %v152_v8 = vsub.s32 %v149_v6, %v4406_v24 }
 0x192   :  { %v3970_v31 = vpop.eup %3969 }
 0x193   :  { %v198_v32 = vmul.f32 %v3970_v31, %v182_v10  ;;  %v4419_v36 = vadd.f32 %v208_v34, %v203_v33  ;;  %v153_v9 = vrot.slane %v145_v7, %v152_v8 }
 0x195   :  { %v204_v35 = vmul.f32 %v202_v29, %v198_v32  ;;  %v161_v10 = vrot.slane %v153_v9, %v152_v8  ;;  %v154_v11 = vcombine.high %v153_v9, %v153_v9 }
 0x197   :  { %v4421_v37 = vadd.f32 %v208_v34, %v204_v35  ;;  %v4479_v17 = vrot.slane %v161_v10, %v4429_v39  ;;  %v168_v22 = vrot.slane %v154_v11, %v152_v8 }
 0x199   :  { %v216_v38 = vpack.c.bf16 %v4421_v37, %v4419_v36  ;;  %v4485_v27 = vrot.slane %v168_v22, %v4429_v39 }
 0x19b   :  { %3245 = vmatmul.mubr.msk.bf16.vlgmr.msra.gmra.mrb[0].mxu0 %vm171_vm0, %v216_v38 }
 0x19c   :  { %3256 = vmatprep.mubr.msk.bf16.mxu0 %vm4243_vm1, %v4242_v15 }
 0x26e   :  { %v270_v42 = vpop.f32.mrb[0].mxu0 }
 0x26f   :  { %v271_v43 = vadd.f32 %v270_v42, %v220_v41  ;;  %v3246_v44 = vpop.f32.mrb[1].mxu0 }
 0x270   :  { %v273_v45 = vpop.f32.mrb[2].mxu0 }
 0x271   :  { %v274_v46 = vadd.f32 %v273_v45, %v220_v41  ;;  %279 = vrot.lane.b32.xlu0 %v271_v43, %s4244_s20  ;;  %v3247_v47 = vpop.f32.mrb[3].mxu0  ;;  %v4436_v48 = vpack.c.bf16 %v271_v43, %v271_v43 }
 0x273   :  { %281 = vrot.lane.b32.xlu1 %v274_v46, %s4244_s20  ;;  %v4451_v55 = vpack.c.bf16 %v274_v46, %v274_v46 }
 0x275   :  { %290 = vrot.lane.b32.xlu0 %v4436_v48, %s4245_s28 }
 0x2e3   :  { %v280_v49 = vpop.permute.xlu0 %279 }
 0x2e4   :  { %v4441_v50 = vpack.c.bf16 %v280_v49, %v280_v49 }
 0x2e5   :  { %v282_v51 = vpop.permute.xlu1 %281 }
 0x2e6   :  { %340 = vrot.lane.b32.xlu1 %v4441_v50, %s4245_s28  ;;  %v4445_v53 = vpack.c.bf16 %v282_v51, %v282_v51 }
 0x2e7   :  { %v291_v52 = vpop.permute.xlu0 %290 }
 0x2e8   :  { %v297_v54 = vsel %vm292_vm2, %v291_v52, 0 }
 0x2e9   :  { %3249 = vmatpush3.bf16.xpose.msra.mxu1 %v297_v54 }
 0x2ea   :  { %438 = vrot.lane.b32.xlu1 %v4445_v53, %s4245_s28  ;;  %3260 = vmatprep.subr.bf16.mxu1 %v4242_v15 }
 0x2ee   :  { %389 = vrot.lane.b32.xlu1 %v4451_v55, %s4245_s28 }
 0x2f0   :  { %3251 = vmatmul.mubr.msk.bf16.vlgmr.msra.gmra.mrb[0].mxu1 %vm292_vm2, %v4436_v48 }
 0x2f1   :  { %3262 = vmatprep.mubr.msk.bf16.mxu1 %vm4243_vm1, %v4242_v15 }
 0x358   :  { %v341_v56 = vpop.permute.xlu1 %340 }
 0x359   :  { %v346_v57 = vsel %vm292_vm2, %v341_v56, 0 }
 0x35a   :  { %3255 = vmatpush3.bf16.xpose.msra.mxu0 %v346_v57 }
 0x35b   :  { %3266 = vmatprep.subr.bf16.mxu0 %v4242_v15 }
 0x35c   :  { %v439_v58 = vpop.permute.xlu1 %438 }
 0x35d   :  { %v444_v60 = vsel %vm292_vm2, %v439_v58, 0 }
 0x360   :  { %v390_v59 = vpop.permute.xlu1 %389 }
 0x361   :  { %v395_v61 = vsel %vm292_vm2, %v390_v59, 0  ;;  %3257 = vmatmul.mubr.msk.bf16.vlgmr.msra.gmra.mrb[4].mxu0 %vm292_vm2, %v4441_v50 }
 0x362   :  { %3261 = vmatpush3.bf16.xpose.msra.mxu1 %v395_v61  ;;  %3267 = vmatpush3.bf16.xpose.msra.mxu0 %v444_v60 }
 0x363   :  { %3268 = vmatprep.mubr.msk.bf16.mxu0 %vm4243_vm1, %v4242_v15  ;;  %3278 = vmatprep.subr.bf16.mxu0 %v4242_v15 }
 0x364   :  { %3272 = vmatprep.subr.bf16.mxu1 %v4242_v15 }
 0x369   :  { %3263 = vmatmul.mubr.msk.bf16.vlgmr.msra.gmra.mrb[4].mxu1 %vm292_vm2, %v4451_v55  ;;  %3269 = vmatmul.mubr.msk.bf16.vlgmr.msra.gmra.mrb[8].mxu0 %vm292_vm2, %v4445_v53 }
 0x36a   :  { %3280 = vmatprep.mubr.msk.bf16.mxu0 %vm4243_vm1, %v4242_v15  ;;  %3274 = vmatprep.mubr.msk.bf16.mxu1 %vm4243_vm1, %v4242_v15 }
 0x3c3   :  { %v333_v62 = vpop.f32.mrb[0].mxu1 }
 0x3c4   :  { %v3252_v63 = vpop.f32.mrb[1].mxu1  ;;  %v486_v13 = vmul.f32 0.25, %v333_v62 }
 0x3c5   :  { %v336_v0 = vpop.f32.mrb[2].mxu1 }
 0x3c6   :  { %v3253_v1 = vpop.f32.mrb[3].mxu1  ;;  %v500_v26 = vadd.f32 %v4479_v17, %v486_v13 }
 0x3c8   :  { %v505_v35 = vsel %vm504_vm3, %v500_v26, -inf }
 0x434   :  { %v382_v12 = vpop.f32.mrb[4].mxu0 }
 0x435   :  { %v487_v14 = vmul.f32 0.25, %v382_v12  ;;  %v3258_v16 = vpop.f32.mrb[5].mxu0 }
 0x436   :  { %v385_v18 = vpop.f32.mrb[6].mxu0 }
 0x437   :  { %v3259_v19 = vpop.f32.mrb[7].mxu0  ;;  %v501_v20 = vadd.f32 %v4479_v17, %v487_v14 }
 0x439   :  { %v508_v23 = vsel %vm504_vm3, %v501_v20, -inf }
 0x43a   :  { %509 = vmax.xlane.f32.xlu0 %v508_v23 }
 0x43c   :  { %v431_v28 = vpop.f32.mrb[4].mxu1  ;;  %v480_v29 = vpop.f32.mrb[8].mxu0 }
 0x43d   :  { %v488_v31 = vmul.f32 0.25, %v431_v28  ;;  %v489_v32 = vmul.f32 0.25, %v480_v29  ;;  %v3264_v33 = vpop.f32.mrb[5].mxu1  ;;  %v3270_v34 = vpop.f32.mrb[9].mxu0 }
 0x43e   :  { %v434_v38 = vpop.f32.mrb[6].mxu1  ;;  %v483_v41 = vpop.f32.mrb[10].mxu0  ;;  %506 = vmax.xlane.f32.xlu0 %v505_v35  ;;  %v3949_v35 = vld [vmem:[%s5129_s3] sm:$0xff]  }
 0x43f   :  { %v3265_v42 = vpop.f32.mrb[7].mxu1  ;;  %v3271_v43 = vpop.f32.mrb[11].mxu0  ;;  %v503_v44 = vadd.f32 %v4485_v27, %v489_v32  ;;  %v502_v45 = vadd.f32 %v4485_v27, %v488_v31  ;;  %v3950_v38 = vld [vmem:[%s5129_s3 + $0x8] sm:$0xff]  }
 0x441   :  { %v514_v46 = vsel %vm504_vm3, %v503_v44, -inf  ;;  %v511_v47 = vsel %vm504_vm3, %v502_v45, -inf }
 0x442   :  { %515 = vmax.xlane.f32.xlu1 %v514_v46  ;;  %512 = vmax.xlane.f32.xlu0 %v511_v47 }
 0x4c7   :  { %v510_v49 = vpop.xlane.xlu0 %509 }
 0x4c8   :  { %v518_v51 = vsub.f32 %v501_v20, %v510_v49 }
 0x4ca   :  { %v523_v52 = vmul.f32 1.442695, %v518_v51 }
 0x4cb   :  { %v507_v62 = vpop.xlane.xlu0 %506 }
 0x4cc   :  { %3971 = vpow2.f32 %v523_v52  ;;  %v517_v2 = vsub.f32 %v500_v26, %v507_v62 }
 0x4ce   :  { %v521_v3 = vmul.f32 1.442695, %v517_v2 }
 0x4cf   :  { %v516_v54 = vpop.xlane.xlu1 %515  ;;  %v513_v63 = vpop.xlane.xlu0 %512 }
 0x4d0   :  { %v520_v56 = vsub.f32 %v503_v44, %v516_v54  ;;  %v519_v0 = vsub.f32 %v502_v45, %v513_v63 }
 0x4d2   :  { %v527_v57 = vmul.f32 1.442695, %v520_v56  ;;  %v525_v1 = vmul.f32 1.442695, %v519_v0 }
 0x4d4   :  { %3973 = vpow2.f32 %v527_v57 }
 0x4d5   :  { %3975 = vpow2.f32 %v525_v1 }
 0x4d6   :  { %v3972_v58 = vpop.eup %3971  ;;  %3977 = vpow2.f32 %v521_v3 }
 0x4d7   :  { %v532_v59 = vsel %vm504_vm3, %v3972_v58, 0.0 }
 0x4d8   :  { %533 = vadd.xlane.f32.xlu0 %v532_v59 }
 0x4de   :  { %v3974_v60 = vpop.eup %3973 }
 0x4df   :  { %v538_v61 = vsel %vm504_vm3, %v3974_v60, 0.0  ;;  %v3976_v4 = vpop.eup %3975 }
 0x4e0   :  { %539 = vadd.xlane.f32.xlu1 %v538_v61  ;;  %v535_v5 = vsel %vm504_vm3, %v3976_v4, 0.0  ;;  %v3978_v6 = vpop.eup %3977 }
 0x4e1   :  { %v529_v7 = vsel %vm504_vm3, %v3978_v6, 0.0 }
 0x4ee   :  { %602 = vrot.lane.b32.xlu0 %v4441_v50, %s4239_s0 }
 0x4f1   :  { %698 = vrot.lane.b32.xlu1 %v4445_v53, %s4239_s0 }
 0x50d   :  { %536 = vadd.xlane.f32.xlu0 %v535_v5 }
 0x515   :  { %530 = vadd.xlane.f32.xlu1 %v529_v7 }
 0x523   :  { %553 = vrot.lane.b32.xlu0 %v4436_v48, %s4239_s0 }
 0x526   :  { %650 = vrot.lane.b32.xlu1 %v4451_v55, %s4239_s0 }
 0x565   :  { %v534_v50 = vpop.xlane.xlu0 %533 }
 0x566   :  { %3979 = vrcp.f32 %v534_v50 }
 0x569   :  { %v603_v53 = vpop.permute.xlu0 %602 }
 0x56a   :  { %v608_v8 = vsel %vm558_vm4, %v603_v53, 0 }
 0x56b   :  { %3279 = vmatpush3.bf16.msra.mxu0 %v608_v8 }
 0x56c   :  { %3290 = vmatprep.subr.bf16.mxu0 %v4242_v15 }
 0x56d   :  { %v540_v9 = vpop.xlane.xlu1 %539 }
 0x56e   :  { %3981 = vrcp.f32 %v540_v9 }
 0x570   :  { %v3980_v10 = vpop.eup %3979 }
 0x571   :  { %v546_v11 = vmul.f32 %v3980_v10, %v3972_v58  ;;  %v699_v12 = vpop.permute.xlu1 %698 }
 0x572   :  { %v704_v48 = vsel %vm558_vm4, %v699_v12, 0 }
 0x573   :  { %v550_v13 = vpack.c.bf16 %v546_v11, %v546_v11 }
 0x575   :  { %3281 = vmatmul.mubr.msk.bf16.vlgmr.msra.gmra.mrb[12].mxu0 %vm504_vm3, %v550_v13 }
 0x576   :  { %3291 = vmatpush3.bf16.msra.mxu0 %v704_v48  ;;  %3292 = vmatprep.mubr.msk.bf16.mxu0 %vm4243_vm1, %v4242_v15 }
 0x577   :  { %3304 = vmatprep.subr.bf16.mxu0 %v4242_v15 }
 0x578   :  { %v3982_v55 = vpop.eup %3981 }
 0x579   :  { %v548_v14 = vmul.f32 %v3982_v55, %v3974_v60 }
 0x57b   :  { %v552_v16 = vpack.c.bf16 %v548_v14, %v548_v14 }
 0x57d   :  { %3293 = vmatmul.mubr.msk.bf16.vlgmr.msra.gmra.mrb[16].mxu0 %vm504_vm3, %v552_v16 }
 0x57e   :  { %3308 = vmatprep.mubr.msk.bf16.mxu0 %vm4243_vm1, %v4242_v15 }
 0x59a   :  { %v537_v18 = vpop.xlane.xlu0 %536 }
 0x59e   :  { %v554_v19 = vpop.permute.xlu0 %553 }
 0x59f   :  { %v560_v20 = vsel %vm558_vm4, %v554_v19, 0 }
 0x5a0   :  { %3273 = vmatpush3.bf16.msra.mxu1 %v560_v20 }
 0x5a1   :  { %3284 = vmatprep.subr.bf16.mxu1 %v4242_v15 }
 0x5a2   :  { %v531_v22 = vpop.xlane.xlu1 %530 }
 0x5a3   :  { %3983 = vrcp.f32 %v531_v22 }
 0x5a4   :  { %3985 = vrcp.f32 %v537_v18 }
 0x5a6   :  { %v651_v28 = vpop.permute.xlu1 %650 }
 0x5a7   :  { %v656_v32 = vsel %vm558_vm4, %v651_v28, 0 }
 0x5ad   :  { %v3984_v23 = vpop.eup %3983 }
 0x5ae   :  { %v545_v26 = vmul.f32 %v3984_v23, %v3978_v6  ;;  %v3986_v31 = vpop.eup %3985  ;;  %v3951_v23 = vld [vmem:[#allocation7] sm:$0xff]  }
 0x5af   :  { %v547_v33 = vmul.f32 %v3986_v31, %v3976_v4  ;;  %v764_v4 = vrot.slane %v4431_v40, %v4409_v25  ;;  %3305 = vmatpush3.bf16.msra.mxu0 %v3951_v23 }
 0x5b0   :  { %v549_v29 = vpack.c.bf16 %v545_v26, %v545_v26  ;;  %3306 = vmatprep.subr.bf16.mxu0 %v4242_v15 }
 0x5b1   :  { %v551_v34 = vpack.c.bf16 %v547_v33, %v547_v33 }
 0x5b2   :  { %3275 = vmatmul.mubr.msk.bf16.vlgmr.msra.gmra.mrb[8].mxu1 %vm504_vm3, %v549_v29 }
 0x5b3   :  { %3285 = vmatpush3.bf16.msra.mxu1 %v656_v32  ;;  %3286 = vmatprep.mubr.msk.bf16.mxu1 %vm4243_vm1, %v4242_v15 }
 0x5b4   :  { %3296 = vmatprep.subr.bf16.mxu1 %v4242_v15 }
 0x5ba   :  { %3287 = vmatmul.mubr.msk.bf16.vlgmr.msra.gmra.mrb[12].mxu1 %vm504_vm3, %v551_v34  ;;  %v4549_v34 = vsub.s32 4, %v4406_v24 }
 0x5bb   :  { %3300 = vmatprep.mubr.msk.bf16.mxu1 %vm4243_vm1, %v4242_v15  ;;  %3297 = vmatpush3.bf16.msra.mxu1 %v3949_v35 }
 0x5bc   :  { %3298 = vmatprep.subr.bf16.mxu1 %v4242_v15 }
 0x5bf   :  { %3299 = vmatpush3.bf16.msra.mxu1 %v3950_v38  ;;  %v852_v38 = vrot.slane %v4431_v40, %v4549_v34 }
 0x5c0   :  { %3312 = vmatprep.subr.bf16.mxu1 %v4242_v15 }
 0x648   :  { %v644_v41 = vpop.f32.mrb[12].mxu0 }
 0x649   :  { %v3282_v42 = vpop.f32.mrb[13].mxu0 }
 0x64a   :  { %v647_v43 = vpop.f32.mrb[14].mxu0  ;;  %v857_v42 = vsub.s32 5, %v4406_v24 }
 0x64b   :  { %v3283_v44 = vpop.f32.mrb[15].mxu0 }
 0x650   :  { %v740_v45 = vpop.f32.mrb[16].mxu0 }
 0x651   :  { %v3928_v46 = vpack.i.bf16 %v740_v45, %v644_v41  ;;  %v3294_v47 = vpop.f32.mrb[17].mxu0 }
 0x652   :  { %v743_v49 = vpop.f32.mrb[18].mxu0 }
 0x653   :  { %3929 = vrot.lane.b32.xlu1 %v3928_v46, %s4247_s25  ;;  %v3295_v51 = vpop.f32.mrb[19].mxu0  ;;  %v858_v46 = vrot.slane %v4431_v40, %v857_v42 }
 0x685   :  { %v596_v52 = vpop.f32.mrb[8].mxu1 }
 0x686   :  { %v3276_v54 = vpop.f32.mrb[9].mxu1 }
 0x687   :  { %v599_v56 = vpop.f32.mrb[10].mxu1  ;;  %v3953_v54 = vld [vmem:[%s5131_s5] sm:$0xff]  }
 0x688   :  { %v3277_v57 = vpop.f32.mrb[11].mxu1  ;;  %v3954_v56 = vld [vmem:[%s5131_s5 + $0x8] sm:$0xff]  }
 0x689   :  { %v3955_v57 = vld [vmem:[%s5131_s5 + $0x10] sm:$0xff]  }
 0x68d   :  { %v692_v58 = vpop.f32.mrb[12].mxu1 }
 0x68e   :  { %v3288_v59 = vpop.f32.mrb[13].mxu1 }
 0x68f   :  { %v695_v60 = vpop.f32.mrb[14].mxu1  ;;  %v869_v59 = vrot.slane %v4431_v40, %v4416_v30 }
 0x690   :  { %v3289_v61 = vpop.f32.mrb[15].mxu1 }
 0x6c5   :  { %v3930_v62 = vpop.permute.xlu1 %3929 }
 0x6c6   :  { %v3932_v63 = vunpack.i.h.bf16 %v3930_v62  ;;  %v3931_v0 = vunpack.i.l.bf16 %v3930_v62 }
 0x6c8   :  { %v754_v1 = vsel %vm292_vm2, %v596_v52, %v3931_v0  ;;  %v755_v2 = vsel %vm292_vm2, %v692_v58, %v3932_v63  ;;  %v3956_v58 = vld [vmem:[%s5131_s5 + $0x18] sm:$0xff]  }
 0x6c9   :  { %v760_v3 = vpack.c.bf16 %v755_v2, %v754_v1 }
 0x6cb   :  { %3301 = vmatmul.mubr.msk.bf16.vlgmr.msra.gmra.mrb[16].mxu1 %vm171_vm0, %v760_v3 }
 0x6cc   :  { %3320 = vmatprep.mubr.msk.bf16.mxu1 %vm4243_vm1, %v4242_v15  ;;  %3313 = vmatpush3.bf16.msra.mxu1 %v3953_v54 }
 0x6cd   :  { %3314 = vmatprep.subr.bf16.mxu1 %v4242_v15 }
 0x6d0   :  { %3315 = vmatpush3.bf16.msra.mxu1 %v3954_v56 }
 0x6d1   :  { %3316 = vmatprep.subr.bf16.mxu1 %v4242_v15 }
 0x6d4   :  { %3317 = vmatpush3.bf16.msra.mxu1 %v3955_v57 }
 0x6d5   :  { %3318 = vmatprep.subr.bf16.mxu1 %v4242_v15 }
 0x6d8   :  { %3319 = vmatpush3.bf16.msra.mxu1 %v3956_v58 }
 0x6d9   :  { %3338 = vmatprep.subr.bf16.mxu1 %v4242_v15 }
 0x79e   :  { %v814_v5 = vpop.f32.mrb[16].mxu1 }
 0x79f   :  { %v815_v6 = vadd.f32 %v814_v5, %v764_v4  ;;  %v3302_v7 = vpop.f32.mrb[17].mxu1 }
 0x7a0   :  { %v817_v50 = vpop.f32.mrb[18].mxu1 }
 0x7a1   :  { %v818_v53 = vadd.f32 %v817_v50, %v764_v4  ;;  %v3303_v8 = vpop.f32.mrb[19].mxu1  ;;  %v821_v9 = vadd.f32 %v815_v6, %v4419_v36 }
 0x7a3   :  { %v823_v10 = vsel %vm171_vm0, %v821_v9, 0.0  ;;  %v822_v11 = vadd.f32 %v818_v53, %v4421_v37  ;;  %v3952_v37 = vld [vmem:[#allocation7 + $0x8] sm:$0xff]  }
 0x7a4   :  { %824 = vadd.xlane.f32.xlu1 %v823_v10  ;;  %3307 = vmatpush3.bf16.msra.mxu0 %v3952_v37 }
 0x7a5   :  { %v826_v12 = vsel %vm171_vm0, %v822_v11, 0.0  ;;  %3324 = vmatprep.subr.bf16.mxu0 %v4242_v15 }
 0x7a6   :  { %827 = vadd.xlane.f32.xlu0 %v826_v12 }
 0x831   :  { %v825_v13 = vpop.xlane.xlu1 %824 }
 0x832   :  { %v829_v48 = vmul.f32 0.03125, %v825_v13 }
 0x833   :  { %v828_v55 = vpop.xlane.xlu0 %827 }
 0x834   :  { %v831_v14 = vsub.f32 %v821_v9, %v829_v48  ;;  %v830_v16 = vmul.f32 0.03125, %v828_v55 }
 0x836   :  { %v832_v18 = vsub.f32 %v822_v11, %v830_v16  ;;  %v833_v19 = vmul.f32 %v831_v14, %v831_v14 }
 0x838   :  { %v835_v20 = vsel %vm171_vm0, %v833_v19, 0.0  ;;  %v834_v22 = vmul.f32 %v832_v18, %v832_v18 }
 0x839   :  { %836 = vadd.xlane.f32.xlu0 %v835_v20 }
 0x83a   :  { %v838_v36 = vsel %vm171_vm0, %v834_v22, 0.0 }
 0x83d   :  { %839 = vadd.xlane.f32.xlu0 %v838_v36 }
 0x8c6   :  { %v837_v26 = vpop.xlane.xlu0 %836 }
 0x8c7   :  { %v841_v28 = vmul.f32 0.03125, %v837_v26 }
 0x8c9   :  { %v843_v29 = vadd.f32 1e-12, %v841_v28 }
 0x8ca   :  { %v840_v31 = vpop.xlane.xlu0 %839 }
 0x8cb   :  { %3987 = vrsqrt.f32 %v843_v29  ;;  %v842_v32 = vmul.f32 0.03125, %v840_v31 }
 0x8cd   :  { %v844_v33 = vadd.f32 1e-12, %v842_v32 }
 0x8cf   :  { %3989 = vrsqrt.f32 %v844_v33 }
 0x8d5   :  { %v3988_v35 = vpop.eup %3987 }
 0x8d6   :  { %v847_v41 = vmul.f32 %v3988_v35, %v831_v14 }
 0x8d8   :  { %v853_v44 = vmul.f32 %v852_v38, %v847_v41 }
 0x8d9   :  { %v3990_v43 = vpop.eup %3989 }
 0x8da   :  { %v848_v45 = vmul.f32 %v3990_v43, %v832_v18  ;;  %v4557_v49 = vadd.f32 %v858_v46, %v853_v44 }
 0x8dc   :  { %v854_v47 = vmul.f32 %v852_v38, %v848_v45 }
 0x8de   :  { %v4559_v51 = vadd.f32 %v858_v46, %v854_v47 }
 0x8e0   :  { %v865_v52 = vpack.c.bf16 %v4559_v51, %v4557_v49 }
 0x8e2   :  { %3309 = vmatmul.mubr.msk.bf16.vlgmr.msra.gmra.mrb[20].mxu0 %vm171_vm0, %v865_v52 }
 0x8e3   :  { %3328 = vmatprep.mubr.msk.bf16.mxu0 %vm4243_vm1, %v4242_v15 }
 0x9b5   :  { %v919_v60 = vpop.f32.mrb[20].mxu0 }
 0x9b6   :  { %v920_v61 = vadd.f32 %v919_v60, %v869_v59  ;;  %v3310_v62 = vpop.f32.mrb[21].mxu0 }
 0x9b7   :  { %v922_v63 = vpop.f32.mrb[22].mxu0 }
 0x9b8   :  { %v928_v0 = vmul.f32 0.70710677, %v920_v61  ;;  %v923_v1 = vadd.f32 %v922_v63, %v869_v59  ;;  %v3311_v2 = vpop.f32.mrb[23].mxu0  ;;  %v926_v60 = vmul.f32 0.5, %v920_v61 }
 0x9ba   :  { %v930_v3 = vand.u32 2147483647, %v928_v0  ;;  %v929_v4 = vmul.f32 0.70710677, %v923_v1  ;;  %vm968_vm5 = vcmp.ge.f32.partialorder %v928_v0, 0.0  ;;  %v927_v62 = vmul.f32 0.5, %v923_v1 }
 0x9bb   :  { %v4588_v0 = vsub.s32 3, %v4406_v24 }
 0x9bc   :  { %v932_v5 = vmul.f32 0.3275911, %v930_v3  ;;  %v931_v6 = vand.u32 2147483647, %v929_v4  ;;  %v956_v8 = vsub.f32 0.0, %v930_v3  ;;  %vm969_vm6 = vcmp.ge.f32.partialorder %v929_v4, 0.0 }
 0x9be   :  { %v934_v7 = vadd.f32 1.0, %v932_v5  ;;  %v933_v50 = vmul.f32 0.3275911, %v931_v6  ;;  %v957_v9 = vsub.f32 0.0, %v931_v6  ;;  %v958_v11 = vmul.f32 %v956_v8, %v930_v3 }
 0x9c0   :  { %3991 = vrcp.f32 %v934_v7  ;;  %v935_v53 = vadd.f32 1.0, %v933_v50  ;;  %v959_v55 = vmul.f32 %v957_v9, %v931_v6  ;;  %v960_v14 = vmul.f32 1.442695, %v958_v11 }
 0x9c1   :  { %v990_v6 = vrot.slane %v4431_v40, %v4588_v0 }
 0x9c2   :  { %3993 = vrcp.f32 %v935_v53  ;;  %v962_v22 = vmul.f32 1.442695, %v959_v55 }
 0x9c3   :  { %3995 = vpow2.f32 %v960_v14 }
 0x9c4   :  { %3997 = vpow2.f32 %v962_v22  ;;  %v3958_v22 = vld [vmem:[%s5128_s2 + $0x18] sm:$0xff]  }
 0x9ca   :  { %v3992_v10 = vpop.eup %3991 }
 0x9cb   :  { %v938_v12 = vmul.f32 1.0614054, %v3992_v10 }
 0x9cc   :  { %v3994_v13 = vpop.eup %3993 }
 0x9cd   :  { %v940_v48 = vadd.f32 -1.4531521, %v938_v12  ;;  %v939_v16 = vmul.f32 1.0614054, %v3994_v13  ;;  %v3996_v38 = vpop.eup %3995 }
 0x9ce   :  { %v3998_v45 = vpop.eup %3997 }
 0x9cf   :  { %v942_v18 = vmul.f32 %v3992_v10, %v940_v48  ;;  %v941_v19 = vadd.f32 -1.4531521, %v939_v16 }
 0x9d1   :  { %v944_v20 = vadd.f32 1.4214138, %v942_v18  ;;  %v943_v36 = vmul.f32 %v3994_v13, %v941_v19 }
 0x9d3   :  { %v946_v23 = vmul.f32 %v3992_v10, %v944_v20  ;;  %v945_v37 = vadd.f32 1.4214138, %v943_v36 }
 0x9d5   :  { %v948_v26 = vadd.f32 -0.28449672, %v946_v23  ;;  %v947_v28 = vmul.f32 %v3994_v13, %v945_v37 }
 0x9d7   :  { %v950_v29 = vmul.f32 %v3992_v10, %v948_v26  ;;  %v949_v31 = vadd.f32 -0.28449672, %v947_v28 }
 0x9d9   :  { %v952_v32 = vadd.f32 0.2548296, %v950_v29  ;;  %v951_v33 = vmul.f32 %v3994_v13, %v949_v31  ;;  %v1090_v31 = vsub.s32 6, %v4406_v24 }
 0x9db   :  { %v954_v35 = vmul.f32 %v3992_v10, %v952_v32  ;;  %v953_v41 = vadd.f32 0.2548296, %v951_v33  ;;  %v1091_v32 = vrot.slane %v4431_v40, %v1090_v31  ;;  %v1096_v33 = vsub.s32 7, %v4406_v24 }
 0x9dd   :  { %v964_v43 = vmul.f32 %v3996_v38, %v954_v35  ;;  %v955_v44 = vmul.f32 %v3994_v13, %v953_v41 }
 0x9df   :  { %v966_v46 = vsub.f32 1.0, %v964_v43  ;;  %v965_v47 = vmul.f32 %v3998_v45, %v955_v44  ;;  %v1097_v45 = vrot.slane %v4431_v40, %v1096_v33 }
 0x9e1   :  { %v970_v52 = vsub.f32 0.0, %v966_v46  ;;  %v967_v54 = vsub.f32 1.0, %v965_v47 }
 0x9e3   :  { %v972_v56 = vsel %vm968_vm5, %v966_v46, %v970_v52  ;;  %v971_v57 = vsub.f32 0.0, %v967_v54  ;;  %vm2220_vm5 = vcmask 58368  }
 0x9e4   :  { %v974_v58 = vadd.f32 1.0, %v972_v56  ;;  %v4623_v56 = vld [vmem:[#allocation8 + $0x8] sm:$0xff] }
 0x9e5   :  { %v973_v59 = vsel %vm969_vm6, %v967_v54, %v971_v57  ;;  %v1111_v57 = vrot.slane %v4623_v56, %v4429_v39 }
 0x9e6   :  { %v975_v63 = vadd.f32 1.0, %v973_v59  ;;  %v976_v2 = vmul.f32 %v974_v58, %v926_v60 }
 0x9e8   :  { %v977_v3 = vmul.f32 %v975_v63, %v927_v62 }
 0x9ea   :  { %v986_v5 = vpack.c.bf16 %v977_v3, %v976_v2 }
 0x9ec   :  { %3321 = vmatmul.mubr.msk.bf16.vlgmr.msra.gmra.mrb[20].mxu1 %vm1015_vm7, %v986_v5 }
 0x9ed   :  { %3340 = vmatprep.mubr.msk.bf16.mxu1 %vm4243_vm1, %v4242_v15 }
 0xabf   :  { %v1053_v4 = vpop.f32.mrb[20].mxu1 }
 0xac0   :  { %v1054_v7 = vadd.f32 %v1053_v4, %v990_v6  ;;  %v3322_v61 = vpop.f32.mrb[21].mxu1 }
 0xac1   :  { %v1056_v1 = vpop.f32.mrb[22].mxu1 }
 0xac2   :  { %v1057_v50 = vadd.f32 %v1056_v1, %v990_v6  ;;  %v3323_v53 = vpop.f32.mrb[23].mxu1  ;;  %v1060_v8 = vadd.f32 %v1054_v7, %v4557_v49 }
 0xac4   :  { %v1062_v9 = vsel %vm171_vm0, %v1060_v8, 0.0  ;;  %v1061_v10 = vadd.f32 %v1057_v50, %v4559_v51  ;;  %v3957_v51 = vld [vmem:[%s5128_s2 + $0x10] sm:$0xff]  }
 0xac5   :  { %1063 = vadd.xlane.f32.xlu1 %v1062_v9  ;;  %3325 = vmatpush3.bf16.msra.mxu0 %v3957_v51 }
 0xac6   :  { %v1065_v11 = vsel %vm171_vm0, %v1061_v10, 0.0  ;;  %3326 = vmatprep.subr.bf16.mxu0 %v4242_v15 }
 0xac7   :  { %1066 = vadd.xlane.f32.xlu0 %v1065_v11 }
 0xac9   :  { %3327 = vmatpush3.bf16.msra.mxu0 %v3958_v22 }
 0xaca   :  { %3332 = vmatprep.subr.bf16.mxu0 %v4242_v15 }
 0xb52   :  { %v1064_v12 = vpop.xlane.xlu1 %1063 }
 0xb53   :  { %v1068_v13 = vmul.f32 0.03125, %v1064_v12 }
 0xb54   :  { %v1067_v48 = vpop.xlane.xlu0 %1066 }
 0xb55   :  { %v1070_v55 = vsub.f32 %v1060_v8, %v1068_v13  ;;  %v1069_v14 = vmul.f32 0.03125, %v1067_v48 }
 0xb57   :  { %v1071_v16 = vsub.f32 %v1061_v10, %v1069_v14  ;;  %v1072_v18 = vmul.f32 %v1070_v55, %v1070_v55 }
 0xb59   :  { %v1074_v19 = vsel %vm171_vm0, %v1072_v18, 0.0  ;;  %v1073_v20 = vmul.f32 %v1071_v16, %v1071_v16 }
 0xb5a   :  { %1075 = vadd.xlane.f32.xlu1 %v1074_v19 }
 0xb5b   :  { %v1077_v49 = vsel %vm171_vm0, %v1073_v20, 0.0 }
 0xb5c   :  { %1078 = vadd.xlane.f32.xlu0 %v1077_v49 }
 0xbe7   :  { %v1076_v36 = vpop.xlane.xlu1 %1075 }
 0xbe8   :  { %v1080_v23 = vmul.f32 0.03125, %v1076_v36 }
 0xbe9   :  { %v1079_v37 = vpop.xlane.xlu0 %1078 }
 0xbea   :  { %v1082_v26 = vadd.f32 1e-12, %v1080_v23  ;;  %v1081_v28 = vmul.f32 0.03125, %v1079_v37 }
 0xbec   :  { %3999 = vrsqrt.f32 %v1082_v26  ;;  %v1083_v29 = vadd.f32 1e-12, %v1081_v28 }
 0xbee   :  { %4001 = vrsqrt.f32 %v1083_v29 }
 0xbf6   :  { %v4000_v35 = vpop.eup %3999 }
 0xbf7   :  { %v1086_v38 = vmul.f32 %v4000_v35, %v1070_v55 }
 0xbf8   :  { %v4002_v41 = vpop.eup %4001 }
 0xbf9   :  { %v1092_v43 = vmul.f32 %v1091_v32, %v1086_v38  ;;  %v1087_v44 = vmul.f32 %v4002_v41, %v1071_v16 }
 0xbfb   :  { %v1093_v46 = vmul.f32 %v1091_v32, %v1087_v44  ;;  %v4614_v47 = vadd.f32 %v1097_v45, %v1092_v43 }
 0xbfd   :  { %v4616_v52 = vadd.f32 %v1097_v45, %v1093_v46 }
 0xbff   :  { %v1107_v54 = vpack.c.bf16 %v4616_v52, %v4614_v47 }
 0xc01   :  { %3329 = vmatmul.mubr.msk.bf16.vlgmr.msra.gmra.mrb[24].mxu0 %vm171_vm0, %v1107_v54 }
 0xc02   :  { %3334 = vmatprep.mubr.msk.bf16.mxu0 %vm4243_vm1, %v4242_v15 }
 0xcd4   :  { %v1161_v58 = vpop.f32.mrb[24].mxu0 }
 0xcd5   :  { %v1162_v40 = vadd.f32 %v1161_v58, %v1111_v57  ;;  %v3330_v59 = vpop.f32.mrb[25].mxu0 }
 0xcd6   :  { %v1164_v60 = vpop.f32.mrb[26].mxu0 }
 0xcd7   :  { %v1165_v62 = vadd.f32 %v1164_v60, %v1111_v57  ;;  %1170 = vrot.lane.b32.xlu1 %v1162_v40, %s4244_s20  ;;  %v3331_v63 = vpop.f32.mrb[27].mxu0  ;;  %v4641_v7 = vpack.c.bf16 %v1162_v40, %v1162_v40 }
 0xcd9   :  { %1172 = vrot.lane.b32.xlu0 %v1165_v62, %s4244_s20  ;;  %v4629_v2 = vpack.c.bf16 %v1165_v62, %v1165_v62 }
 0xcdd   :  { %1279 = vrot.lane.b32.xlu0 %v4629_v2, %s4245_s28 }
 0xd49   :  { %v1171_v3 = vpop.permute.xlu1 %1170 }
 0xd4a   :  { %v4633_v5 = vpack.c.bf16 %v1171_v3, %v1171_v3 }
 0xd4b   :  { %v1173_v6 = vpop.permute.xlu0 %1172 }
 0xd4c   :  { %1230 = vrot.lane.b32.xlu1 %v4633_v5, %s4245_s28  ;;  %v4637_v4 = vpack.c.bf16 %v1173_v6, %v1173_v6 }
 0xd4f   :  { %v1280_v10 = vpop.permute.xlu0 %1279 }
 0xd50   :  { %1328 = vrot.lane.b32.xlu1 %v4637_v4, %s4245_s28  ;;  %v1285_v11 = vsel %vm292_vm2, %v1280_v10, 0 }
 0xd54   :  { %1181 = vrot.lane.b32.xlu1 %v4641_v7, %s4245_s28 }
 0xdbe   :  { %v1231_v61 = vpop.permute.xlu1 %1230 }
 0xdbf   :  { %v1236_v1 = vsel %vm292_vm2, %v1231_v61, 0 }
 0xdc0   :  { %3339 = vmatpush3.bf16.xpose.msra.mxu1 %v1236_v1 }
 0xdc1   :  { %3350 = vmatprep.subr.bf16.mxu1 %v4242_v15 }
 0xdc2   :  { %v1329_v50 = vpop.permute.xlu1 %1328 }
 0xdc3   :  { %v1334_v8 = vsel %vm292_vm2, %v1329_v50, 0 }
 0xdc6   :  { %v1182_v53 = vpop.permute.xlu1 %1181 }
 0xdc7   :  { %v1187_v9 = vsel %vm292_vm2, %v1182_v53, 0  ;;  %3341 = vmatmul.mubr.msk.bf16.vlgmr.msra.gmra.mrb[24].mxu1 %vm292_vm2, %v4633_v5 }
 0xdc8   :  { %3333 = vmatpush3.bf16.xpose.msra.mxu0 %v1187_v9  ;;  %3351 = vmatpush3.bf16.xpose.msra.mxu1 %v1334_v8 }
 0xdc9   :  { %3352 = vmatprep.mubr.msk.bf16.mxu1 %vm4243_vm1, %v4242_v15  ;;  %3344 = vmatprep.subr.bf16.mxu0 %v4242_v15 }
 0xdca   :  { %3362 = vmatprep.subr.bf16.mxu1 %v4242_v15 }
 0xdcf   :  { %3335 = vmatmul.mubr.msk.bf16.vlgmr.msra.gmra.mrb[28].mxu0 %vm292_vm2, %v4641_v7  ;;  %3353 = vmatmul.mubr.msk.bf16.vlgmr.msra.gmra.mrb[28].mxu1 %vm292_vm2, %v4637_v4 }
 0xdd0   :  { %3345 = vmatpush3.bf16.xpose.msra.mxu0 %v1285_v11  ;;  %3346 = vmatprep.mubr.msk.bf16.mxu0 %vm4243_vm1, %v4242_v15 }
 0xdd1   :  { %3364 = vmatprep.mubr.msk.bf16.mxu1 %vm4243_vm1, %v4242_v15  ;;  %3356 = vmatprep.subr.bf16.mxu0 %v4242_v15 }
 0xdd7   :  { %3347 = vmatmul.mubr.msk.bf16.vlgmr.msra.gmra.mrb[32].mxu0 %vm292_vm2, %v4629_v2 }
 0xdd8   :  { %3358 = vmatprep.mubr.msk.bf16.mxu0 %vm4243_vm1, %v4242_v15 }
 0xe9a   :  { %v1272_v12 = vpop.f32.mrb[24].mxu1 }
 0xe9b   :  { %v1377_v13 = vmul.f32 0.25, %v1272_v12  ;;  %v3342_v48 = vpop.f32.mrb[25].mxu1 }
 0xe9c   :  { %v1275_v55 = vpop.f32.mrb[26].mxu1 }
 0xe9d   :  { %v3343_v14 = vpop.f32.mrb[27].mxu1  ;;  %v1381_v16 = vadd.f32 %v1377_v13, %v4479_v17 }
 0xe9f   :  { %v1387_v18 = vsel %vm504_vm3, %v1381_v16, -inf }
 0xea0   :  { %1388 = vmax.xlane.f32.xlu1 %v1387_v18 }
 0xea2   :  { %v1223_v19 = vpop.f32.mrb[28].mxu0  ;;  %v1370_v20 = vpop.f32.mrb[28].mxu1 }
 0xea3   :  { %v1376_v49 = vmul.f32 0.25, %v1223_v19  ;;  %v1379_v51 = vmul.f32 0.25, %v1370_v20  ;;  %v3336_v22 = vpop.f32.mrb[29].mxu0  ;;  %v3354_v36 = vpop.f32.mrb[29].mxu1 }
 0xea4   :  { %v1226_v23 = vpop.f32.mrb[30].mxu0  ;;  %v1373_v37 = vpop.f32.mrb[30].mxu1 }
 0xea5   :  { %v3337_v26 = vpop.f32.mrb[31].mxu0  ;;  %v3355_v28 = vpop.f32.mrb[31].mxu1  ;;  %v1383_v29 = vadd.f32 %v1379_v51, %v4485_v27  ;;  %v1380_v35 = vadd.f32 %v1376_v49, %v4479_v17 }
 0xea7   :  { %v1393_v32 = vsel %vm504_vm3, %v1383_v29, -inf  ;;  %v1384_v44 = vsel %vm504_vm3, %v1380_v35, -inf }
 0xea8   :  { %1394 = vmax.xlane.f32.xlu0 %v1393_v32 }
 0xeaa   :  { %v1321_v38 = vpop.f32.mrb[32].mxu0 }
 0xeab   :  { %v1378_v41 = vmul.f32 0.25, %v1321_v38  ;;  %v3348_v43 = vpop.f32.mrb[33].mxu0 }
 0xeac   :  { %v1324_v45 = vpop.f32.mrb[34].mxu0  ;;  %1385 = vmax.xlane.f32.xlu0 %v1384_v44  ;;  %v3959_v43 = vld [vmem:[%s5129_s3 + $0x10] sm:$0xff]   ;;  %v3960_v44 = vld [vmem:[%s5129_s3 + $0x18] sm:$0xff]  }
 0xead   :  { %v3349_v46 = vpop.f32.mrb[35].mxu0  ;;  %v1382_v54 = vadd.f32 %v1378_v41, %v4485_v27 }
 0xeaf   :  { %v1390_v57 = vsel %vm504_vm3, %v1382_v54, -inf }
 0xeb0   :  { %1391 = vmax.xlane.f32.xlu0 %v1390_v57 }
 0xf2d   :  { %v1389_v58 = vpop.xlane.xlu1 %1388 }
 0xf2e   :  { %v1397_v40 = vsub.f32 %v1381_v16, %v1389_v58 }
 0xf30   :  { %v1402_v59 = vmul.f32 1.442695, %v1397_v40 }
 0xf32   :  { %4003 = vpow2.f32 %v1402_v59 }
 0xf35   :  { %v1395_v60 = vpop.xlane.xlu0 %1394 }
 0xf36   :  { %v1399_v17 = vsub.f32 %v1383_v29, %v1395_v60 }
 0xf38   :  { %v1406_v62 = vmul.f32 1.442695, %v1399_v17 }
 0xf39   :  { %v1386_v27 = vpop.xlane.xlu0 %1385 }
 0xf3a   :  { %4005 = vpow2.f32 %v1406_v62  ;;  %v1396_v1 = vsub.f32 %v1380_v35, %v1386_v27 }
 0xf3c   :  { %v4004_v63 = vpop.eup %4003  ;;  %v1400_v50 = vmul.f32 1.442695, %v1396_v1 }
 0xf3d   :  { %v1411_v3 = vsel %vm504_vm3, %v4004_v63, 0.0  ;;  %v1392_v53 = vpop.xlane.xlu0 %1391 }
 0xf3e   :  { %1412 = vadd.xlane.f32.xlu1 %v1411_v3  ;;  %4007 = vpow2.f32 %v1400_v50  ;;  %v1398_v8 = vsub.f32 %v1382_v54, %v1392_v53 }
 0xf40   :  { %v1404_v9 = vmul.f32 1.442695, %v1398_v8 }
 0xf42   :  { %4009 = vpow2.f32 %v1404_v9 }
 0xf44   :  { %v4006_v6 = vpop.eup %4005 }
 0xf45   :  { %v1417_v61 = vsel %vm504_vm3, %v4006_v6, 0.0 }
 0xf46   :  { %1418 = vadd.xlane.f32.xlu0 %v1417_v61 }
 0xf48   :  { %v4008_v10 = vpop.eup %4007 }
 0xf49   :  { %v1408_v11 = vsel %vm504_vm3, %v4008_v10, 0.0 }
 0xf4c   :  { %v4010_v12 = vpop.eup %4009 }
 0xf4d   :  { %v1414_v13 = vsel %vm504_vm3, %v4010_v12, 0.0 }
 0xf4f   :  { %1480 = vrot.lane.b32.xlu1 %v4633_v5, %s4239_s0 }
 0xf5c   :  { %1576 = vrot.lane.b32.xlu0 %v4637_v4, %s4239_s0 }
 0xf73   :  { %1409 = vadd.xlane.f32.xlu1 %v1408_v11 }
 0xf7b   :  { %1415 = vadd.xlane.f32.xlu0 %v1414_v13  ;;  %v1643_v13 = vrot.slane %v4623_v56, %v4409_v25 }
 0xf84   :  { %1432 = vrot.lane.b32.xlu1 %v4641_v7, %s4239_s0 }
 0xf91   :  { %1528 = vrot.lane.b32.xlu0 %v4629_v2, %s4239_s0 }
 0xfcb   :  { %v1413_v5 = vpop.xlane.xlu1 %1412 }
 0xfcc   :  { %4011 = vrcp.f32 %v1413_v5 }
 0xfcf   :  { %v1481_v4 = vpop.permute.xlu1 %1480 }
 0xfd0   :  { %v1486_v48 = vsel %vm558_vm4, %v1481_v4, 0 }
 0xfd1   :  { %3363 = vmatpush3.bf16.msra.mxu1 %v1486_v48 }
 0xfd2   :  { %3374 = vmatprep.subr.bf16.mxu1 %v4242_v15 }
 0xfd3   :  { %v1419_v55 = vpop.xlane.xlu0 %1418 }
 0xfd4   :  { %4013 = vrcp.f32 %v1419_v55 }
 0xfd6   :  { %v4012_v14 = vpop.eup %4011 }
 0xfd7   :  { %v1425_v16 = vmul.f32 %v4012_v14, %v4004_v63  ;;  %v1577_v18 = vpop.permute.xlu0 %1576 }
 0xfd8   :  { %v1582_v20 = vsel %vm558_vm4, %v1577_v18, 0 }
 0xfd9   :  { %v1429_v19 = vpack.c.bf16 %v1425_v16, %v1425_v16 }
 0xfdb   :  { %3365 = vmatmul.mubr.msk.bf16.vlgmr.msra.gmra.mrb[32].mxu1 %vm504_vm3, %v1429_v19 }
 0xfdc   :  { %3375 = vmatpush3.bf16.msra.mxu1 %v1582_v20  ;;  %3376 = vmatprep.mubr.msk.bf16.mxu1 %vm4243_vm1, %v4242_v15 }
 0xfdd   :  { %3388 = vmatprep.subr.bf16.mxu1 %v4242_v15 }
 0xfde   :  { %v4014_v2 = vpop.eup %4013 }
 0xfdf   :  { %v1427_v7 = vmul.f32 %v4014_v2, %v4006_v6 }
 0xfe1   :  { %v1431_v49 = vpack.c.bf16 %v1427_v7, %v1427_v7 }
 0xfe3   :  { %3377 = vmatmul.mubr.msk.bf16.vlgmr.msra.gmra.mrb[36].mxu1 %vm504_vm3, %v1431_v49 }
 0xfe4   :  { %3392 = vmatprep.mubr.msk.bf16.mxu1 %vm4243_vm1, %v4242_v15 }
0x1000   :  { %v1410_v51 = vpop.xlane.xlu1 %1409 }
0x1001   :  { %4015 = vrcp.f32 %v1410_v51 }
0x1004   :  { %v1433_v22 = vpop.permute.xlu1 %1432 }
0x1005   :  { %v1438_v36 = vsel %vm558_vm4, %v1433_v22, 0 }
0x1006   :  { %3357 = vmatpush3.bf16.msra.mxu0 %v1438_v36 }
0x1007   :  { %3368 = vmatprep.subr.bf16.mxu0 %v4242_v15 }
0x1008   :  { %v1416_v23 = vpop.xlane.xlu0 %1415 }
0x1009   :  { %4017 = vrcp.f32 %v1416_v23 }
0x100b   :  { %v4016_v37 = vpop.eup %4015 }
0x100c   :  { %v1424_v26 = vmul.f32 %v4016_v37, %v4008_v10  ;;  %v1529_v28 = vpop.permute.xlu0 %1528 }
0x100d   :  { %v1534_v32 = vsel %vm558_vm4, %v1529_v28, 0 }
0x100e   :  { %v1428_v29 = vpack.c.bf16 %v1424_v26, %v1424_v26 }
0x1010   :  { %3359 = vmatmul.mubr.msk.bf16.vlgmr.msra.gmra.mrb[36].mxu0 %vm504_vm3, %v1428_v29  ;;  %v3961_v29 = vld [vmem:[#allocation7 + $0x10] sm:$0xff]  }
0x1011   :  { %3369 = vmatpush3.bf16.msra.mxu0 %v1534_v32  ;;  %3370 = vmatprep.mubr.msk.bf16.mxu0 %vm4243_vm1, %v4242_v15 }
0x1012   :  { %3380 = vmatprep.subr.bf16.mxu0 %v4242_v15  ;;  %3389 = vmatpush3.bf16.msra.mxu1 %v3961_v29 }
0x1013   :  { %v4018_v35 = vpop.eup %4017  ;;  %3390 = vmatprep.subr.bf16.mxu1 %v4242_v15 }
0x1014   :  { %v1426_v38 = vmul.f32 %v4018_v35, %v4010_v12 }
0x1016   :  { %v1430_v41 = vpack.c.bf16 %v1426_v38, %v1426_v38 }
0x1018   :  { %3371 = vmatmul.mubr.msk.bf16.vlgmr.msra.gmra.mrb[40].mxu0 %vm504_vm3, %v1430_v41 }
0x1019   :  { %3384 = vmatprep.mubr.msk.bf16.mxu0 %vm4243_vm1, %v4242_v15  ;;  %3381 = vmatpush3.bf16.msra.mxu0 %v3959_v43 }
0x101a   :  { %3382 = vmatprep.subr.bf16.mxu0 %v4242_v15 }
0x101d   :  { %3383 = vmatpush3.bf16.msra.mxu0 %v3960_v44 }
0x101e   :  { %3396 = vmatprep.subr.bf16.mxu0 %v4242_v15 }
0x10ae   :  { %v1522_v45 = vpop.f32.mrb[32].mxu1 }
0x10af   :  { %v3366_v46 = vpop.f32.mrb[33].mxu1 }
0x10b0   :  { %v1525_v54 = vpop.f32.mrb[34].mxu1 }
0x10b1   :  { %v3367_v57 = vpop.f32.mrb[35].mxu1 }
0x10b6   :  { %v1618_v58 = vpop.f32.mrb[36].mxu1 }
0x10b7   :  { %v3933_v40 = vpack.i.bf16 %v1618_v58, %v1522_v45  ;;  %v3378_v59 = vpop.f32.mrb[37].mxu1  ;;  %v1731_v45 = vrot.slane %v4623_v56, %v4549_v34 }
0x10b8   :  { %v1621_v60 = vpop.f32.mrb[38].mxu1  ;;  %v1737_v59 = vrot.slane %v4623_v56, %v857_v42  ;;  %v3964_v42 = vld [vmem:[%s5131_s5 + $0x28] sm:$0xff]  }
0x10b9   :  { %3934 = vrot.lane.b32.xlu1 %v3933_v40, %s4247_s25  ;;  %v3379_v17 = vpop.f32.mrb[39].mxu1 }
0x10e3   :  { %v1474_v62 = vpop.f32.mrb[36].mxu0 }
0x10e4   :  { %v3360_v63 = vpop.f32.mrb[37].mxu0 }
0x10e5   :  { %v1477_v3 = vpop.f32.mrb[38].mxu0 }
0x10e6   :  { %v3361_v6 = vpop.f32.mrb[39].mxu0  ;;  %v3963_v3 = vld [vmem:[%s5131_s5 + $0x20] sm:$0xff]  }
0x10e7   :  { %v3965_v6 = vld [vmem:[%s5131_s5 + $0x30] sm:$0xff]  }
0x10eb   :  { %v1570_v61 = vpop.f32.mrb[40].mxu0 }
0x10ec   :  { %v3372_v27 = vpop.f32.mrb[41].mxu0 }
0x10ed   :  { %v1573_v1 = vpop.f32.mrb[42].mxu0  ;;  %v1749_v27 = vrot.slane %v4623_v56, %v4416_v30 }
0x10ee   :  { %v3373_v50 = vpop.f32.mrb[43].mxu0 }
0x112b   :  { %v3935_v53 = vpop.permute.xlu1 %3934 }
0x112c   :  { %v3937_v8 = vunpack.i.h.bf16 %v3935_v53  ;;  %v3936_v9 = vunpack.i.l.bf16 %v3935_v53 }
0x112e   :  { %v1633_v10 = vsel %vm292_vm2, %v1570_v61, %v3937_v8  ;;  %v1632_v11 = vsel %vm292_vm2, %v1474_v62, %v3936_v9  ;;  %v3966_v61 = vld [vmem:[%s5131_s5 + $0x38] sm:$0xff]  }
0x112f   :  { %v1639_v12 = vpack.c.bf16 %v1633_v10, %v1632_v11 }
0x1131   :  { %3385 = vmatmul.mubr.msk.bf16.vlgmr.msra.gmra.mrb[44].mxu0 %vm171_vm0, %v1639_v12 }
0x1132   :  { %3404 = vmatprep.mubr.msk.bf16.mxu0 %vm4243_vm1, %v4242_v15  ;;  %3397 = vmatpush3.bf16.msra.mxu0 %v3963_v3 }
0x1133   :  { %3398 = vmatprep.subr.bf16.mxu0 %v4242_v15 }
0x1136   :  { %3399 = vmatpush3.bf16.msra.mxu0 %v3964_v42 }
0x1137   :  { %3400 = vmatprep.subr.bf16.mxu0 %v4242_v15 }
0x113a   :  { %3401 = vmatpush3.bf16.msra.mxu0 %v3965_v6 }
0x113b   :  { %3402 = vmatprep.subr.bf16.mxu0 %v4242_v15 }
0x113e   :  { %3403 = vmatpush3.bf16.msra.mxu0 %v3966_v61 }
0x1204   :  { %v1693_v5 = vpop.f32.mrb[44].mxu0 }
0x1205   :  { %v1694_v4 = vadd.f32 %v1693_v5, %v1643_v13  ;;  %v3386_v48 = vpop.f32.mrb[45].mxu0 }
0x1206   :  { %v1696_v55 = vpop.f32.mrb[46].mxu0 }
0x1207   :  { %v1697_v14 = vadd.f32 %v1696_v55, %v1643_v13  ;;  %v3387_v16 = vpop.f32.mrb[47].mxu0  ;;  %v1700_v18 = vadd.f32 %v1694_v4, %v4614_v47 }
0x1209   :  { %v1702_v19 = vsel %vm171_vm0, %v1700_v18, 0.0  ;;  %v1701_v20 = vadd.f32 %v1697_v14, %v4616_v52  ;;  %v3962_v52 = vld [vmem:[#allocation7 + $0x18] sm:$0xff]  }
0x120a   :  { %1703 = vadd.xlane.f32.xlu1 %v1702_v19  ;;  %3391 = vmatpush3.bf16.msra.mxu1 %v3962_v52 }
0x120b   :  { %v1705_v2 = vsel %vm171_vm0, %v1701_v20, 0.0  ;;  %3408 = vmatprep.subr.bf16.mxu1 %v4242_v15 }
0x120c   :  { %1706 = vadd.xlane.f32.xlu0 %v1705_v2 }
0x1297   :  { %v1704_v7 = vpop.xlane.xlu1 %1703 }
0x1298   :  { %v1708_v49 = vmul.f32 0.03125, %v1704_v7 }
0x1299   :  { %v1707_v51 = vpop.xlane.xlu0 %1706 }
0x129a   :  { %v1710_v22 = vsub.f32 %v1700_v18, %v1708_v49  ;;  %v1709_v36 = vmul.f32 0.03125, %v1707_v51 }
0x129c   :  { %v1711_v23 = vsub.f32 %v1701_v20, %v1709_v36  ;;  %v1712_v37 = vmul.f32 %v1710_v22, %v1710_v22 }
0x129e   :  { %v1714_v26 = vsel %vm171_vm0, %v1712_v37, 0.0  ;;  %v1713_v28 = vmul.f32 %v1711_v23, %v1711_v23 }
0x129f   :  { %1715 = vadd.xlane.f32.xlu0 %v1714_v26 }
0x12a0   :  { %v1717_v47 = vsel %vm171_vm0, %v1713_v28, 0.0 }
0x12a1   :  { %1718 = vadd.xlane.f32.xlu1 %v1717_v47 }
0x132c   :  { %v1716_v32 = vpop.xlane.xlu0 %1715 }
0x132d   :  { %v1720_v35 = vmul.f32 0.03125, %v1716_v32 }
0x132e   :  { %v1719_v38 = vpop.xlane.xlu1 %1718 }
0x132f   :  { %v1722_v41 = vadd.f32 1e-12, %v1720_v35  ;;  %v1721_v43 = vmul.f32 0.03125, %v1719_v38 }
0x1331   :  { %4019 = vrsqrt.f32 %v1722_v41  ;;  %v1723_v44 = vadd.f32 1e-12, %v1721_v43 }
0x1333   :  { %4021 = vrsqrt.f32 %v1723_v44 }
0x133b   :  { %v4020_v46 = vpop.eup %4019 }
0x133c   :  { %v1726_v54 = vmul.f32 %v4020_v46, %v1710_v22 }
0x133d   :  { %v4022_v57 = vpop.eup %4021 }
0x133e   :  { %v1732_v58 = vmul.f32 %v1731_v45, %v1726_v54  ;;  %v1727_v40 = vmul.f32 %v4022_v57, %v1711_v23 }
0x1340   :  { %v1733_v60 = vmul.f32 %v1731_v45, %v1727_v40  ;;  %v4738_v17 = vadd.f32 %v1737_v59, %v1732_v58 }
0x1342   :  { %v4740_v62 = vadd.f32 %v1737_v59, %v1733_v60 }
0x1344   :  { %v1745_v63 = vpack.c.bf16 %v4740_v62, %v4738_v17 }
0x1346   :  { %3393 = vmatmul.mubr.msk.bf16.vlgmr.msra.gmra.mrb[40].mxu1 %vm171_vm0, %v1745_v63 }
0x1347   :  { %3412 = vmatprep.mubr.msk.bf16.mxu1 %vm4243_vm1, %v4242_v15 }
0x1419   :  { %v1799_v1 = vpop.f32.mrb[40].mxu1 }
0x141a   :  { %v1800_v50 = vadd.f32 %v1799_v1, %v1749_v27  ;;  %v3394_v53 = vpop.f32.mrb[41].mxu1 }
0x141b   :  { %v1802_v8 = vpop.f32.mrb[42].mxu1 }
0x141c   :  { %v1808_v9 = vmul.f32 0.70710677, %v1800_v50  ;;  %v1803_v10 = vadd.f32 %v1802_v8, %v1749_v27  ;;  %v3395_v11 = vpop.f32.mrb[43].mxu1  ;;  %v1806_v27 = vmul.f32 0.5, %v1800_v50 }
0x141e   :  { %v1810_v12 = vand.u32 2147483647, %v1808_v9  ;;  %v1809_v13 = vmul.f32 0.70710677, %v1803_v10  ;;  %vm1848_vm8 = vcmp.ge.f32.partialorder %v1808_v9, 0.0  ;;  %v1807_v1 = vmul.f32 0.5, %v1803_v10 }
0x141f   :  { %v1871_v9 = vrot.slane %v4623_v56, %v4588_v0 }
0x1420   :  { %v1812_v5 = vmul.f32 0.3275911, %v1810_v12  ;;  %v1811_v4 = vand.u32 2147483647, %v1809_v13  ;;  %v1836_v16 = vsub.f32 0.0, %v1810_v12  ;;  %vm1849_vm9 = vcmp.ge.f32.partialorder %v1809_v13, 0.0 }
0x1422   :  { %v1814_v48 = vadd.f32 1.0, %v1812_v5  ;;  %v1813_v55 = vmul.f32 0.3275911, %v1811_v4  ;;  %v1837_v18 = vsub.f32 0.0, %v1811_v4  ;;  %v1838_v30 = vmul.f32 %v1836_v16, %v1810_v12 }
0x1424   :  { %4023 = vrcp.f32 %v1814_v48  ;;  %v1815_v14 = vadd.f32 1.0, %v1813_v55  ;;  %v1839_v49 = vmul.f32 %v1837_v18, %v1811_v4  ;;  %v1840_v51 = vmul.f32 1.442695, %v1838_v30 }
0x1426   :  { %4025 = vrcp.f32 %v1815_v14  ;;  %v1842_v26 = vmul.f32 1.442695, %v1839_v49 }
0x1427   :  { %4027 = vpow2.f32 %v1840_v51 }
0x1428   :  { %4029 = vpow2.f32 %v1842_v26  ;;  %v108_v26 = vld [vmem:[%s5133_s7 + $0x10] sm:$0xff] }
0x142e   :  { %v4024_v19 = vpop.eup %4023 }
0x142f   :  { %v1818_v20 = vmul.f32 1.0614054, %v4024_v19 }
0x1430   :  { %v4026_v2 = vpop.eup %4025 }
0x1431   :  { %v1820_v7 = vadd.f32 -1.4531521, %v1818_v20  ;;  %v1819_v22 = vmul.f32 1.0614054, %v4026_v2  ;;  %v4028_v45 = vpop.eup %4027 }
0x1432   :  { %v4030_v58 = vpop.eup %4029 }
0x1433   :  { %v1822_v36 = vmul.f32 %v4024_v19, %v1820_v7  ;;  %v1821_v23 = vadd.f32 -1.4531521, %v1819_v22 }
0x1435   :  { %v1824_v37 = vadd.f32 1.4214138, %v1822_v36  ;;  %v1823_v28 = vmul.f32 %v4026_v2, %v1821_v23  ;;  %v107_v23 = vld [vmem:[%s5133_s7 + $0x8] sm:$0xff] }
0x1437   :  { %v1826_v47 = vmul.f32 %v4024_v19, %v1824_v37  ;;  %v1825_v29 = vadd.f32 1.4214138, %v1823_v28  ;;  %v109_v28 = vld [vmem:[%s5133_s7 + $0x18] sm:$0xff] }
0x1439   :  { %v1828_v52 = vadd.f32 -0.28449672, %v1826_v47  ;;  %v1827_v32 = vmul.f32 %v4026_v2, %v1825_v29  ;;  %v1982_v47 = vpack.c.bf16 %v109_v28, %v108_v26  ;;  %v4788_v29 = vld [vmem:[#allocation5] sm:$0x3]  ;;  %v139_v26 = vld [vmem:[#allocation10 + $0xd8] sm:$0xff] }
0x143a   :  { %vm2372_vm10 = vcmp.gt.f32.partialorder %v4788_v29, 0.0 }
0x143b   :  { %v1830_v35 = vmul.f32 %v4024_v19, %v1828_v52  ;;  %v1829_v38 = vadd.f32 -0.28449672, %v1827_v32  ;;  %v104_v52 = vld [vmem:[#allocation5 + $0x2] sm:$0x3]  ;;  %v4248_v32 = vmov 1  }
0x143c   :  { %3938 = vset.pattern.permute.xlu1 %v4248_v32  ;;  %v141_v32 = vld [vmem:[#allocation10 + $0xe8] sm:$0xff] }
0x143d   :  { %v1832_v41 = vadd.f32 0.2548296, %v1830_v35  ;;  %v1831_v43 = vmul.f32 %v4026_v2, %v1829_v38  ;;  %v4249_v35 = vmov 0  }
0x143e   :  { %v4792_v38 = vsel %vm2372_vm10, 1, %v4249_v35  ;;  %vm2215_vm10 = vcmask 50176  }
0x143f   :  { %v1834_v44 = vmul.f32 %v4024_v19, %v1832_v41  ;;  %v1833_v46 = vadd.f32 0.2548296, %v1831_v43  ;;  %v3896_v41 = vtrunc.f32 %v104_v52  ;;  %v140_v52 = vld [vmem:[#allocation10 + $0xe0] sm:$0xff] }
0x1441   :  { %v1844_v54 = vmul.f32 %v4028_v45, %v1834_v44  ;;  %v1835_v57 = vmul.f32 %v4026_v2, %v1833_v46  ;;  %v4795_v43 = vcvt.f32.s32 %v3896_v41  ;;  %v142_v41 = vld [vmem:[#allocation10 + $0xf0] sm:$0xff] }
0x1443   :  { %v1846_v40 = vsub.f32 1.0, %v1844_v54  ;;  %v1845_v59 = vmul.f32 %v4030_v58, %v1835_v57  ;;  %v2043_v44 = vrot.slane %v4795_v43, %v4409_v25 }
0x1445   :  { %v1850_v60 = vsub.f32 0.0, %v1846_v40  ;;  %v1847_v63 = vsub.f32 1.0, %v1845_v59  ;;  %v1971_v59 = vrot.slane %v4623_v56, %v1090_v31 }
0x1447   :  { %v1852_v3 = vsel %vm1848_vm8, %v1846_v40, %v1850_v60  ;;  %v1851_v42 = vsub.f32 0.0, %v1847_v63  ;;  %vm2144_vm8 = vcmask 1046528  }
0x1448   :  { %v1854_v6 = vadd.f32 1.0, %v1852_v3 }
0x1449   :  { %v1853_v61 = vsel %vm1849_vm9, %v1847_v63, %v1851_v42 }
0x144a   :  { %v1855_v53 = vadd.f32 1.0, %v1853_v61  ;;  %v1856_v8 = vmul.f32 %v1854_v6, %v1806_v27  ;;  %v1977_v61 = vrot.slane %v4623_v56, %v1096_v33  ;;  %v132_v33 = vld [vmem:[#allocation10 + $0xa0] sm:$0xff]  ;;  %v133_v56 = vld [vmem:[#allocation10 + $0xa8] sm:$0xff] }
0x144c   :  { %v1857_v11 = vmul.f32 %v1855_v53, %v1807_v1 }
0x144e   :  { %v1867_v12 = vpack.c.bf16 %v1857_v11, %v1856_v8  ;;  %v128_v11 = vld [vmem:[#allocation10 + $0x80] sm:$0xff] }
0x1450   :  { %3405 = vmatmul.mubr.msk.bf16.vlgmr.msra.gmra.mrb[48].mxu0 %vm1015_vm7, %v1867_v12  ;;  %v129_v12 = vld [vmem:[#allocation10 + $0x88] sm:$0xff] }
0x1451   :  { %3483 = vmatprep.mubr.msk.f32.mxu0 %vm4243_vm1, %v4242_v15  ;;  %v4807_v31 = vpack.c.bf16 %v129_v12, %v128_v11  ;;  %v122_v11 = vld [vmem:[#allocation10 + $0x58] sm:$0xff] }
0x1523   :  { %v1933_v5 = vpop.f32.mrb[48].mxu0 }
0x1524   :  { %v1934_v4 = vadd.f32 %v1933_v5, %v1871_v9  ;;  %v3406_v48 = vpop.f32.mrb[49].mxu0  ;;  %v4250_v5 = vmov 0.0|0.0  }
0x1525   :  { %v1936_v55 = vpop.f32.mrb[50].mxu0  ;;  %3728 = vmatprep.subr.bf16.mxu0 %v4250_v5 }
0x1526   :  { %v1937_v13 = vadd.f32 %v1936_v55, %v1871_v9  ;;  %v3407_v14 = vpop.f32.mrb[51].mxu0  ;;  %v1940_v50 = vadd.f32 %v1934_v4, %v4738_v17  ;;  %v130_v9 = vld [vmem:[#allocation10 + $0x90] sm:$0xff]  ;;  %v131_v4 = vld [vmem:[#allocation10 + $0x98] sm:$0xff]  ;;  %3730 = vmatpush3.bf16.msra.mxu0 %v4807_v31  ;;  %v4814_v55 = vpack.c.bf16 %v133_v56, %v132_v33 }
0x1527   :  { %v4810_v48 = vpack.c.bf16 %v131_v4, %v130_v9  ;;  %3731 = vmatprep.subr.bf16.mxu0 %v4250_v5  ;;  %v135_v14 = vld [vmem:[#allocation10 + $0xb8] sm:$0xff]  ;;  %v123_v9 = vld [vmem:[#allocation10 + $0x60] sm:$0xff]  ;;  %v124_v4 = vld [vmem:[#allocation10 + $0x68] sm:$0xff] }
0x1528   :  { %v1942_v10 = vsel %vm171_vm0, %v1940_v50, 0.0  ;;  %v1941_v16 = vadd.f32 %v1937_v13, %v4740_v62  ;;  %v106_v62 = vld [vmem:[%s5133_s7] sm:$0xff]  ;;  %v134_v13 = vld [vmem:[#allocation10 + $0xb0] sm:$0xff]  ;;  %v3720_v33 = vpack.c.bf16 %v124_v4, %v123_v9 }
0x1529   :  { %1943 = vadd.xlane.f32.xlu0 %v1942_v10  ;;  %v1981_v37 = vpack.c.bf16 %v107_v23, %v106_v62  ;;  %v4826_v10 = vld [vmem:[%s5133_s7 + $0x20] sm:$0x1f]  ;;  %v137_v23 = vld [vmem:[#allocation10 + $0xc8] sm:$0xff]  ;;  %v125_v56 = vld [vmem:[#allocation10 + $0x70] sm:$0xff]  ;;  %s4259_s7 = smov [#allocation12]  }
0x152a   :  { %v1945_v18 = vsel %vm171_vm0, %v1941_v16, 0.0  ;;  %3733 = vmatpush3.bf16.msra.mxu0 %v4810_v48  ;;  %v136_v62 = vld [vmem:[#allocation10 + $0xc0] sm:$0xff]  ;;  %s2954_s11 = sshll.u32 %s4259_s7, 4  ;;  %s2955_s11 = int_to_ptr.vmem [resolvable:$true] %s2954_s11 }
0x152b   :  { %1946 = vadd.xlane.f32.xlu1 %v1945_v18  ;;  %3409 = vmatpush3.bf16.msra.mxu1 %v1981_v37  ;;  %v138_v37 = vld [vmem:[#allocation10 + $0xd0] sm:$0xff]  ;;  %s4179_s8 = scalar_lea.vmem %s2955_s11, 256  ;;  %p4184_p13 = scmp.lt.s32.totalorder %s2955_s11, %s2955_s11 }
0x152c   :  { %3410 = vmatprep.subr.bf16.mxu1 %v4242_v15  ;;  %3734 = vmatprep.subr.bf16.mxu0 %v4250_v5  ;;  %v4852_v28 = vpack.c.bf16 %v139_v26, %v138_v37  ;;  %p4180_p12 = scmp.ne.s32.totalorder %s2955_s11, %s4179_s8  ;;  %p4185_p0 = scmp.lt.s32.totalorder %s4179_s8, %s4179_s8 }
0x152e   :  { %3736 = vmatpush3.bf16.msra.mxu0 %v4814_v55  ;;  %p4186_p1 = por %p4185_p0, %p4184_p13 }
0x152f   :  { %3411 = vmatpush3.bf16.msra.mxu1 %v1982_v47  ;;  %3737 = vmatprep.subr.bf16.mxu0 %v4250_v5  ;;  %v2036_v47 = vrot.slane %v4795_v43, %v4429_v39  ;;  %v111_v43 = vld [vmem:[#allocation10] sm:$0xff] }
0x1530   :  { %p4187_p2 = pnand %p4186_p1, %p4180_p12 }
0x15b6   :  { %v1944_v19 = vpop.xlane.xlu0 %1943 }
0x15b7   :  { %v1948_v30 = vmul.f32 0.03125, %v1944_v19 }
0x15b8   :  { %v1947_v20 = vpop.xlane.xlu1 %1946 }
0x15b9   :  { %v1950_v2 = vsub.f32 %v1940_v50, %v1948_v30  ;;  %v1949_v7 = vmul.f32 0.03125, %v1947_v20  ;;  %v4818_v50 = vpack.c.bf16 %v135_v14, %v134_v13  ;;  %v126_v13 = vld [vmem:[#allocation10 + $0x78] sm:$0xff] }
0x15ba   :  { %v3724_v14 = vpack.c.bf16 %v126_v13, %v125_v56 }
0x15bb   :  { %v1951_v49 = vsub.f32 %v1941_v16, %v1949_v7  ;;  %v1952_v51 = vmul.f32 %v1950_v2, %v1950_v2  ;;  %3739 = vmatpush3.bf16.msra.mxu0 %v4818_v50  ;;  %v1986_v16 = vrot.slane %v4826_v10, %v4429_v39 }
0x15bc   :  { %3740 = vmatprep.subr.bf16.mxu0 %v4250_v5 }
0x15bd   :  { %v1954_v22 = vsel %vm171_vm0, %v1952_v51, 0.0  ;;  %v1953_v36 = vmul.f32 %v1951_v49, %v1951_v49 }
0x15be   :  { %1955 = vadd.xlane.f32.xlu0 %v1954_v22 }
0x15bf   :  { %v1957_v17 = vsel %vm171_vm0, %v1953_v36, 0.0 }
0x15c0   :  { %1958 = vadd.xlane.f32.xlu1 %v1957_v17 }
0x15d1   :  { %2375 = vperm.xlu1 %3938, %v4792_v38  }
0x15d5   :  { %2045 = vbcast.lane.b32.xlu1 %v2043_v44, 256  ;;  %v4858_v44 = vpack.c.bf16 %v141_v32, %v140_v52 }
0x164b   :  { %v1956_v45 = vpop.xlane.xlu0 %1955 }
0x164c   :  { %v1960_v46 = vmul.f32 0.03125, %v1956_v45  ;;  %v143_v45 = vld [vmem:[#allocation10 + $0xf8] sm:$0xff] }
0x164d   :  { %v1959_v54 = vpop.xlane.xlu1 %1958 }
0x164e   :  { %v1962_v57 = vadd.f32 1e-12, %v1960_v46  ;;  %v1961_v58 = vmul.f32 0.03125, %v1959_v54  ;;  %v4861_v46 = vpack.c.bf16 %v143_v45, %v142_v41  ;;  %v112_v54 = vld [vmem:[#allocation10 + $0x8] sm:$0xff] }
0x1650   :  { %4031 = vrsqrt.f32 %v1962_v57  ;;  %v1963_v40 = vadd.f32 1e-12, %v1961_v58  ;;  %v113_v57 = vld [vmem:[#allocation10 + $0x10] sm:$0xff]  ;;  %v3696_v58 = vpack.c.bf16 %v112_v54, %v111_v43  ;;  %v4252_v54 = vmov -1e+09  }
0x1652   :  { %4033 = vrsqrt.f32 %v1963_v40  ;;  %v114_v40 = vld [vmem:[#allocation10 + $0x18] sm:$0xff]  ;;  %3697 = vmatprep.subr.bf16.mxu1 %v3696_v58 }
0x165a   :  { %v4032_v60 = vpop.eup %4031 }
0x165b   :  { %v1966_v63 = vmul.f32 %v4032_v60, %v1950_v2  ;;  %v115_v60 = vld [vmem:[#allocation10 + $0x20] sm:$0xff] }
0x165c   :  { %v4034_v3 = vpop.eup %4033 }
0x165d   :  { %v1972_v42 = vmul.f32 %v1971_v59, %v1966_v63  ;;  %v1967_v6 = vmul.f32 %v4034_v3, %v1951_v49  ;;  %v4837_v49 = vrot.slane %v4826_v10, %v4588_v0  ;;  %v4848_v0 = vpack.c.bf16 %v137_v23, %v136_v62  ;;  %v116_v63 = vld [vmem:[#allocation10 + $0x28] sm:$0xff] }
0x165e   :  { %v3704_v3 = vpack.c.bf16 %v116_v63, %v115_v60  ;;  %v4253_v63 = vmov 2  }
0x165f   :  { %v1973_v27 = vmul.f32 %v1971_v59, %v1967_v6  ;;  %v1978_v1 = vadd.f32 %v1977_v61, %v1972_v42  ;;  %3742 = vmatpush3.bf16.msra.mxu0 %v4848_v0  ;;  %v3700_v59 = vpack.c.bf16 %v114_v40, %v113_v57  ;;  %v117_v42 = vld [vmem:[#allocation10 + $0x30] sm:$0xff]  ;;  %v118_v6 = vld [vmem:[#allocation10 + $0x38] sm:$0xff]  ;;  %3939 = vset.pattern.permute.xlu0 %v4253_v63 }
0x1660   :  { %3743 = vmatprep.subr.bf16.mxu0 %v4250_v5 }
0x1661   :  { %v1979_v53 = vadd.f32 %v1977_v61, %v1973_v27  ;;  %v3708_v61 = vpack.c.bf16 %v118_v6, %v117_v42  ;;  %v119_v27 = vld [vmem:[#allocation10 + $0x40] sm:$0xff] }
0x1663   :  { %v1980_v8 = vpack.c.bf16 %v1979_v53, %v1978_v1  ;;  %3745 = vmatpush3.bf16.msra.mxu0 %v4852_v28  ;;  %v120_v1 = vld [vmem:[#allocation10 + $0x48] sm:$0xff] }
0x1664   :  { %3746 = vmatprep.subr.bf16.mxu0 %v4250_v5  ;;  %v3712_v53 = vpack.c.bf16 %v120_v1, %v119_v27 }
0x1665   :  { %3413 = vmatmul.mubr.msk.bf16.vlgmr.msra.gmra.mrb[44].mxu1 %vm171_vm0, %v1980_v8  ;;  %v121_v8 = vld [vmem:[#allocation10 + $0x50] sm:$0xff] }
0x1666   :  { %3699 = vmatpush3.bf16.msra.mxu1 %v3696_v58  ;;  %v3716_v12 = vpack.c.bf16 %v122_v11, %v121_v8 }
0x1667   :  { %3748 = vmatpush3.bf16.msra.mxu0 %v4858_v44  ;;  %3701 = vmatprep.subr.bf16.mxu1 %v3700_v59 }
0x1668   :  { %3749 = vmatprep.subr.bf16.mxu0 %v4250_v5 }
0x166a   :  { %3703 = vmatpush3.bf16.msra.mxu1 %v3700_v59 }
0x166b   :  { %3751 = vmatpush3.bf16.msra.mxu0 %v4861_v46  ;;  %3705 = vmatprep.subr.bf16.mxu1 %v3704_v3 }
0x166c   :  { %3776 = vmatprep.subr.bf16.mxu0 %v4250_v5 }
0x166e   :  { %3707 = vmatpush3.bf16.msra.mxu1 %v3704_v3 }
0x166f   :  { %3709 = vmatprep.subr.bf16.mxu1 %v3708_v61 }
0x1672   :  { %3711 = vmatpush3.bf16.msra.mxu1 %v3708_v61 }
0x1673   :  { %3713 = vmatprep.subr.bf16.mxu1 %v3712_v53 }
0x1676   :  { %3715 = vmatpush3.bf16.msra.mxu1 %v3712_v53 }
0x1677   :  { %3717 = vmatprep.subr.bf16.mxu1 %v3716_v12 }
0x167a   :  { %3719 = vmatpush3.bf16.msra.mxu1 %v3716_v12 }
0x167b   :  { %3721 = vmatprep.subr.bf16.mxu1 %v3720_v33 }
0x167e   :  { %3723 = vmatpush3.bf16.msra.mxu1 %v3720_v33 }
0x167f   :  { %3725 = vmatprep.subr.bf16.mxu1 %v3724_v14 }
0x1682   :  { %3727 = vmatpush3.bf16.msra.mxu1 %v3724_v14 }
0x1683   :  { %3752 = vmatprep.subr.bf16.mxu1 %v4250_v5 }
0x1738   :  { %v2024_v18 = vpop.f32.mrb[44].mxu1 }
0x1739   :  { %v4830_v19 = vadd.f32 %v2024_v18, %v1986_v16  ;;  %v3414_v30 = vpop.f32.mrb[45].mxu1 }
0x173a   :  { %v2027_v20 = vpop.f32.mrb[46].mxu1 }
0x173b   :  { %2031 = vst [vmem:[#allocation12] sm:$0xff] %v4830_v19  ;;  %v4833_v2 = vadd.f32 %v2027_v20, %v1986_v16  ;;  %v3415_v7 = vpop.f32.mrb[47].mxu1  ;;  %v4867_v16 = vpop.permute.xlu1 %2375  ;;  %v4871_v20 = vand.u32 127, %v150_v21  ;;  %v2367_v32 = vrot.slane %v4830_v19, 1  ;;  %v2458_v12 = vrot.slane %v4830_v19, 2 }
0x173c   :  { %vm2377_vm0 = vcmp.eq.s32.totalorder %v4867_v16, 1 }
0x173d   :  { %2032 = vst [vmem:[#allocation12 + $0x8] sm:$0xff] %v4833_v2  ;;  %v2284_v51 = vrot.slane %v4833_v2, 7  ;;  %vm2280_vm15 = vcmp.lt.s32.totalorder %v4871_v20, 5  ;;  %v2368_v43 = vsel %vm2156_vm11, %v4833_v2, %v2367_v32  ;;  %v2459_v8 = vrot.slane %v4833_v2, 1 }
0x173e   :  { %v4931_v57 = vsel %vm2280_vm15, 0.0, %v4252_v54  ;;  %v2549_v32 = vrot.slane %v4833_v2, 2 }
0x173f   :  { %v2285_v22 = vsel %vm2156_vm11, %v2284_v51, %v4830_v19  ;;  %v4873_v7 = vpop.permute.xlu1 %2045  ;;  %v2460_v33 = vsel %vm2156_vm11, %v2459_v8, %v2458_v12 }
0x1740   :  { %v4844_v36 = vadd.f32 %v2285_v22, %v4837_v49  ;;  %vm2050_vm14 = vcmp.eq.s32.totalorder %v4873_v7, %v4871_v20 }
0x1742   :  { %v2288_v17 = vsel %vm2160_vm12, %v4844_v36, -inf }
0x1743   :  { %2289 = vmax.xlane.f32.xlu0 %v2288_v17  ;;  %v4251_v17 = vmov 1.0  }
0x1759   :  { %2038 = vbcast.lane.b32.xlu0 %v2036_v47, 256 }
0x175d   :  { %2465 = vperm.xlu0 %3939, %v4792_v38  }
0x17d0   :  { %v2290_v18 = vpop.xlane.xlu0 %2289 }
0x17d1   :  { %v2291_v30 = vsub.f32 %v4844_v36, %v2290_v18 }
0x17d3   :  { %v2292_v51 = vmul.f32 1.442695, %v2291_v30 }
0x17d4   :  { %v4875_v22 = vpop.permute.xlu0 %2038 }
0x17d5   :  { %4035 = vpow2.f32 %v2292_v51  ;;  %vm2049_vm13 = vcmp.eq.s32.totalorder %v4875_v22, %v4871_v20 }
0x17d6   :  { %3448 = vmatprep.mubr.msk.f32.mxu1 %vm2049_vm13, %v4251_v17 }
0x17d7   :  { %3449 = vmatmul.mubr.msk.f32.vlgmr.msra.gmra.mrb[48].mxu1 %vm2050_vm14, %v4251_v17 }
0x17d8   :  { %3754 = vmatpush3.bf16.msra.mxu1 %v4807_v31  ;;  %3518 = vmatprep.mubr.msk.f32.mxu1 %vm4243_vm1, %v4242_v15 }
0x17d9   :  { %3755 = vmatprep.subr.bf16.mxu1 %v4250_v5 }
0x17dc   :  { %3757 = vmatpush3.bf16.msra.mxu1 %v4810_v48  ;;  %v2466_v4 = vpop.permute.xlu0 %2465 }
0x17dd   :  { %3758 = vmatprep.subr.bf16.mxu1 %v4250_v5  ;;  %vm2467_vm2 = vcmp.eq.s32.totalorder %v2466_v4, 1 }
0x17df   :  { %v4036_v21 = vpop.eup %4035 }
0x17e0   :  { %3484 = vmatmul.mubr.f32.vlgmr.msra.gmra.mrb[52].mxu0 %v4036_v21  ;;  %3760 = vmatpush3.bf16.msra.mxu1 %v4814_v55 }
0x17e1   :  { %3761 = vmatprep.subr.bf16.mxu1 %v4250_v5  ;;  %3778 = vmatpush3.bf16.msra.mxu0 %v4807_v31 }
0x17e2   :  { %3779 = vmatprep.subr.bf16.mxu0 %v4250_v5  ;;  %3553 = vmatprep.mubr.msk.f32.mxu0 %vm4243_vm1, %v4242_v15 }
0x17e4   :  { %3763 = vmatpush3.bf16.msra.mxu1 %v4818_v50 }
0x17e5   :  { %3764 = vmatprep.subr.bf16.mxu1 %v4250_v5  ;;  %3781 = vmatpush3.bf16.msra.mxu0 %v4810_v48 }
0x17e6   :  { %3782 = vmatprep.subr.bf16.mxu0 %v4250_v5 }
0x17e8   :  { %3766 = vmatpush3.bf16.msra.mxu1 %v4848_v0 }
0x17e9   :  { %3767 = vmatprep.subr.bf16.mxu1 %v4250_v5  ;;  %3784 = vmatpush3.bf16.msra.mxu0 %v4814_v55 }
0x17ea   :  { %3785 = vmatprep.subr.bf16.mxu0 %v4250_v5 }
0x17ec   :  { %3769 = vmatpush3.bf16.msra.mxu1 %v4852_v28 }
0x17ed   :  { %3770 = vmatprep.subr.bf16.mxu1 %v4250_v5  ;;  %3787 = vmatpush3.bf16.msra.mxu0 %v4818_v50 }
0x17ee   :  { %3788 = vmatprep.subr.bf16.mxu0 %v4250_v5 }
0x17f0   :  { %3772 = vmatpush3.bf16.msra.mxu1 %v4858_v44 }
0x17f1   :  { %3773 = vmatprep.subr.bf16.mxu1 %v4250_v5  ;;  %3790 = vmatpush3.bf16.msra.mxu0 %v4848_v0 }
0x17f2   :  { %3791 = vmatprep.subr.bf16.mxu0 %v4250_v5 }
0x17f4   :  { %3775 = vmatpush3.bf16.msra.mxu1 %v4861_v46 }
0x17f5   :  { %3793 = vmatpush3.bf16.msra.mxu0 %v4852_v28  ;;  %3800 = vmatprep.subr.bf16.mxu1 %v4250_v5 }
0x17f6   :  { %3794 = vmatprep.subr.bf16.mxu0 %v4250_v5 }
0x17f9   :  { %3796 = vmatpush3.bf16.msra.mxu0 %v4858_v44 }
0x17fa   :  { %3797 = vmatprep.subr.bf16.mxu0 %v4250_v5 }
0x17fd   :  { %3799 = vmatpush3.bf16.msra.mxu0 %v4861_v46 }
0x17fe   :  { %3824 = vmatprep.subr.bf16.mxu0 %v4250_v5 }
0x18aa   :  { %v4923_v62 = vpop.f32.mrb[48].mxu1 }
0x18ab   :  { %v4925_v23 = vpop.f32.mrb[49].mxu1 }
0x18b3   :  { %v2360_v37 = vpop.f32.mrb[52].mxu0 }
0x18b4   :  { %v2361_v26 = vadd.f32 1e-30, %v2360_v37  ;;  %v3485_v47 = vpop.f32.mrb[53].mxu0 }
0x18b6   :  { %4037 = vlog2.f32 %v2361_v26 }
0x18c0   :  { %v4038_v52 = vpop.eup %4037 }
0x18c1   :  { %v2365_v41 = vmul.f32 0.6931472, %v4038_v52 }
0x18c3   :  { %v2366_v45 = vadd.f32 %v2365_v41, %v2290_v18  ;;  %v4254_v18 = vmov 3  }
0x18c4   :  { %3940 = vset.pattern.permute.xlu1 %v4254_v18 }
0x18c5   :  { %v2370_v58 = vadd.f32 %v2368_v43, %v2366_v45  ;;  %v2548_v45 = vrot.slane %v4830_v19, 3 }
0x18c7   :  { %v2371_v40 = vadd.f32 %v2370_v58, %v4931_v57  ;;  %v2550_v58 = vsel %vm2156_vm11, %v2549_v32, %v2548_v45  ;;  %v4257_v45 = vmov 6  }
0x18c9   :  { %v2378_v59 = vsel %vm2377_vm0, %v2371_v40, %v4844_v36 }
0x18ca   :  { %v2379_v60 = vsel %vm2160_vm12, %v2378_v59, -inf }
0x18cb   :  { %2380 = vmax.xlane.f32.xlu1 %v2379_v60 }
0x18dc   :  { %2555 = vperm.xlu1 %3940, %v4792_v38  }
0x1958   :  { %v2381_v3 = vpop.xlane.xlu1 %2380 }
0x1959   :  { %v2382_v42 = vsub.f32 %v2378_v59, %v2381_v3 }
0x195b   :  { %v2383_v6 = vmul.f32 1.442695, %v2382_v42 }
0x195c   :  { %v2556_v54 = vpop.permute.xlu1 %2555 }
0x195d   :  { %4039 = vpow2.f32 %v2383_v6  ;;  %vm2557_vm3 = vcmp.eq.s32.totalorder %v2556_v54, 1 }
0x1967   :  { %v4040_v61 = vpop.eup %4039 }
0x1968   :  { %3519 = vmatmul.mubr.f32.vlgmr.msra.gmra.mrb[50].mxu1 %v4040_v61 }
0x1969   :  { %3802 = vmatpush3.bf16.msra.mxu1 %v4807_v31  ;;  %3588 = vmatprep.mubr.msk.f32.mxu1 %vm4243_vm1, %v4242_v15 }
0x196a   :  { %3803 = vmatprep.subr.bf16.mxu1 %v4250_v5 }
0x196d   :  { %3805 = vmatpush3.bf16.msra.mxu1 %v4810_v48 }
0x196e   :  { %3806 = vmatprep.subr.bf16.mxu1 %v4250_v5 }
0x1971   :  { %3808 = vmatpush3.bf16.msra.mxu1 %v4814_v55 }
0x1972   :  { %3809 = vmatprep.subr.bf16.mxu1 %v4250_v5 }
0x1975   :  { %3811 = vmatpush3.bf16.msra.mxu1 %v4818_v50 }
0x1976   :  { %3812 = vmatprep.subr.bf16.mxu1 %v4250_v5 }
0x1979   :  { %3814 = vmatpush3.bf16.msra.mxu1 %v4848_v0 }
0x197a   :  { %3815 = vmatprep.subr.bf16.mxu1 %v4250_v5 }
0x197d   :  { %3817 = vmatpush3.bf16.msra.mxu1 %v4852_v28 }
0x197e   :  { %3818 = vmatprep.subr.bf16.mxu1 %v4250_v5 }
0x1981   :  { %3820 = vmatpush3.bf16.msra.mxu1 %v4858_v44 }
0x1982   :  { %3821 = vmatprep.subr.bf16.mxu1 %v4250_v5 }
0x1985   :  { %3823 = vmatpush3.bf16.msra.mxu1 %v4861_v46 }
0x1986   :  { %3848 = vmatprep.subr.bf16.mxu1 %v4250_v5 }
0x1a3b   :  { %v2451_v36 = vpop.f32.mrb[50].mxu1 }
0x1a3c   :  { %v2452_v27 = vadd.f32 1e-30, %v2451_v36  ;;  %v3520_v1 = vpop.f32.mrb[51].mxu1 }
0x1a3e   :  { %4041 = vlog2.f32 %v2452_v27 }
0x1a48   :  { %v4042_v53 = vpop.eup %4041 }
0x1a49   :  { %v2456_v11 = vmul.f32 0.6931472, %v4042_v53 }
0x1a4b   :  { %v2457_v9 = vadd.f32 %v2456_v11, %v2381_v3  ;;  %v4255_v3 = vmov 4   ;;  %v2639_v11 = vrot.slane %v4833_v2, 3 }
0x1a4c   :  { %3941 = vset.pattern.permute.xlu0 %v4255_v3 }
0x1a4d   :  { %v2462_v56 = vadd.f32 %v2460_v33, %v2457_v9  ;;  %v2638_v9 = vrot.slane %v4830_v19, 4 }
0x1a4f   :  { %v2463_v13 = vadd.f32 %v2462_v56, %v4931_v57  ;;  %v2640_v56 = vsel %vm2156_vm11, %v2639_v11, %v2638_v9 }
0x1a51   :  { %v2468_v14 = vsel %vm2467_vm2, %v2463_v13, %v2378_v59 }
0x1a52   :  { %v2469_v16 = vsel %vm2160_vm12, %v2468_v14, -inf }
0x1a53   :  { %2470 = vmax.xlane.f32.xlu0 %v2469_v16 }
0x1ae0   :  { %v2471_v30 = vpop.xlane.xlu0 %2470 }
0x1ae1   :  { %v2472_v51 = vsub.f32 %v2468_v14, %v2471_v30 }
0x1ae3   :  { %v2473_v17 = vmul.f32 1.442695, %v2472_v51 }
0x1ae5   :  { %4043 = vpow2.f32 %v2473_v17 }
0x1aef   :  { %v4044_v21 = vpop.eup %4043 }
0x1af0   :  { %3554 = vmatmul.mubr.f32.vlgmr.msra.gmra.mrb[54].mxu0 %v4044_v21 }
0x1af1   :  { %3826 = vmatpush3.bf16.msra.mxu0 %v4807_v31  ;;  %3623 = vmatprep.mubr.msk.f32.mxu0 %vm4243_vm1, %v4242_v15 }
0x1af2   :  { %3827 = vmatprep.subr.bf16.mxu0 %v4250_v5 }
0x1af5   :  { %3829 = vmatpush3.bf16.msra.mxu0 %v4810_v48 }
0x1af6   :  { %3830 = vmatprep.subr.bf16.mxu0 %v4250_v5 }
0x1af9   :  { %3832 = vmatpush3.bf16.msra.mxu0 %v4814_v55 }
0x1afa   :  { %3833 = vmatprep.subr.bf16.mxu0 %v4250_v5 }
0x1afd   :  { %3835 = vmatpush3.bf16.msra.mxu0 %v4818_v50 }
0x1afe   :  { %3836 = vmatprep.subr.bf16.mxu0 %v4250_v5 }
0x1b01   :  { %3838 = vmatpush3.bf16.msra.mxu0 %v4848_v0 }
0x1b02   :  { %3839 = vmatprep.subr.bf16.mxu0 %v4250_v5 }
0x1b05   :  { %3841 = vmatpush3.bf16.msra.mxu0 %v4852_v28 }
0x1b06   :  { %3842 = vmatprep.subr.bf16.mxu0 %v4250_v5 }
0x1b09   :  { %3844 = vmatpush3.bf16.msra.mxu0 %v4858_v44 }
0x1b0a   :  { %3845 = vmatprep.subr.bf16.mxu0 %v4250_v5 }
0x1b0d   :  { %3847 = vmatpush3.bf16.msra.mxu0 %v4861_v46 }
0x1b0e   :  { %3872 = vmatprep.subr.bf16.mxu0 %v4250_v5 }
0x1bc3   :  { %v2541_v37 = vpop.f32.mrb[54].mxu0 }
0x1bc4   :  { %v2542_v26 = vadd.f32 1e-30, %v2541_v37  ;;  %v3555_v47 = vpop.f32.mrb[55].mxu0 }
0x1bc5   :  { %v2728_v47 = vrot.slane %v4830_v19, 5 }
0x1bc6   :  { %4045 = vlog2.f32 %v2542_v26  ;;  %v2729_v26 = vrot.slane %v4833_v2, 4 }
0x1bc8   :  { %v2730_v32 = vsel %vm2156_vm11, %v2729_v26, %v2728_v47 }
0x1bd0   :  { %v4046_v52 = vpop.eup %4045 }
0x1bd1   :  { %v2546_v41 = vmul.f32 0.6931472, %v4046_v52 }
0x1bd3   :  { %v2547_v43 = vadd.f32 %v2546_v41, %v2471_v30  ;;  %v4256_v30 = vmov 5  }
0x1bd4   :  { %3942 = vset.pattern.permute.xlu1 %v4256_v30 }
0x1bd5   :  { %v2552_v40 = vadd.f32 %v2550_v58, %v2547_v43  ;;  %v2221_v43 = vsel %vm2220_vm5, %v4788_v29, 0.0 }
0x1bd7   :  { %v2553_v59 = vadd.f32 %v2552_v40, %v4931_v57 }
0x1bd9   :  { %v2558_v60 = vsel %vm2557_vm3, %v2553_v59, %v2468_v14 }
0x1bda   :  { %v2559_v63 = vsel %vm2160_vm12, %v2558_v60, -inf }
0x1bdb   :  { %2560 = vmax.xlane.f32.xlu0 %v2559_v63  ;;  %v4258_v63 = vmov 7  }
0x1bf1   :  { %2645 = vperm.xlu0 %3941, %v4792_v38  }
0x1bf5   :  { %3944 = vset.pattern.permute.xlu0 %v4258_v63 }
0x1c68   :  { %v2561_v42 = vpop.xlane.xlu0 %2560 }
0x1c69   :  { %v2562_v6 = vsub.f32 %v2558_v60, %v2561_v42 }
0x1c6b   :  { %v2563_v61 = vmul.f32 1.442695, %v2562_v6 }
0x1c6d   :  { %4047 = vpow2.f32 %v2563_v61 }
0x1c70   :  { %v2646_v33 = vpop.permute.xlu0 %2645 }
0x1c71   :  { %vm2647_vm4 = vcmp.eq.s32.totalorder %v2646_v33, 1 }
0x1c77   :  { %v4048_v36 = vpop.eup %4047 }
0x1c78   :  { %3589 = vmatmul.mubr.f32.vlgmr.msra.gmra.mrb[52].mxu1 %v4048_v36 }
0x1c79   :  { %3850 = vmatpush3.bf16.msra.mxu1 %v4807_v31  ;;  %3658 = vmatprep.mubr.msk.f32.mxu1 %vm4243_vm1, %v4242_v15 }
0x1c7a   :  { %3851 = vmatprep.subr.bf16.mxu1 %v4250_v5 }
0x1c7d   :  { %3853 = vmatpush3.bf16.msra.mxu1 %v4810_v48 }
0x1c7e   :  { %3854 = vmatprep.subr.bf16.mxu1 %v4250_v5 }
0x1c81   :  { %3856 = vmatpush3.bf16.msra.mxu1 %v4814_v55 }
0x1c82   :  { %3857 = vmatprep.subr.bf16.mxu1 %v4250_v5 }
0x1c85   :  { %3859 = vmatpush3.bf16.msra.mxu1 %v4818_v50 }
0x1c86   :  { %3860 = vmatprep.subr.bf16.mxu1 %v4250_v5 }
0x1c89   :  { %3862 = vmatpush3.bf16.msra.mxu1 %v4848_v0 }
0x1c8a   :  { %3863 = vmatprep.subr.bf16.mxu1 %v4250_v5 }
0x1c8d   :  { %3865 = vmatpush3.bf16.msra.mxu1 %v4852_v28 }
0x1c8e   :  { %3866 = vmatprep.subr.bf16.mxu1 %v4250_v5 }
0x1c91   :  { %3868 = vmatpush3.bf16.msra.mxu1 %v4858_v44 }
0x1c92   :  { %3869 = vmatprep.subr.bf16.mxu1 %v4250_v5 }
0x1c95   :  { %3871 = vmatpush3.bf16.msra.mxu1 %v4861_v46 }
0x1d4b   :  { %v2631_v27 = vpop.f32.mrb[52].mxu1 }
0x1d4c   :  { %v2632_v1 = vadd.f32 1e-30, %v2631_v27  ;;  %v3590_v53 = vpop.f32.mrb[53].mxu1 }
0x1d4e   :  { %4049 = vlog2.f32 %v2632_v1 }
0x1d58   :  { %v4050_v8 = vpop.eup %4049 }
0x1d59   :  { %v2636_v12 = vmul.f32 0.6931472, %v4050_v8 }
0x1d5b   :  { %v2637_v4 = vadd.f32 %v2636_v12, %v2561_v42  ;;  %v2188_v42 = vrot.slane %v4788_v29, %v4409_v25  ;;  %v2819_v12 = vrot.slane %v4833_v2, 5 }
0x1d5d   :  { %v2642_v13 = vadd.f32 %v2640_v56, %v2637_v4  ;;  %v2818_v4 = vrot.slane %v4830_v19, 6 }
0x1d5f   :  { %v2643_v14 = vadd.f32 %v2642_v13, %v4931_v57  ;;  %v2820_v56 = vsel %vm2156_vm11, %v2819_v12, %v2818_v4 }
0x1d61   :  { %v2648_v16 = vsel %vm2647_vm4, %v2643_v14, %v2558_v60 }
0x1d62   :  { %v2649_v18 = vsel %vm2160_vm12, %v2648_v16, -inf }
0x1d63   :  { %2650 = vmax.xlane.f32.xlu1 %v2649_v18 }
0x1d74   :  { %2735 = vperm.xlu1 %3942, %v4792_v38  }
0x1d78   :  { %3943 = vset.pattern.permute.xlu1 %v4257_v45 }
0x1d79   :  { %2825 = vperm.xlu1 %3943, %v4792_v38  }
0x1d7d   :  { %3945 = vset.pattern.permute.xlu1 %v4249_v35 }
0x1df0   :  { %v2651_v51 = vpop.xlane.xlu1 %2650 }
0x1df1   :  { %v2652_v17 = vsub.f32 %v2648_v16, %v2651_v51 }
0x1df3   :  { %v2653_v21 = vmul.f32 1.442695, %v2652_v17 }
0x1df5   :  { %4051 = vpow2.f32 %v2653_v21 }
0x1dff   :  { %v4052_v37 = vpop.eup %4051 }
0x1e00   :  { %3624 = vmatmul.mubr.f32.vlgmr.msra.gmra.mrb[56].mxu0 %v4052_v37 }
0x1e01   :  { %3874 = vmatpush3.bf16.msra.mxu0 %v4807_v31  ;;  %3693 = vmatprep.mubr.msk.f32.mxu0 %vm4243_vm1, %v4242_v15 }
0x1e02   :  { %3875 = vmatprep.subr.bf16.mxu0 %v4250_v5 }
0x1e05   :  { %3877 = vmatpush3.bf16.msra.mxu0 %v4810_v48 }
0x1e06   :  { %3878 = vmatprep.subr.bf16.mxu0 %v4250_v5 }
0x1e09   :  { %3880 = vmatpush3.bf16.msra.mxu0 %v4814_v55 }
0x1e0a   :  { %3881 = vmatprep.subr.bf16.mxu0 %v4250_v5 }
0x1e0d   :  { %3883 = vmatpush3.bf16.msra.mxu0 %v4818_v50 }
0x1e0e   :  { %3884 = vmatprep.subr.bf16.mxu0 %v4250_v5 }
0x1e11   :  { %3886 = vmatpush3.bf16.msra.mxu0 %v4848_v0 }
0x1e12   :  { %3887 = vmatprep.subr.bf16.mxu0 %v4250_v5 }
0x1e15   :  { %3889 = vmatpush3.bf16.msra.mxu0 %v4852_v28  ;;  %v2736_v28 = vpop.permute.xlu1 %2735 }
0x1e16   :  { %3890 = vmatprep.subr.bf16.mxu0 %v4250_v5  ;;  %vm2737_vm1 = vcmp.eq.s32.totalorder %v2736_v28, 1 }
0x1e19   :  { %3892 = vmatpush3.bf16.msra.mxu0 %v4858_v44 }
0x1e1a   :  { %3893 = vmatprep.subr.bf16.mxu0 %v4250_v5 }
0x1e1d   :  { %3895 = vmatpush3.bf16.msra.mxu0 %v4861_v46 }
0x1ed3   :  { %v2721_v31 = vpop.f32.mrb[56].mxu0 }
0x1ed4   :  { %v2722_v48 = vadd.f32 1e-30, %v2721_v31  ;;  %v3625_v55 = vpop.f32.mrb[57].mxu0 }
0x1ed6   :  { %4053 = vlog2.f32 %v2722_v48 }
0x1ee0   :  { %v4054_v50 = vpop.eup %4053 }
0x1ee1   :  { %v2726_v0 = vmul.f32 0.6931472, %v4054_v50 }
0x1ee3   :  { %v2727_v52 = vadd.f32 %v2726_v0, %v2651_v51  ;;  %v5063_v51 = vsel %vm2050_vm14, 1.0, %v4242_v15 }
0x1ee4   :  { %v2056_v22 = vmul.f32 %v5063_v51, %v4833_v2  ;;  %v2139_v21 = vrot.slane %v5063_v51, 1  ;;  %v2155_v4 = vrot.slane %v5063_v51, 7 }
0x1ee5   :  { %v2732_v41 = vadd.f32 %v2730_v32, %v2727_v52 }
0x1ee6   :  { %v2143_v31 = vmul.f32 %v4923_v62, %v2139_v21 }
0x1ee7   :  { %v2733_v5 = vadd.f32 %v2732_v41, %v4931_v57 }
0x1ee8   :  { %v2148_v55 = vsel %vm2144_vm8, %v2143_v31, 0.0 }
0x1ee9   :  { %v2738_v44 = vsel %vm2737_vm1, %v2733_v5, %v2648_v16  ;;  %v5053_v16 = vsel %vm2049_vm13, 1.0, %v4242_v15 }
0x1eea   :  { %v2739_v46 = vsel %vm2160_vm12, %v2738_v44, -inf  ;;  %v2055_v30 = vmul.f32 %v5053_v16, %v4830_v19  ;;  %v2138_v17 = vrot.slane %v5053_v16, 1 }
0x1eeb   :  { %2740 = vmax.xlane.f32.xlu0 %v2739_v46 }
0x1eec   :  { %v2142_v37 = vmul.f32 %v2138_v17, %v4925_v23  ;;  %v2180_v23 = vrot.slane %v4788_v29, %v4429_v39 }
0x1eee   :  { %v2145_v48 = vsel %vm2144_vm8, %v2142_v37, 0.0 }
0x1eef   :  { %2222 = vadd.xlane.f32.xlu0 %v2221_v43 }
0x1f05   :  { %2915 = vperm.xlu0 %3944, %v4792_v38  }
0x1f09   :  { %2191 = vbcast.lane.b32.xlu0 %v2188_v42, 257 }
0x1f0a   :  { %3946 = vset.pattern.permute.xlu0 %v4249_v35  ;;  %v2826_v35 = vpop.permute.xlu1 %2825 }
0x1f0b   :  { %vm2827_vm7 = vcmp.eq.s32.totalorder %v2826_v35, 1 }
0x1f78   :  { %v2741_v54 = vpop.xlane.xlu0 %2740 }
0x1f79   :  { %v2742_v58 = vsub.f32 %v2738_v44, %v2741_v54 }
0x1f7b   :  { %v2743_v40 = vmul.f32 1.442695, %v2742_v58 }
0x1f7c   :  { %v2223_v60 = vpop.xlane.xlu0 %2222 }
0x1f7d   :  { %4055 = vpow2.f32 %v2743_v40  ;;  %v3898_v3 = vtrunc.f32 %v2223_v60 }
0x1f7f   :  { %v3899_v6 = vcvt.f32.s32 %v3898_v3 }
0x1f81   :  { %v3038_v61 = vadd.s32 4294967295, %v3899_v6 }
0x1f83   :  { %vm2226_vm6 = vcmp.eq.s32.totalorder %v4871_v20, %v3038_v61 }
0x1f84   :  { %v3039_v36 = vsel %vm2226_vm6, 1.0, %v4242_v15  ;;  %v2232_v15 = vrot.slane %v4826_v10, %v4549_v34  ;;  %v2916_v5 = vpop.permute.xlu0 %2915 }
0x1f85   :  { %v2243_v27 = vrot.slane %v3039_v36, %v4429_v39  ;;  %v2250_v1 = vrot.slane %v3039_v36, %v4409_v25  ;;  %vm2917_vm9 = vcmp.eq.s32.totalorder %v2916_v5, 1 }
0x1f86   :  { %v2233_v7 = vmul.f32 %v5053_v16, %v2232_v15  ;;  %v2234_v50 = vmul.f32 %v5063_v51, %v2232_v15 }
0x1f87   :  { %v4056_v59 = vpop.eup %4055  ;;  %2245 = vbcast.lane.b32.xlu0 %v2243_v27, 256 }
0x1f88   :  { %3659 = vmatmul.mubr.f32.vlgmr.msra.gmra.mrb[54].mxu1 %v4056_v59  ;;  %v2192_v29 = vpop.permute.xlu0 %2191 }
0x1f8b   :  { %2252 = vbcast.lane.b32.xlu0 %v2250_v1, 256 }
0x1ff9   :  { %v2246_v59 = vpop.permute.xlu0 %2245 }
0x1ffd   :  { %v2253_v3 = vpop.permute.xlu0 %2252 }
0x205b   :  { %v2811_v53 = vpop.f32.mrb[54].mxu1 }
0x205c   :  { %v2812_v38 = vadd.f32 1e-30, %v2811_v53  ;;  %v3660_v8 = vpop.f32.mrb[55].mxu1  ;;  %v2909_v53 = vrot.slane %v4833_v2, 6 }
0x205e   :  { %4057 = vlog2.f32 %v2812_v38 }
0x2068   :  { %v4058_v11 = vpop.eup %4057 }
0x2069   :  { %v2816_v9 = vmul.f32 0.6931472, %v4058_v11  ;;  %v2908_v11 = vrot.slane %v4830_v19, 7 }
0x206b   :  { %v2817_v33 = vadd.f32 %v2816_v9, %v2741_v54  ;;  %v2910_v9 = vsel %vm2156_vm11, %v2909_v53, %v2908_v11 }
0x206d   :  { %v2822_v13 = vadd.f32 %v2820_v56, %v2817_v33 }
0x206f   :  { %v2823_v14 = vadd.f32 %v2822_v13, %v4931_v57 }
0x2071   :  { %v5047_v25 = vsel %vm2827_vm7, %v2823_v14, %v2738_v44  ;;  %v2157_v14 = vsel %vm2156_vm11, %v2155_v4, %v5053_v16 }
0x2072   :  { %v2829_v18 = vsel %vm2160_vm12, %v5047_v25, -inf }
0x2073   :  { %2830 = vmax.xlane.f32.xlu1 %v2829_v18  ;;  %v2207_v18 = vsub.s32 %v4871_v20, %v4406_v24 }
0x2077   :  { %2057 = vadd.xlane.f32.xlu1 %v2055_v30  ;;  %v2159_v30 = vmul.f32 %v2157_v14, %v4837_v49 }
0x207b   :  { %2059 = vadd.xlane.f32.xlu1 %v2056_v22 }
0x207f   :  { %2146 = vadd.xlane.f32.xlu1 %v2145_v48 }
0x2083   :  { %2149 = vadd.xlane.f32.xlu1 %v2148_v55 }
0x2087   :  { %2235 = vadd.xlane.f32.xlu1 %v2233_v7 }
0x208b   :  { %2237 = vadd.xlane.f32.xlu1 %v2234_v50 }
0x209c   :  { %2183 = vbcast.lane.b32.xlu1 %v2180_v23, 257 }
0x2100   :  { %v2831_v26 = vpop.xlane.xlu1 %2830 }
0x2101   :  { %v2832_v62 = vsub.f32 %v5047_v25, %v2831_v26 }
0x2103   :  { %v2833_v0 = vmul.f32 1.442695, %v2832_v62 }
0x2104   :  { %v2058_v47 = vpop.xlane.xlu1 %2057 }
0x2105   :  { %4059 = vpow2.f32 %v2833_v0  ;;  %v2170_v39 = vrot.slane %v2058_v47, 1 }
0x2108   :  { %v2060_v52 = vpop.xlane.xlu1 %2059 }
0x2109   :  { %v2166_v28 = vrot.slane %v2060_v52, 7  ;;  %v2171_v45 = vrot.slane %v2060_v52, 1 }
0x210b   :  { %v5079_v34 = vsel %vm2156_vm11, %v2166_v28, %v2058_v47 }
0x210c   :  { %v2147_v10 = vpop.xlane.xlu1 %2146 }
0x210d   :  { %v2174_v43 = vadd.f32 %v2170_v39, %v2147_v10 }
0x210f   :  { %v4060_v32 = vpop.eup %4059 }
0x2110   :  { %3694 = vmatmul.mubr.f32.vlgmr.msra.gmra.mrb[58].mxu0 %v4060_v32  ;;  %v2150_v41 = vpop.xlane.xlu1 %2149 }
0x2111   :  { %v2175_v58 = vadd.f32 %v2171_v45, %v2150_v41 }
0x2113   :  { %v2196_v60 = vmul.f32 %v2192_v29, %v2175_v58 }
0x2114   :  { %v2236_v44 = vpop.xlane.xlu1 %2235 }
0x2115   :  { %v2256_v63 = vmul.f32 %v2246_v59, %v2236_v44 }
0x2118   :  { %v2238_v46 = vpop.xlane.xlu1 %2237 }
0x2119   :  { %v2257_v42 = vmul.f32 %v2253_v3, %v2238_v46 }
0x211c   :  { %v2184_v54 = vpop.permute.xlu1 %2183 }
0x211d   :  { %v2195_v40 = vmul.f32 %v2184_v54, %v2174_v43 }
0x211f   :  { %2200 = vperm.xlu1 %3945, %v2195_v40  }
0x2123   :  { %2203 = vperm.xlu1 %3945, %v2196_v60  }
0x2127   :  { %2261 = vperm.xlu1 %3945, %v2256_v63  }
0x212b   :  { %2264 = vperm.xlu1 %3945, %v2257_v42  }
0x219e   :  { %v2201_v27 = vpop.permute.xlu1 %2200 }
0x219f   :  { %v2208_v22 = vrot.slane %v2201_v27, %v2207_v18 }
0x21a2   :  { %v2204_v8 = vpop.permute.xlu1 %2203 }
0x21a3   :  { %v2212_v17 = vrot.slane %v2204_v8, %v2207_v18 }
0x21a6   :  { %v2262_v56 = vpop.permute.xlu1 %2261 }
0x21a7   :  { %v2269_v16 = vrot.slane %v2262_v56, %v2207_v18 }
0x21aa   :  { %v2265_v51 = vpop.permute.xlu1 %2264 }
0x21ab   :  { %v2273_v21 = vrot.slane %v2265_v51, %v2207_v18 }
0x21ad   :  { %v2274_v24 = vsel %vm2156_vm11, %v2273_v21, %v2269_v16 }
0x21ae   :  { %v2276_v20 = vsel %vm2220_vm5, %v2274_v24, 0.0 }
0x21e3   :  { %v2901_v6 = vpop.f32.mrb[58].mxu0 }
0x21e4   :  { %v2902_v61 = vadd.f32 1e-30, %v2901_v6  ;;  %v3695_v36 = vpop.f32.mrb[59].mxu0 }
0x21e6   :  { %4061 = vlog2.f32 %v2902_v61 }
0x21f0   :  { %v4062_v1 = vpop.eup %4061 }
0x21f1   :  { %v2906_v38 = vmul.f32 0.6931472, %v4062_v1 }
0x21f3   :  { %v2907_v12 = vadd.f32 %v2906_v38, %v2831_v26 }
0x21f5   :  { %v2912_v33 = vadd.f32 %v2910_v9, %v2907_v12 }
0x21f7   :  { %v2913_v35 = vadd.f32 %v2912_v33, %v4931_v57  ;;  %v2161_v57 = vsel %vm2160_vm12, %v2159_v30, 0.0 }
0x21f9   :  { %v2918_v13 = vsel %vm2917_vm9, %v2913_v35, %v5047_v25  ;;  %v2213_v25 = vsel %vm2156_vm11, %v2212_v17, %v2208_v22 }
0x21fa   :  { %v2919_v2 = vadd.f32 %v2918_v13, %v2232_v15  ;;  %v2216_v37 = vsel %vm2215_vm10, %v2213_v25, 0.0 }
0x21fc   :  { %v2920_v19 = vsel %vm2160_vm12, %v2919_v2, -inf }
0x21fd   :  { %2921 = vmax.xlane.f32.xlu0 %v2920_v19 }
0x2201   :  { %2162 = vadd.xlane.f32.xlu0 %v2161_v57 }
0x2205   :  { %2217 = vadd.xlane.f32.xlu0 %v2216_v37 }
0x2209   :  { %2277 = vadd.xlane.f32.xlu0 %v2276_v20 }
0x228a   :  { %v2922_v49 = vpop.xlane.xlu0 %2921 }
0x228b   :  { %v2923_v31 = vsub.f32 %v2919_v2, %v2922_v49 }
0x228d   :  { %v2924_v48 = vmul.f32 1.442695, %v2923_v31 }
0x228e   :  { %v2163_v7 = vpop.xlane.xlu0 %2162 }
0x228f   :  { %4063 = vpow2.f32 %v2924_v48  ;;  %v2169_v26 = vadd.f32 %v5079_v34, %v2163_v7 }
0x2292   :  { %v2218_v23 = vpop.xlane.xlu0 %2217 }
0x2293   :  { %v2219_v47 = vadd.f32 %v2218_v23, %v2169_v26 }
0x2296   :  { %v2278_v0 = vpop.xlane.xlu0 %2277 }
0x2297   :  { %v2279_v28 = vadd.f32 %v2278_v0, %v2219_v47 }
0x2299   :  { %v4064_v55 = vpop.eup %4063 }
0x229a   :  { %v2926_v15 = vsel %vm2160_vm12, %v4064_v55, 0.0 }
0x229b   :  { %2927 = vadd.xlane.f32.xlu1 %v2926_v15 }
0x2328   :  { %v2928_v50 = vpop.xlane.xlu1 %2927 }
0x2329   :  { %4065 = vlog2.f32 %v2928_v50 }
0x2333   :  { %v4066_v62 = vpop.eup %4065 }
0x2334   :  { %v2930_v52 = vmul.f32 0.6931472, %v4066_v62 }
0x2336   :  { %v2931_v10 = vadd.f32 %v2930_v52, %v2922_v49 }
0x2338   :  { %v2932_v32 = vsub.f32 %v2279_v28, %v2931_v10 }
0x233a   :  { %2935 = vperm.xlu0 %3946, %v2932_v32  }
0x233b   :  { %4190 = shalt.err (!%p4187_p2)
}
0x233c   :  { %s4191_s2 = scalar_lea.hbm %s5136_s10, 256 }
0x233d   :  { %p4192_p3 = scmp.ne.s32.totalorder %s5136_s10, %s4191_s2  ;;  %p4195_p4 = scmp.lt.u32.totalorder %s4191_s2, %s5136_s10 }
0x233f   :  { %p4197_p5 = pnand %p4195_p4, %p4192_p3 }
0x2341   :  { %4200 = shalt.err (!%p4197_p5)
}
0x2342   :  { %2960 = dma.vmem_to_hbm [thread:$0]  %s2955_s11, 256, %s5136_s10, [#allocation13], %s4236_s14, %s4236_s14, %s4237_s17  }
0x2343   :  { %s4260_s28 = smov [#allocation11]  }
0x2344   :  { %s2945_s21 = sshll.u32 %s4260_s28, 4  ;;  %s2946_s21 = int_to_ptr.vmem [resolvable:$true] %s2945_s21 }
0x2345   :  { %s4201_s22 = scalar_lea.vmem %s2946_s21, 32  ;;  %p4206_p7 = scmp.lt.s32.totalorder %s2946_s21, %s2946_s21 }
0x2346   :  { %p4202_p6 = scmp.ne.s32.totalorder %s2946_s21, %s4201_s22  ;;  %p4207_p8 = scmp.lt.s32.totalorder %s4201_s22, %s4201_s22 }
0x2348   :  { %p4208_p9 = por %p4207_p8, %p4206_p7 }
0x234a   :  { %p4209_p10 = pnand %p4208_p9, %p4202_p6 }
0x23b9   :  { %v2936_v34 = vpop.permute.xlu0 %2935 }
0x23ba   :  { %2938 = vst [vmem:[#allocation11] sm:$0x3] %v2936_v34 }
0x23bb   :  { %4212 = shalt.err (!%p4209_p10)
}
0x23bc   :  { %s4213_s5 = scalar_lea.hbm %s5135_s9, 32 }
0x23bd   :  { %p4214_p11 = scmp.ne.s32.totalorder %s5135_s9, %s4213_s5  ;;  %p4217_p12 = scmp.lt.u32.totalorder %s4213_s5, %s5135_s9 }
0x23bf   :  { %p4219_p13 = pnand %p4217_p12, %p4214_p11 }
0x23c1   :  { %4222 = shalt.err (!%p4219_p13)
}
0x23c2   :  { %2948 = dma.vmem_to_hbm [thread:$0]  %s2946_s21, 32, %s5135_s9, [#allocation4]  }
0x23c3   :  { %4229 = dma.done.wait [#allocation4], 32  }
0x23c4   :  { %4230 = vsyncadd [#allocation4], 4294967264 }
0x23c5   :  { %4231 = dma.done.wait [#allocation13], 256  }
0x23c6   :  { %4232 = vsyncadd [#allocation13], 4294967040 }
0x23c7   :  { %2967 = vsyncpa [#allocation3], 1 }
0x23c8   :  { %2968 = vsyncpa [#allocation6], 1 }
0x23c9   :  { %2969 = vsyncpa [#allocation9], 1 }
0x23ca   :  { %2970 = vsyncpa [#allocation4], 1 }
0x23cb   :  { %2971 = vsyncpa [#allocation13], 1 }

</bundles_post_ra>
